<compile_context>
chip_gen: v6e
topology: v6e:2x2x1
jax: 0.10.0
libtpu: 0.0.40
codegen_flags: <defaults>
</compile_context>

<pallas_src>
import jax
import jax.numpy as jnp
from jax.experimental import pallas as pl
from jax.experimental.pallas import tpu as pltpu


_CONV_LAYERS = (
    # (name, kernel_size, stride)
    ("conv1", 5, 2),
    ("conv2", 5, 2),
    ("conv3", 5, 2),
    ("conv4", 3, 1),
    ("conv5", 3, 1),
)


def _round_up(x, m):
    return (x + m - 1) // m * m


# ----------------------------------------------------------------------------
# Pallas kernel: transposed conv matmul, o(OC, tile) = ELU(W(OC,K) @ P(K,tile) + b)
# ----------------------------------------------------------------------------
def _conv_matmul_elu_kernel(w_ref, b_ref, p_ref, o_ref):
    # bf16 x bf16 -> f32 accumulate on the MXU.
    acc = jnp.dot(w_ref[...], p_ref[...], preferred_element_type=jnp.float32)
    acc = acc + b_ref[...]                                   # (OC,1) broadcast over lanes
    # ELU(alpha=1).  exp(min(x,0))-1 avoids EUP work / overflow on the positive
    # branch; expm1-level precision is immaterial for a bf16-stored activation.
    neg = jnp.exp(jnp.minimum(acc, 0.0)) - 1.0
    o_ref[...] = jnp.where(acc > 0.0, acc, neg).astype(o_ref.dtype)


def conv2d_elu_T(x_cnhw, w_t, b_col, ksize, stride, lane_tile=512):
    """Valid-padded square conv + ELU on channel-major activations.

    x_cnhw: (C, N, H, W) bf16,  w_t: (OC, C*KH*KW) bf16,  b_col: (OC, 1) f32
    returns (OC, N, OH, OW) bf16.
    """
    C, N, H, W = x_cnhw.shape
    OC, K = w_t.shape
    assert K == C * ksize * ksize, (K, C, ksize)
    OH = (H - ksize) // stride + 1
    OW = (W - ksize) // stride + 1

    # Transposed im2col: (K, M) with K ordered (c, kh, kw) == torch weight
    # flatten order, M ordered (n, oh, ow).  Stack + reshape only, no transposes.
    cols = []
    for i in range(ksize):
        for j in range(ksize):
            cols.append(x_cnhw[:, :, i:i + stride * OH:stride,
                               j:j + stride * OW:stride])
    pt = jnp.stack(cols, axis=1).reshape(K, N * OH * OW)

    M = N * OH * OW
    tile = min(lane_tile, _round_up(M, 128))     # lane tile: multiple of 128 (256-friendly)
    Mp = _round_up(M, tile)
    if Mp != M:
        pt = jnp.pad(pt, ((0, 0), (0, Mp - M)))

    out = pl.pallas_call(
        _conv_matmul_elu_kernel,
        out_shape=jax.ShapeDtypeStruct((OC, Mp), jnp.bfloat16),
        grid=(Mp // tile,),
        in_specs=[
            pl.BlockSpec((OC, K), lambda m: (0, 0)),     # weights: VMEM-resident
            pl.BlockSpec((OC, 1), lambda m: (0, 0)),     # bias:    VMEM-resident
            pl.BlockSpec((K, tile), lambda m: (0, m)),   # patches: tiled over M
        ],
        out_specs=pl.BlockSpec((OC, tile), lambda m: (0, m)),
        compiler_params=pltpu.CompilerParams(
            dimension_semantics=("parallel",)),
    )(w_t, b_col, pt)

    return out[:, :M].reshape(OC, N, OH, OW)


# ----------------------------------------------------------------------------
# Pallas kernel: fused FC head  fc1 -> fc2 -> fc3 -> fc4 -> softmax
# ----------------------------------------------------------------------------
def _fc_head_kernel(x_ref, w1_ref, b1_ref, w2_ref, b2_ref, w3_ref, b3_ref,
                    w4_ref, b4_ref, o_ref):
    def _elu(v):
        return jnp.where(v > 0.0, v, jnp.exp(jnp.minimum(v, 0.0)) - 1.0)

    h = jnp.dot(x_ref[...], w1_ref[...], preferred_element_type=jnp.float32)
    h = _elu(h + b1_ref[...]).astype(jnp.bfloat16)
    h = jnp.dot(h, w2_ref[...], preferred_element_type=jnp.float32)
    h = _elu(h + b2_ref[...]).astype(jnp.bfloat16)
    h = jnp.dot(h, w3_ref[...], preferred_element_type=jnp.float32)
    h = _elu(h + b3_ref[...]).astype(jnp.bfloat16)
    logits = jnp.dot(h, w4_ref[...], preferred_element_type=jnp.float32) + b4_ref[...]
    m = jnp.max(logits, axis=-1, keepdims=True)
    e = jnp.exp(logits - m)
    denom = jnp.sum(e, axis=-1, keepdims=True)
    o_ref[...] = (e * pl.reciprocal(denom, approx=True)).astype(o_ref.dtype)


def fc_head(feat, prepared):
    N = feat.shape[0]
    w1, b1 = prepared["fc1"]
    w2, b2 = prepared["fc2"]
    w3, b3 = prepared["fc3"]
    w4, b4 = prepared["fc4"]
    num_outputs = w4.shape[1]
    feat = feat.astype(jnp.bfloat16)

    def full(shape):
        return pl.BlockSpec(shape, lambda i: (0, 0))

    return pl.pallas_call(
        _fc_head_kernel,
        out_shape=jax.ShapeDtypeStruct((N, num_outputs), jnp.float32),
        grid=(1,),
        in_specs=[full(feat.shape), full(w1.shape), full(b1.shape),
                  full(w2.shape), full(b2.shape), full(w3.shape),
                  full(b3.shape), full(w4.shape), full(b4.shape)],
        out_specs=full((N, num_outputs)),
        compiler_params=pltpu.CompilerParams(
            dimension_semantics=("arbitrary",)),
    )(feat, w1, b1, w2, b2, w3, b3, w4, b4)


# ----------------------------------------------------------------------------
# Parameters (deterministic, PyTorch-default-like uniform init) + preprocessing
# ----------------------------------------------------------------------------
def _init_conv(key, oc, ic, kh, kw):
    k1, k2 = jax.random.split(key)
    bound = 1.0 / jnp.sqrt(ic * kh * kw)
    w = jax.random.uniform(k1, (oc, ic, kh, kw), jnp.float32, -bound, bound)
    b = jax.random.uniform(k2, (oc,), jnp.float32, -bound, bound)
    return w, b


def _init_fc(key, in_f, out_f):
    k1, k2 = jax.random.split(key)
    bound = 1.0 / jnp.sqrt(in_f)
    w = jax.random.uniform(k1, (out_f, in_f), jnp.float32, -bound, bound)
    b = jax.random.uniform(k2, (out_f,), jnp.float32, -bound, bound)
    return w, b


def init_params(key, num_outputs=3):
    keys = jax.random.split(key, 9)
    p = {}
    p["conv1"] = _init_conv(keys[0], 24, 3, 5, 5)
    p["conv2"] = _init_conv(keys[1], 32, 24, 5, 5)
    p["conv3"] = _init_conv(keys[2], 48, 32, 5, 5)
    p["conv4"] = _init_conv(keys[3], 64, 48, 3, 3)
    p["conv5"] = _init_conv(keys[4], 64, 64, 3, 3)
    p["fc1"] = _init_fc(keys[5], 1152, 100)
    p["fc2"] = _init_fc(keys[6], 100, 50)
    p["fc3"] = _init_fc(keys[7], 50, 10)
    p["fc4"] = _init_fc(keys[8], 10, num_outputs)
    return p


def prepare_params(params):
    """Hoist all weight reshapes/transposes/casts out of the forward path."""
    prep = {}
    for name, _, _ in _CONV_LAYERS:
        w, b = params[name]
        oc, ic, kh, kw = w.shape
        prep[name] = (w.reshape(oc, ic * kh * kw).astype(jnp.bfloat16),  # (OC, K)
                      b.reshape(oc, 1).astype(jnp.float32))              # (OC, 1)
    for name in ("fc1", "fc2", "fc3", "fc4"):
        w, b = params[name]
        prep[name] = (w.T.astype(jnp.bfloat16),                          # (in, out)
                      b.reshape(1, -1).astype(jnp.float32))              # (1, out)
    return prep


# ----------------------------------------------------------------------------
# Forward pass (mirrors NVIDIANet.forward in eval mode)
# ----------------------------------------------------------------------------
def nvidia_net_forward(prepared, x_nchw):
    x = (x_nchw.astype(jnp.float32) * (1.0 / 255.0)).astype(jnp.bfloat16)
    x = jnp.transpose(x, (1, 0, 2, 3))                   # (C, N, H, W) channel-major
    for name, ksize, stride in _CONV_LAYERS:
        w_t, b_col = prepared[name]
        x = conv2d_elu_T(x, w_t, b_col, ksize, stride)   # dropout: identity (eval)
    C, N, H, W = x.shape
    feat = jnp.transpose(x, (1, 0, 2, 3)).reshape(N, C * H * W)  # torch (C,H,W) flatten order
    return fc_head(feat, prepared)


# ----------------------------------------------------------------------------
# Pure-JAX f32 reference for validation
# ----------------------------------------------------------------------------
def _reference_forward(params, x):
    x = x.astype(jnp.float32) / 255.0
    for name, _, stride in _CONV_LAYERS:
        w, b = params[name]
        x = jax.lax.conv_general_dilated(
            x, w, window_strides=(stride, stride), padding="VALID",
            dimension_numbers=("NCHW", "OIHW", "NCHW"))
        x = jax.nn.elu(x + b.reshape(1, -1, 1, 1))
    x = x.reshape(x.shape[0], -1)
    for name in ("fc1", "fc2", "fc3"):
        w, b = params[name]
        x = jax.nn.elu(x @ w.T + b)
    w, b = params["fc4"]
    return jax.nn.softmax(x @ w.T + b, axis=-1)


if __name__ == "__main__":
    key = jax.random.PRNGKey(0)
    k_params, k_x = jax.random.split(key)

    # NVIDIANet's fc1 (1152 = 64*1*18) pins the conv input spatial size to 66x200.
    batch = 2
    x = jax.random.uniform(k_x, (batch, 3, 66, 200), jnp.float32, 0.0, 255.0)

    params = init_params(k_params, num_outputs=3)
    prepared = prepare_params(params)

    fwd = jax.jit(nvidia_net_forward)
    out = jax.block_until_ready(fwd(prepared, x))

    assert out.shape == (batch, 3), out.shape
    # Softmax rows sum to ~1 (approx reciprocal in-kernel -> loose tolerance).
    assert bool(jnp.all(jnp.abs(jnp.sum(out, axis=1) - 1.0) < 1e-2))
    # Cross-check against the pure-JAX f32 reference (bf16 kernel path -> loose tol).
    ref = _reference_forward(params, x)
    assert bool(jnp.all(jnp.abs(out - ref) < 0.08)), (out, ref)
    print("KERNEL_OK")
</pallas_src>

<mosaic_0001>
module attributes {stable_mosaic.version = 11 : i64} {
  func.func @_conv_matmul_elu_kernel(%arg0: i32, %arg1: memref<24x75xbf16, #tpu.memory_space<vmem>>, %arg2: memref<24x1xf32, #tpu.memory_space<vmem>>, %arg3: memref<75x512xbf16, #tpu.memory_space<vmem>>, %arg4: memref<24x512xbf16, #tpu.memory_space<vmem>>) attributes {dimension_semantics = [#tpu.dimension_semantics<parallel>], iteration_bounds = array<i64: 12>, scalar_prefetch = 0 : i64, scratch_operands = 0 : i64, tpu.core_type = #tpu.core_type<tc>, window_params = [{pipeline_mode = #tpu.pipeline_mode<synchronous>, transform_indices = @transform_0, window_bounds = array<i64: 24, 75>}, {pipeline_mode = #tpu.pipeline_mode<synchronous>, transform_indices = @transform_1, window_bounds = array<i64: 24, 1>}, {transform_indices = @transform_2, window_bounds = array<i64: 75, 512>}, {transform_indices = @transform_3, window_bounds = array<i64: 24, 512>}]} {
    %c0 = arith.constant 0 : index
    %c0_0 = arith.constant 0 : index
    %0 = vector.load %arg1[%c0, %c0_0] : memref<24x75xbf16, #tpu.memory_space<vmem>>, vector<24x75xbf16>
    %c0_1 = arith.constant 0 : index
    %c0_2 = arith.constant 0 : index
    %1 = vector.load %arg3[%c0_1, %c0_2] : memref<75x512xbf16, #tpu.memory_space<vmem>>, vector<75x512xbf16>
    %cst = arith.constant dense<0.000000e+00> : vector<24x512xf32>
    %2 = tpu.matmul %0, %1, %cst {dimension_numbers = #tpu.dot_dimension_numbers<[1], [0], [0], [1], [0, 0, 1, 1], [], []>} : vector<24x75xbf16>, vector<75x512xbf16>, vector<24x512xf32> -> vector<24x512xf32>
    %c0_3 = arith.constant 0 : index
    %c0_4 = arith.constant 0 : index
    %3 = vector.load %arg2[%c0_3, %c0_4] : memref<24x1xf32, #tpu.memory_space<vmem>>, vector<24x1xf32>
    %4 = vector.broadcast %3 : vector<24x1xf32> to vector<24x512xf32>
    %5 = arith.addf %2, %4 : vector<24x512xf32>
    %cst_5 = arith.constant 0.000000e+00 : f32
    %6 = vector.broadcast %cst_5 : f32 to vector<24x512xf32>
    %7 = arith.minimumf %5, %6 : vector<24x512xf32>
    %8 = math.exp %7 : vector<24x512xf32>
    %cst_6 = arith.constant 1.000000e+00 : f32
    %9 = vector.broadcast %cst_6 : f32 to vector<24x512xf32>
    %10 = arith.subf %8, %9 : vector<24x512xf32>
    %cst_7 = arith.constant 0.000000e+00 : f32
    %11 = vector.broadcast %cst_7 : f32 to vector<24x512xf32>
    %12 = arith.cmpf ogt, %5, %11 : vector<24x512xf32>
    %13 = arith.select %12, %5, %10 : vector<24x512xi1>, vector<24x512xf32>
    %14 = arith.truncf %13 : vector<24x512xf32> to vector<24x512xbf16>
    %c0_8 = arith.constant 0 : index
    %c0_9 = arith.constant 0 : index
    %15 = vector.load %arg4[%c0_8, %c0_9] : memref<24x512xbf16, #tpu.memory_space<vmem>>, vector<24x512xbf16>
    tpu.vector_store %arg4[%c0_8, %c0_9], %14 {strides = array<i32>} : memref<24x512xbf16, #tpu.memory_space<vmem>>, vector<24x512xbf16>,
    return
  }
  func.func @transform_0(%arg0: i32) -> (i32, i32) {
    %c0_i32 = arith.constant 0 : i32
    %c0_i32_0 = arith.constant 0 : i32
    %c0_i32_1 = arith.constant 0 : i32
    return %c0_i32, %c0_i32_0 : i32, i32
  }
  func.func @transform_1(%arg0: i32) -> (i32, i32) {
    %c0_i32 = arith.constant 0 : i32
    %c0_i32_0 = arith.constant 0 : i32
    %c0_i32_1 = arith.constant 0 : i32
    return %c0_i32, %c0_i32_0 : i32, i32
  }
  func.func @transform_2(%arg0: i32) -> (i32, i32) {
    %c0_i32 = arith.constant 0 : i32
    %c0_i32_0 = arith.constant 0 : i32
    return %c0_i32, %arg0 : i32, i32
  }
  func.func @transform_3(%arg0: i32) -> (i32, i32) {
    %c0_i32 = arith.constant 0 : i32
    %c0_i32_0 = arith.constant 0 : i32
    return %c0_i32, %arg0 : i32, i32
  }
}

module attributes {stable_mosaic.version = 11 : i64} {
  func.func @_conv_matmul_elu_kernel(%arg0: i32, %arg1: memref<32x600xbf16, #tpu.memory_space<vmem>>, %arg2: memref<32x1xf32, #tpu.memory_space<vmem>>, %arg3: memref<600x512xbf16, #tpu.memory_space<vmem>>, %arg4: memref<32x512xbf16, #tpu.memory_space<vmem>>) attributes {dimension_semantics = [#tpu.dimension_semantics<parallel>], iteration_bounds = array<i64: 3>, scalar_prefetch = 0 : i64, scratch_operands = 0 : i64, tpu.core_type = #tpu.core_type<tc>, window_params = [{pipeline_mode = #tpu.pipeline_mode<synchronous>, transform_indices = @transform_0, window_bounds = array<i64: 32, 600>}, {pipeline_mode = #tpu.pipeline_mode<synchronous>, transform_indices = @transform_1, window_bounds = array<i64: 32, 1>}, {transform_indices = @transform_2, window_bounds = array<i64: 600, 512>}, {transform_indices = @transform_3, window_bounds = array<i64: 32, 512>}]} {
    %c0 = arith.constant 0 : index
    %c0_0 = arith.constant 0 : index
    %0 = vector.load %arg1[%c0, %c0_0] : memref<32x600xbf16, #tpu.memory_space<vmem>>, vector<32x600xbf16>
    %c0_1 = arith.constant 0 : index
    %c0_2 = arith.constant 0 : index
    %1 = vector.load %arg3[%c0_1, %c0_2] : memref<600x512xbf16, #tpu.memory_space<vmem>>, vector<600x512xbf16>
    %cst = arith.constant dense<0.000000e+00> : vector<32x512xf32>
    %2 = tpu.matmul %0, %1, %cst {dimension_numbers = #tpu.dot_dimension_numbers<[1], [0], [0], [1], [0, 0, 1, 1], [], []>} : vector<32x600xbf16>, vector<600x512xbf16>, vector<32x512xf32> -> vector<32x512xf32>
    %c0_3 = arith.constant 0 : index
    %c0_4 = arith.constant 0 : index
    %3 = vector.load %arg2[%c0_3, %c0_4] : memref<32x1xf32, #tpu.memory_space<vmem>>, vector<32x1xf32>
    %4 = vector.broadcast %3 : vector<32x1xf32> to vector<32x512xf32>
    %5 = arith.addf %2, %4 : vector<32x512xf32>
    %cst_5 = arith.constant 0.000000e+00 : f32
    %6 = vector.broadcast %cst_5 : f32 to vector<32x512xf32>
    %7 = arith.minimumf %5, %6 : vector<32x512xf32>
    %8 = math.exp %7 : vector<32x512xf32>
    %cst_6 = arith.constant 1.000000e+00 : f32
    %9 = vector.broadcast %cst_6 : f32 to vector<32x512xf32>
    %10 = arith.subf %8, %9 : vector<32x512xf32>
    %cst_7 = arith.constant 0.000000e+00 : f32
    %11 = vector.broadcast %cst_7 : f32 to vector<32x512xf32>
    %12 = arith.cmpf ogt, %5, %11 : vector<32x512xf32>
    %13 = arith.select %12, %5, %10 : vector<32x512xi1>, vector<32x512xf32>
    %14 = arith.truncf %13 : vector<32x512xf32> to vector<32x512xbf16>
    %c0_8 = arith.constant 0 : index
    %c0_9 = arith.constant 0 : index
    %15 = vector.load %arg4[%c0_8, %c0_9] : memref<32x512xbf16, #tpu.memory_space<vmem>>, vector<32x512xbf16>
    tpu.vector_store %arg4[%c0_8, %c0_9], %14 {strides = array<i32>} : memref<32x512xbf16, #tpu.memory_space<vmem>>, vector<32x512xbf16>,
    return
  }
  func.func @transform_0(%arg0: i32) -> (i32, i32) {
    %c0_i32 = arith.constant 0 : i32
    %c0_i32_0 = arith.constant 0 : i32
    %c0_i32_1 = arith.constant 0 : i32
    return %c0_i32, %c0_i32_0 : i32, i32
  }
  func.func @transform_1(%arg0: i32) -> (i32, i32) {
    %c0_i32 = arith.constant 0 : i32
    %c0_i32_0 = arith.constant 0 : i32
    %c0_i32_1 = arith.constant 0 : i32
    return %c0_i32, %c0_i32_0 : i32, i32
  }
  func.func @transform_2(%arg0: i32) -> (i32, i32) {
    %c0_i32 = arith.constant 0 : i32
    %c0_i32_0 = arith.constant 0 : i32
    return %c0_i32, %arg0 : i32, i32
  }
  func.func @transform_3(%arg0: i32) -> (i32, i32) {
    %c0_i32 = arith.constant 0 : i32
    %c0_i32_0 = arith.constant 0 : i32
    return %c0_i32, %arg0 : i32, i32
  }
}

module attributes {stable_mosaic.version = 11 : i64} {
  func.func @_conv_matmul_elu_kernel(%arg0: i32, %arg1: memref<48x800xbf16, #tpu.memory_space<vmem>>, %arg2: memref<48x1xf32, #tpu.memory_space<vmem>>, %arg3: memref<800x256xbf16, #tpu.memory_space<vmem>>, %arg4: memref<48x256xbf16, #tpu.memory_space<vmem>>) attributes {dimension_semantics = [#tpu.dimension_semantics<parallel>], iteration_bounds = array<i64: 1>, scalar_prefetch = 0 : i64, scratch_operands = 0 : i64, tpu.core_type = #tpu.core_type<tc>, window_params = [{pipeline_mode = #tpu.pipeline_mode<synchronous>, transform_indices = @transform_0, window_bounds = array<i64: 48, 800>}, {pipeline_mode = #tpu.pipeline_mode<synchronous>, transform_indices = @transform_1, window_bounds = array<i64: 48, 1>}, {transform_indices = @transform_2, window_bounds = array<i64: 800, 256>}, {transform_indices = @transform_3, window_bounds = array<i64: 48, 256>}]} {
    %c0 = arith.constant 0 : index
    %c0_0 = arith.constant 0 : index
    %0 = vector.load %arg1[%c0, %c0_0] : memref<48x800xbf16, #tpu.memory_space<vmem>>, vector<48x800xbf16>
    %c0_1 = arith.constant 0 : index
    %c0_2 = arith.constant 0 : index
    %1 = vector.load %arg3[%c0_1, %c0_2] : memref<800x256xbf16, #tpu.memory_space<vmem>>, vector<800x256xbf16>
    %cst = arith.constant dense<0.000000e+00> : vector<48x256xf32>
    %2 = tpu.matmul %0, %1, %cst {dimension_numbers = #tpu.dot_dimension_numbers<[1], [0], [0], [1], [0, 0, 1, 1], [], []>} : vector<48x800xbf16>, vector<800x256xbf16>, vector<48x256xf32> -> vector<48x256xf32>
    %c0_3 = arith.constant 0 : index
    %c0_4 = arith.constant 0 : index
    %3 = vector.load %arg2[%c0_3, %c0_4] : memref<48x1xf32, #tpu.memory_space<vmem>>, vector<48x1xf32>
    %4 = vector.broadcast %3 : vector<48x1xf32> to vector<48x256xf32>
    %5 = arith.addf %2, %4 : vector<48x256xf32>
    %cst_5 = arith.constant 0.000000e+00 : f32
    %6 = vector.broadcast %cst_5 : f32 to vector<48x256xf32>
    %7 = arith.minimumf %5, %6 : vector<48x256xf32>
    %8 = math.exp %7 : vector<48x256xf32>
    %cst_6 = arith.constant 1.000000e+00 : f32
    %9 = vector.broadcast %cst_6 : f32 to vector<48x256xf32>
    %10 = arith.subf %8, %9 : vector<48x256xf32>
    %cst_7 = arith.constant 0.000000e+00 : f32
    %11 = vector.broadcast %cst_7 : f32 to vector<48x256xf32>
    %12 = arith.cmpf ogt, %5, %11 : vector<48x256xf32>
    %13 = arith.select %12, %5, %10 : vector<48x256xi1>, vector<48x256xf32>
    %14 = arith.truncf %13 : vector<48x256xf32> to vector<48x256xbf16>
    %c0_8 = arith.constant 0 : index
    %c0_9 = arith.constant 0 : index
    %15 = vector.load %arg4[%c0_8, %c0_9] : memref<48x256xbf16, #tpu.memory_space<vmem>>, vector<48x256xbf16>
    tpu.vector_store %arg4[%c0_8, %c0_9], %14 {strides = array<i32>} : memref<48x256xbf16, #tpu.memory_space<vmem>>, vector<48x256xbf16>,
    return
  }
  func.func @transform_0(%arg0: i32) -> (i32, i32) {
    %c0_i32 = arith.constant 0 : i32
    %c0_i32_0 = arith.constant 0 : i32
    %c0_i32_1 = arith.constant 0 : i32
    return %c0_i32, %c0_i32_0 : i32, i32
  }
  func.func @transform_1(%arg0: i32) -> (i32, i32) {
    %c0_i32 = arith.constant 0 : i32
    %c0_i32_0 = arith.constant 0 : i32
    %c0_i32_1 = arith.constant 0 : i32
    return %c0_i32, %c0_i32_0 : i32, i32
  }
  func.func @transform_2(%arg0: i32) -> (i32, i32) {
    %c0_i32 = arith.constant 0 : i32
    %c0_i32_0 = arith.constant 0 : i32
    return %c0_i32, %arg0 : i32, i32
  }
  func.func @transform_3(%arg0: i32) -> (i32, i32) {
    %c0_i32 = arith.constant 0 : i32
    %c0_i32_0 = arith.constant 0 : i32
    return %c0_i32, %arg0 : i32, i32
  }
}

module attributes {stable_mosaic.version = 11 : i64} {
  func.func @_conv_matmul_elu_kernel(%arg0: i32, %arg1: memref<64x432xbf16, #tpu.memory_space<vmem>>, %arg2: memref<64x1xf32, #tpu.memory_space<vmem>>, %arg3: memref<432x128xbf16, #tpu.memory_space<vmem>>, %arg4: memref<64x128xbf16, #tpu.memory_space<vmem>>) attributes {dimension_semantics = [#tpu.dimension_semantics<parallel>], iteration_bounds = array<i64: 1>, scalar_prefetch = 0 : i64, scratch_operands = 0 : i64, tpu.core_type = #tpu.core_type<tc>, window_params = [{pipeline_mode = #tpu.pipeline_mode<synchronous>, transform_indices = @transform_0, window_bounds = array<i64: 64, 432>}, {pipeline_mode = #tpu.pipeline_mode<synchronous>, transform_indices = @transform_1, window_bounds = array<i64: 64, 1>}, {transform_indices = @transform_2, window_bounds = array<i64: 432, 128>}, {transform_indices = @transform_3, window_bounds = array<i64: 64, 128>}]} {
    %c0 = arith.constant 0 : index
    %c0_0 = arith.constant 0 : index
    %0 = vector.load %arg1[%c0, %c0_0] : memref<64x432xbf16, #tpu.memory_space<vmem>>, vector<64x432xbf16>
    %c0_1 = arith.constant 0 : index
    %c0_2 = arith.constant 0 : index
    %1 = vector.load %arg3[%c0_1, %c0_2] : memref<432x128xbf16, #tpu.memory_space<vmem>>, vector<432x128xbf16>
    %cst = arith.constant dense<0.000000e+00> : vector<64x128xf32>
    %2 = tpu.matmul %0, %1, %cst {dimension_numbers = #tpu.dot_dimension_numbers<[1], [0], [0], [1], [0, 0, 1, 1], [], []>} : vector<64x432xbf16>, vector<432x128xbf16>, vector<64x128xf32> -> vector<64x128xf32>
    %c0_3 = arith.constant 0 : index
    %c0_4 = arith.constant 0 : index
    %3 = vector.load %arg2[%c0_3, %c0_4] : memref<64x1xf32, #tpu.memory_space<vmem>>, vector<64x1xf32>
    %4 = vector.broadcast %3 : vector<64x1xf32> to vector<64x128xf32>
    %5 = arith.addf %2, %4 : vector<64x128xf32>
    %cst_5 = arith.constant 0.000000e+00 : f32
    %6 = vector.broadcast %cst_5 : f32 to vector<64x128xf32>
    %7 = arith.minimumf %5, %6 : vector<64x128xf32>
    %8 = math.exp %7 : vector<64x128xf32>
    %cst_6 = arith.constant 1.000000e+00 : f32
    %9 = vector.broadcast %cst_6 : f32 to vector<64x128xf32>
    %10 = arith.subf %8, %9 : vector<64x128xf32>
    %cst_7 = arith.constant 0.000000e+00 : f32
    %11 = vector.broadcast %cst_7 : f32 to vector<64x128xf32>
    %12 = arith.cmpf ogt, %5, %11 : vector<64x128xf32>
    %13 = arith.select %12, %5, %10 : vector<64x128xi1>, vector<64x128xf32>
    %14 = arith.truncf %13 : vector<64x128xf32> to vector<64x128xbf16>
    %c0_8 = arith.constant 0 : index
    %c0_9 = arith.constant 0 : index
    %15 = vector.load %arg4[%c0_8, %c0_9] : memref<64x128xbf16, #tpu.memory_space<vmem>>, vector<64x128xbf16>
    tpu.vector_store %arg4[%c0_8, %c0_9], %14 {strides = array<i32>} : memref<64x128xbf16, #tpu.memory_space<vmem>>, vector<64x128xbf16>,
    return
  }
  func.func @transform_0(%arg0: i32) -> (i32, i32) {
    %c0_i32 = arith.constant 0 : i32
    %c0_i32_0 = arith.constant 0 : i32
    %c0_i32_1 = arith.constant 0 : i32
    return %c0_i32, %c0_i32_0 : i32, i32
  }
  func.func @transform_1(%arg0: i32) -> (i32, i32) {
    %c0_i32 = arith.constant 0 : i32
    %c0_i32_0 = arith.constant 0 : i32
    %c0_i32_1 = arith.constant 0 : i32
    return %c0_i32, %c0_i32_0 : i32, i32
  }
  func.func @transform_2(%arg0: i32) -> (i32, i32) {
    %c0_i32 = arith.constant 0 : i32
    %c0_i32_0 = arith.constant 0 : i32
    return %c0_i32, %arg0 : i32, i32
  }
  func.func @transform_3(%arg0: i32) -> (i32, i32) {
    %c0_i32 = arith.constant 0 : i32
    %c0_i32_0 = arith.constant 0 : i32
    return %c0_i32, %arg0 : i32, i32
  }
}

module attributes {stable_mosaic.version = 11 : i64} {
  func.func @_conv_matmul_elu_kernel(%arg0: i32, %arg1: memref<64x576xbf16, #tpu.memory_space<vmem>>, %arg2: memref<64x1xf32, #tpu.memory_space<vmem>>, %arg3: memref<576x128xbf16, #tpu.memory_space<vmem>>, %arg4: memref<64x128xbf16, #tpu.memory_space<vmem>>) attributes {dimension_semantics = [#tpu.dimension_semantics<parallel>], iteration_bounds = array<i64: 1>, scalar_prefetch = 0 : i64, scratch_operands = 0 : i64, tpu.core_type = #tpu.core_type<tc>, window_params = [{pipeline_mode = #tpu.pipeline_mode<synchronous>, transform_indices = @transform_0, window_bounds = array<i64: 64, 576>}, {pipeline_mode = #tpu.pipeline_mode<synchronous>, transform_indices = @transform_1, window_bounds = array<i64: 64, 1>}, {transform_indices = @transform_2, window_bounds = array<i64: 576, 128>}, {transform_indices = @transform_3, window_bounds = array<i64: 64, 128>}]} {
    %c0 = arith.constant 0 : index
    %c0_0 = arith.constant 0 : index
    %0 = vector.load %arg1[%c0, %c0_0] : memref<64x576xbf16, #tpu.memory_space<vmem>>, vector<64x576xbf16>
    %c0_1 = arith.constant 0 : index
    %c0_2 = arith.constant 0 : index
    %1 = vector.load %arg3[%c0_1, %c0_2] : memref<576x128xbf16, #tpu.memory_space<vmem>>, vector<576x128xbf16>
    %cst = arith.constant dense<0.000000e+00> : vector<64x128xf32>
    %2 = tpu.matmul %0, %1, %cst {dimension_numbers = #tpu.dot_dimension_numbers<[1], [0], [0], [1], [0, 0, 1, 1], [], []>} : vector<64x576xbf16>, vector<576x128xbf16>, vector<64x128xf32> -> vector<64x128xf32>
    %c0_3 = arith.constant 0 : index
    %c0_4 = arith.constant 0 : index
    %3 = vector.load %arg2[%c0_3, %c0_4] : memref<64x1xf32, #tpu.memory_space<vmem>>, vector<64x1xf32>
    %4 = vector.broadcast %3 : vector<64x1xf32> to vector<64x128xf32>
    %5 = arith.addf %2, %4 : vector<64x128xf32>
    %cst_5 = arith.constant 0.000000e+00 : f32
    %6 = vector.broadcast %cst_5 : f32 to vector<64x128xf32>
    %7 = arith.minimumf %5, %6 : vector<64x128xf32>
    %8 = math.exp %7 : vector<64x128xf32>
    %cst_6 = arith.constant 1.000000e+00 : f32
    %9 = vector.broadcast %cst_6 : f32 to vector<64x128xf32>
    %10 = arith.subf %8, %9 : vector<64x128xf32>
    %cst_7 = arith.constant 0.000000e+00 : f32
    %11 = vector.broadcast %cst_7 : f32 to vector<64x128xf32>
    %12 = arith.cmpf ogt, %5, %11 : vector<64x128xf32>
    %13 = arith.select %12, %5, %10 : vector<64x128xi1>, vector<64x128xf32>
    %14 = arith.truncf %13 : vector<64x128xf32> to vector<64x128xbf16>
    %c0_8 = arith.constant 0 : index
    %c0_9 = arith.constant 0 : index
    %15 = vector.load %arg4[%c0_8, %c0_9] : memref<64x128xbf16, #tpu.memory_space<vmem>>, vector<64x128xbf16>
    tpu.vector_store %arg4[%c0_8, %c0_9], %14 {strides = array<i32>} : memref<64x128xbf16, #tpu.memory_space<vmem>>, vector<64x128xbf16>,
    return
  }
  func.func @transform_0(%arg0: i32) -> (i32, i32) {
    %c0_i32 = arith.constant 0 : i32
    %c0_i32_0 = arith.constant 0 : i32
    %c0_i32_1 = arith.constant 0 : i32
    return %c0_i32, %c0_i32_0 : i32, i32
  }
  func.func @transform_1(%arg0: i32) -> (i32, i32) {
    %c0_i32 = arith.constant 0 : i32
    %c0_i32_0 = arith.constant 0 : i32
    %c0_i32_1 = arith.constant 0 : i32
    return %c0_i32, %c0_i32_0 : i32, i32
  }
  func.func @transform_2(%arg0: i32) -> (i32, i32) {
    %c0_i32 = arith.constant 0 : i32
    %c0_i32_0 = arith.constant 0 : i32
    return %c0_i32, %arg0 : i32, i32
  }
  func.func @transform_3(%arg0: i32) -> (i32, i32) {
    %c0_i32 = arith.constant 0 : i32
    %c0_i32_0 = arith.constant 0 : i32
    return %c0_i32, %arg0 : i32, i32
  }
}

module attributes {stable_mosaic.version = 11 : i64} {
  func.func @_fc_head_kernel(%arg0: i32, %arg1: memref<2x1152xbf16, #tpu.memory_space<vmem>>, %arg2: memref<1152x100xbf16, #tpu.memory_space<vmem>>, %arg3: memref<1x100xf32, #tpu.memory_space<vmem>>, %arg4: memref<100x50xbf16, #tpu.memory_space<vmem>>, %arg5: memref<1x50xf32, #tpu.memory_space<vmem>>, %arg6: memref<50x10xbf16, #tpu.memory_space<vmem>>, %arg7: memref<1x10xf32, #tpu.memory_space<vmem>>, %arg8: memref<10x3xbf16, #tpu.memory_space<vmem>>, %arg9: memref<1x3xf32, #tpu.memory_space<vmem>>, %arg10: memref<2x3xf32, #tpu.memory_space<vmem>>) attributes {dimension_semantics = [#tpu.dimension_semantics<arbitrary>], iteration_bounds = array<i64: 1>, scalar_prefetch = 0 : i64, scratch_operands = 0 : i64, tpu.core_type = #tpu.core_type<tc>, window_params = [{pipeline_mode = #tpu.pipeline_mode<synchronous>, transform_indices = @transform_0, window_bounds = array<i64: 2, 1152>}, {pipeline_mode = #tpu.pipeline_mode<synchronous>, transform_indices = @transform_1, window_bounds = array<i64: 1152, 100>}, {pipeline_mode = #tpu.pipeline_mode<synchronous>, transform_indices = @transform_2, window_bounds = array<i64: 1, 100>}, {pipeline_mode = #tpu.pipeline_mode<synchronous>, transform_indices = @transform_3, window_bounds = array<i64: 100, 50>}, {pipeline_mode = #tpu.pipeline_mode<synchronous>, transform_indices = @transform_4, window_bounds = array<i64: 1, 50>}, {pipeline_mode = #tpu.pipeline_mode<synchronous>, transform_indices = @transform_5, window_bounds = array<i64: 50, 10>}, {pipeline_mode = #tpu.pipeline_mode<synchronous>, transform_indices = @transform_6, window_bounds = array<i64: 1, 10>}, {pipeline_mode = #tpu.pipeline_mode<synchronous>, transform_indices = @transform_7, window_bounds = array<i64: 10, 3>}, {pipeline_mode = #tpu.pipeline_mode<synchronous>, transform_indices = @transform_8, window_bounds = array<i64: 1, 3>}, {pipeline_mode = #tpu.pipeline_mode<synchronous>, transform_indices = @transform_9, window_bounds = array<i64: 2, 3>}]} {
    %c0 = arith.constant 0 : index
    %c0_0 = arith.constant 0 : index
    %0 = vector.load %arg1[%c0, %c0_0] : memref<2x1152xbf16, #tpu.memory_space<vmem>>, vector<2x1152xbf16>
    %c0_1 = arith.constant 0 : index
    %c0_2 = arith.constant 0 : index
    %1 = vector.load %arg2[%c0_1, %c0_2] : memref<1152x100xbf16, #tpu.memory_space<vmem>>, vector<1152x100xbf16>
    %cst = arith.constant dense<0.000000e+00> : vector<2x100xf32>
    %2 = tpu.matmul %0, %1, %cst {dimension_numbers = #tpu.dot_dimension_numbers<[1], [0], [0], [1], [0, 0, 1, 1], [], []>} : vector<2x1152xbf16>, vector<1152x100xbf16>, vector<2x100xf32> -> vector<2x100xf32>
    %c0_3 = arith.constant 0 : index
    %c0_4 = arith.constant 0 : index
    %3 = vector.load %arg3[%c0_3, %c0_4] : memref<1x100xf32, #tpu.memory_space<vmem>>, vector<1x100xf32>
    %4 = vector.broadcast %3 : vector<1x100xf32> to vector<2x100xf32>
    %5 = arith.addf %2, %4 : vector<2x100xf32>
    %cst_5 = arith.constant 0.000000e+00 : f32
    %6 = vector.broadcast %cst_5 : f32 to vector<2x100xf32>
    %7 = arith.cmpf ogt, %5, %6 : vector<2x100xf32>
    %cst_6 = arith.constant 0.000000e+00 : f32
    %8 = vector.broadcast %cst_6 : f32 to vector<2x100xf32>
    %9 = arith.minimumf %5, %8 : vector<2x100xf32>
    %10 = math.exp %9 : vector<2x100xf32>
    %cst_7 = arith.constant 1.000000e+00 : f32
    %11 = vector.broadcast %cst_7 : f32 to vector<2x100xf32>
    %12 = arith.subf %10, %11 : vector<2x100xf32>
    %13 = arith.select %7, %5, %12 : vector<2x100xi1>, vector<2x100xf32>
    %14 = arith.truncf %13 : vector<2x100xf32> to vector<2x100xbf16>
    %c0_8 = arith.constant 0 : index
    %c0_9 = arith.constant 0 : index
    %15 = vector.load %arg4[%c0_8, %c0_9] : memref<100x50xbf16, #tpu.memory_space<vmem>>, vector<100x50xbf16>
    %cst_10 = arith.constant dense<0.000000e+00> : vector<2x50xf32>
    %16 = tpu.matmul %14, %15, %cst_10 {dimension_numbers = #tpu.dot_dimension_numbers<[1], [0], [0], [1], [0, 0, 1, 1], [], []>} : vector<2x100xbf16>, vector<100x50xbf16>, vector<2x50xf32> -> vector<2x50xf32>
    %c0_11 = arith.constant 0 : index
    %c0_12 = arith.constant 0 : index
    %17 = vector.load %arg5[%c0_11, %c0_12] : memref<1x50xf32, #tpu.memory_space<vmem>>, vector<1x50xf32>
    %18 = vector.broadcast %17 : vector<1x50xf32> to vector<2x50xf32>
    %19 = arith.addf %16, %18 : vector<2x50xf32>
    %cst_13 = arith.constant 0.000000e+00 : f32
    %20 = vector.broadcast %cst_13 : f32 to vector<2x50xf32>
    %21 = arith.cmpf ogt, %19, %20 : vector<2x50xf32>
    %cst_14 = arith.constant 0.000000e+00 : f32
    %22 = vector.broadcast %cst_14 : f32 to vector<2x50xf32>
    %23 = arith.minimumf %19, %22 : vector<2x50xf32>
    %24 = math.exp %23 : vector<2x50xf32>
    %cst_15 = arith.constant 1.000000e+00 : f32
    %25 = vector.broadcast %cst_15 : f32 to vector<2x50xf32>
    %26 = arith.subf %24, %25 : vector<2x50xf32>
    %27 = arith.select %21, %19, %26 : vector<2x50xi1>, vector<2x50xf32>
    %28 = arith.truncf %27 : vector<2x50xf32> to vector<2x50xbf16>
    %c0_16 = arith.constant 0 : index
    %c0_17 = arith.constant 0 : index
    %29 = vector.load %arg6[%c0_16, %c0_17] : memref<50x10xbf16, #tpu.memory_space<vmem>>, vector<50x10xbf16>
    %cst_18 = arith.constant dense<0.000000e+00> : vector<2x10xf32>
    %30 = tpu.matmul %28, %29, %cst_18 {dimension_numbers = #tpu.dot_dimension_numbers<[1], [0], [0], [1], [0, 0, 1, 1], [], []>} : vector<2x50xbf16>, vector<50x10xbf16>, vector<2x10xf32> -> vector<2x10xf32>
    %c0_19 = arith.constant 0 : index
    %c0_20 = arith.constant 0 : index
    %31 = vector.load %arg7[%c0_19, %c0_20] : memref<1x10xf32, #tpu.memory_space<vmem>>, vector<1x10xf32>
    %32 = vector.broadcast %31 : vector<1x10xf32> to vector<2x10xf32>
    %33 = arith.addf %30, %32 : vector<2x10xf32>
    %cst_21 = arith.constant 0.000000e+00 : f32
    %34 = vector.broadcast %cst_21 : f32 to vector<2x10xf32>
    %35 = arith.cmpf ogt, %33, %34 : vector<2x10xf32>
    %cst_22 = arith.constant 0.000000e+00 : f32
    %36 = vector.broadcast %cst_22 : f32 to vector<2x10xf32>
    %37 = arith.minimumf %33, %36 : vector<2x10xf32>
    %38 = math.exp %37 : vector<2x10xf32>
    %cst_23 = arith.constant 1.000000e+00 : f32
    %39 = vector.broadcast %cst_23 : f32 to vector<2x10xf32>
    %40 = arith.subf %38, %39 : vector<2x10xf32>
    %41 = arith.select %35, %33, %40 : vector<2x10xi1>, vector<2x10xf32>
    %42 = arith.truncf %41 : vector<2x10xf32> to vector<2x10xbf16>
    %c0_24 = arith.constant 0 : index
    %c0_25 = arith.constant 0 : index
    %43 = vector.load %arg8[%c0_24, %c0_25] : memref<10x3xbf16, #tpu.memory_space<vmem>>, vector<10x3xbf16>
    %cst_26 = arith.constant dense<0.000000e+00> : vector<2x3xf32>
    %44 = tpu.matmul %42, %43, %cst_26 {dimension_numbers = #tpu.dot_dimension_numbers<[1], [0], [0], [1], [0, 0, 1, 1], [], []>} : vector<2x10xbf16>, vector<10x3xbf16>, vector<2x3xf32> -> vector<2x3xf32>
    %c0_27 = arith.constant 0 : index
    %c0_28 = arith.constant 0 : index
    %45 = vector.load %arg9[%c0_27, %c0_28] : memref<1x3xf32, #tpu.memory_space<vmem>>, vector<1x3xf32>
    %46 = vector.broadcast %45 : vector<1x3xf32> to vector<2x3xf32>
    %47 = arith.addf %44, %46 : vector<2x3xf32>
    %cst_29 = arith.constant dense<0xFF800000> : vector<2xf32>
    %48 = vector.multi_reduction <maximumf>, %47, %cst_29 [1] : vector<2x3xf32> to vector<2xf32>
    %49 = vector.shape_cast %48 : vector<2xf32> to vector<2x1xf32>
    %50 = vector.broadcast %49 : vector<2x1xf32> to vector<2x3xf32>
    %51 = arith.subf %47, %50 : vector<2x3xf32>
    %52 = math.exp %51 : vector<2x3xf32>
    %cst_30 = arith.constant dense<0.000000e+00> : vector<2xf32>
    %53 = vector.multi_reduction <add>, %52, %cst_30 [1] : vector<2x3xf32> to vector<2xf32>
    %54 = vector.shape_cast %53 : vector<2xf32> to vector<2x1xf32>
    %55 = tpu.reciprocal %54 {approx = true} : vector<2x1xf32> -> vector<2x1xf32>
    %56 = vector.broadcast %55 : vector<2x1xf32> to vector<2x3xf32>
    %57 = arith.mulf %52, %56 : vector<2x3xf32>
    %c0_31 = arith.constant 0 : index
    %c0_32 = arith.constant 0 : index
    %58 = vector.load %arg10[%c0_31, %c0_32] : memref<2x3xf32, #tpu.memory_space<vmem>>, vector<2x3xf32>
    tpu.vector_store %arg10[%c0_31, %c0_32], %57 {strides = array<i32>} : memref<2x3xf32, #tpu.memory_space<vmem>>, vector<2x3xf32>,
    return
  }
  func.func @transform_0(%arg0: i32) -> (i32, i32) {
    %c0_i32 = arith.constant 0 : i32
    %c0_i32_0 = arith.constant 0 : i32
    %c0_i32_1 = arith.constant 0 : i32
    return %c0_i32, %c0_i32_0 : i32, i32
  }
  func.func @transform_1(%arg0: i32) -> (i32, i32) {
    %c0_i32 = arith.constant 0 : i32
    %c0_i32_0 = arith.constant 0 : i32
    %c0_i32_1 = arith.constant 0 : i32
    return %c0_i32, %c0_i32_0 : i32, i32
  }
  func.func @transform_2(%arg0: i32) -> (i32, i32) {
    %c0_i32 = arith.constant 0 : i32
    %c0_i32_0 = arith.constant 0 : i32
    %c0_i32_1 = arith.constant 0 : i32
    return %c0_i32, %c0_i32_0 : i32, i32
  }
  func.func @transform_3(%arg0: i32) -> (i32, i32) {
    %c0_i32 = arith.constant 0 : i32
    %c0_i32_0 = arith.constant 0 : i32
    %c0_i32_1 = arith.constant 0 : i32
    return %c0_i32, %c0_i32_0 : i32, i32
  }
  func.func @transform_4(%arg0: i32) -> (i32, i32) {
    %c0_i32 = arith.constant 0 : i32
    %c0_i32_0 = arith.constant 0 : i32
    %c0_i32_1 = arith.constant 0 : i32
    return %c0_i32, %c0_i32_0 : i32, i32
  }
  func.func @transform_5(%arg0: i32) -> (i32, i32) {
    %c0_i32 = arith.constant 0 : i32
    %c0_i32_0 = arith.constant 0 : i32
    %c0_i32_1 = arith.constant 0 : i32
    return %c0_i32, %c0_i32_0 : i32, i32
  }
  func.func @transform_6(%arg0: i32) -> (i32, i32) {
    %c0_i32 = arith.constant 0 : i32
    %c0_i32_0 = arith.constant 0 : i32
    %c0_i32_1 = arith.constant 0 : i32
    return %c0_i32, %c0_i32_0 : i32, i32
  }
  func.func @transform_7(%arg0: i32) -> (i32, i32) {
    %c0_i32 = arith.constant 0 : i32
    %c0_i32_0 = arith.constant 0 : i32
    %c0_i32_1 = arith.constant 0 : i32
    return %c0_i32, %c0_i32_0 : i32, i32
  }
  func.func @transform_8(%arg0: i32) -> (i32, i32) {
    %c0_i32 = arith.constant 0 : i32
    %c0_i32_0 = arith.constant 0 : i32
    %c0_i32_1 = arith.constant 0 : i32
    return %c0_i32, %c0_i32_0 : i32, i32
  }
  func.func @transform_9(%arg0: i32) -> (i32, i32) {
    %c0_i32 = arith.constant 0 : i32
    %c0_i32_0 = arith.constant 0 : i32
    %c0_i32_1 = arith.constant 0 : i32
    return %c0_i32, %c0_i32_0 : i32, i32
  }
}

</mosaic_0001>

<bundles_post_ra>
// kernel: nvidia_net_forward.6
= control target key start
LH: loop header
LB: loop body
LE: loop exit
PB: predicated region body
PF: predicated region fallthrough
CT: control target
= control target key end

     0   :  { %s903_s12 = smov 0   ;;  %s905_s13 = smov 0   ;;  %s1122_s0 = inlined_call_operand.vmem [shape: bf16[24,75], index: 0, kind: input, shape index: {}]   ;;  %s1123_s1 = inlined_call_operand.vmem [shape: f32[24,1], index: 1, kind: input, shape index: {}]   ;;  %s1124_s2 = inlined_call_operand.vmem [shape: bf16[75,6144], index: 2, kind: input, shape index: {}]   ;;  %s1125_s3 = inlined_call_operand.vmem [shape: bf16[24,6144], index: 3, kind: output, shape index: {}]  }
   0x1   :  { %s907_s14 = smov 0  }
   0x2 LB: > { %s707_s15 = sadd.s32 4294967295, %s879_s14   ;;  %s920_s16 = sadd.s32 1, %s879_s14   ;;  %s879_s14 = sphi %s907_s14, %s1129_s14   ;;  %s875_s13 = sphi %s905_s13, %s1128_s13   ;;  %s871_s12 = sphi %s903_s12, %s1127_s12  }
   0x3   : > { %s59_s17 = ssub.s32 %s879_s14, %s920_s16  ;;  %s62_s18 = sadd.s32 1, %s875_s13 }
   0x4   : > { %p60_p0 = scmp.eq.s32.totalorder %s59_s17, 0  ;;  %p69_p1 = scmp.ne.s32.totalorder %s875_s13, %s871_s12 }
   0x5   : > { %p70_p2 = scmp.eq.s32.totalorder %s879_s14, 0  ;;  %p99_p3 = scmp.eq.s32.totalorder %s707_s15, 11 }
   0x6   : > { %s931_s19 = scalar_select %p60_p0, %s875_s13, %s62_s18  }
   0x7   : > { %p71_p4 = por %p70_p2, %p69_p1  ;;  %p933_p5 = por %p99_p3, %p69_p1 }
   0x8   : > { %p710_p6 = scmp.ge.s32.totalorder %s879_s14, 12 }
   0xa   : > { %127 = sbr.rel (%p710_p6) target bundleno = 29 (0x1d), region = 24 }
   0xf   : > { %130 = sbr.rel (!%p71_p4) target bundleno = 29 (0x1d), region = 28  ;;  %s132_s21 = sand.u32 (%p71_p4), 1, %s875_s13  }
  0x10   : > { %s762_s22 = sshll.u32 (%p71_p4), %s879_s14, 4  ;;  %s770_s23 = smul.u32 (%p71_p4), 160, %s132_s21 }
  0x11   : > { %s943_s26 = scalar_lea.vmem (%p71_p4), %s1124_s2, %s762_s22 }
  0x12   : > { %v150_v0 = vld [vmem:[%s943_s26] sm:$0xff] (%p71_p4)  ;;  %v152_v1 = vld [vmem:[%s943_s26 + $0x8] sm:$0xff] (%p71_p4)  ;;  %s951_s27 = scalar_lea.vmem (%p71_p4), [#allocation2], %s770_s23 }
  0x13   : > { %v154_v2 = vld [vmem:[%s943_s26 + $0xc0] sm:$0xff] (%p71_p4)  ;;  %v156_v3 = vld [vmem:[%s943_s26 + $0xc8] sm:$0xff] (%p71_p4)  ;;  %151 = vst [vmem:[%s951_s27] sm:$0xff] (%p71_p4), %v150_v0  ;;  %153 = vst [vmem:[%s951_s27 + $0x8] sm:$0xff] (%p71_p4), %v152_v1 }
  0x14   : > { %v158_v4 = vld [vmem:[%s943_s26 + $0x180] sm:$0xff]  ;;  %v160_v5 = vld [vmem:[%s943_s26 + $0x188] sm:$0xff]  ;;  %155 = vst [vmem:[%s951_s27 + $0x10] sm:$0xff] %v154_v2  ;;  %157 = vst [vmem:[%s951_s27 + $0x18] sm:$0xff] %v156_v3 }
  0x15   : > { %159 = vst [vmem:[%s951_s27 + $0x20] sm:$0xff] %v158_v4  ;;  %161 = vst [vmem:[%s951_s27 + $0x28] sm:$0xff] %v160_v5  ;;  %v162_v6 = vld [vmem:[%s943_s26 + $0x240] sm:$0xff]  ;;  %v164_v7 = vld [vmem:[%s943_s26 + $0x248] sm:$0xff] }
  0x16   : > { %v166_v8 = vld [vmem:[%s943_s26 + $0x300] sm:$0xff]  ;;  %163 = vst [vmem:[%s951_s27 + $0x30] sm:$0xff] %v162_v6  ;;  %165 = vst [vmem:[%s951_s27 + $0x38] sm:$0xff] %v164_v7  ;;  %v168_v9 = vld [vmem:[%s943_s26 + $0x308] sm:$0xff] }
  0x17   : > { %167 = vst [vmem:[%s951_s27 + $0x40] sm:$0xff] %v166_v8  ;;  %v170_v10 = vld [vmem:[%s943_s26 + $0x3c0] sm:$0xff]  ;;  %v172_v11 = vld [vmem:[%s943_s26 + $0x3c8] sm:$0xff]  ;;  %169 = vst [vmem:[%s951_s27 + $0x48] sm:$0xff] %v168_v9 }
  0x18   : > { %171 = vst [vmem:[%s951_s27 + $0x50] sm:$0xff] %v170_v10  ;;  %173 = vst [vmem:[%s951_s27 + $0x58] sm:$0xff] %v172_v11  ;;  %v174_v12 = vld [vmem:[%s943_s26 + $0x480] sm:$0xff]  ;;  %v176_v13 = vld [vmem:[%s943_s26 + $0x488] sm:$0xff] }
  0x19   : > { %v178_v14 = vld [vmem:[%s943_s26 + $0x540] sm:$0xff]  ;;  %175 = vst [vmem:[%s951_s27 + $0x60] sm:$0xff] %v174_v12  ;;  %177 = vst [vmem:[%s951_s27 + $0x68] sm:$0xff] %v176_v13  ;;  %v180_v15 = vld [vmem:[%s943_s26 + $0x548] sm:$0xff] }
  0x1a   : > { %179 = vst [vmem:[%s951_s27 + $0x70] sm:$0xff] %v178_v14  ;;  %v182_v16 = vld [vmem:[%s943_s26 + $0x600] sm:$0xff]  ;;  %v184_v17 = vld [vmem:[%s943_s26 + $0x608] sm:$0xff]  ;;  %181 = vst [vmem:[%s951_s27 + $0x78] sm:$0xff] %v180_v15 }
  0x1b   : > { %183 = vst [vmem:[%s951_s27 + $0x80] sm:$0xff] %v182_v16  ;;  %185 = vst [vmem:[%s951_s27 + $0x88] sm:$0xff] %v184_v17  ;;  %v186_v18 = vld [vmem:[%s943_s26 + $0x6c0] sm:$0xff]  ;;  %v188_v19 = vld [vmem:[%s943_s26 + $0x6c8] sm:$0xff] }
  0x1c   : > { %187 = vst [vmem:[%s951_s27 + $0x90] sm:$0xff] %v186_v18  ;;  %189 = vst [vmem:[%s951_s27 + $0x98] sm:$0xff] %v188_v19 }
  0x1d PF: > { %p713_p7 = scmp.ge.s32.totalorder %s879_s14, 1  ;;  %p194_p8 = scmp.lt.s32.totalorder %s879_s14, 13 }
  0x1f   : > { %p195_p9 = pnand %p713_p7, %p194_p8 }
  0x20   : > { %s201_s28 = sand.u32 (!%p195_p9), 1, %s871_s12  }
  0x21   : > { %198 = sbr.rel (%p195_p9) target bundleno = 302 (0x12e), region = 51 }
  0x22   : > { %s771_s29 = smul.u32 (!%p195_p9), 160, %s201_s28 }
  0x23   : > { %s772_s21 = smul.u32 (!%p195_p9), 48, %s201_s28 }
  0x24   : > { %s1001_s9 = scalar_lea.vmem (!%p195_p9), [#allocation2], %s771_s29 }
  0x25   : > { %s1075_s12 = scalar_lea.vmem (!%p195_p9), [#allocation3], %s772_s21 }
  0x26   : > { %vm378_vm0 = vcmask 1044480   ;;  %vm379_vm1 = vcmask 1045504   ;;  %v881_v20 = vmov 65535   ;;  %v882_v22 = vmov 0   ;;  %v249_v24 = vld [vmem:[%s1123_s1] sm:$0xff]  ;;  %v250_v25 = vld [vmem:[%s1123_s1 + $0x8] sm:$0xff] }
  0x27   : > { %v380_v21 = vsel %vm378_vm0, 4294967295, %v881_v20  ;;  %426 = vmatprep.mubr.bf16.mxu0 %v882_v22  ;;  %477 = vmatprep.mubr.bf16.mxu1 %v882_v22  ;;  %v251_v26 = vld [vmem:[%s1123_s1 + $0x10] sm:$0xff]  ;;  %v803_v28 = vld [vmem:[%s1001_s9 + $0x8c] ss:$16 sps:$4 sm:$0x3f]   ;;  %v831_v51 = vld [vmem:[%s1122_s0] sm:$0xff]  }
  0x28   : > { %799 = vset.pattern.permute.xlu0 %v882_v22  ;;  %800 = vset.pattern.permute.xlu1 %v882_v22  ;;  %v381_v23 = vsel %vm379_vm1, %v380_v21, 0  ;;  %v801_v27 = vld [vmem:[%s1001_s9 + $0x84] ss:$16 sps:$4 sm:$0x3f]   ;;  %v809_v36 = vld [vmem:[%s1001_s9 + $0x6c] ss:$16 sps:$4 sm:$0xff]  }
  0x29   : > { %254 = vperm.xlu0 %799, %v249_v24   ;;  %264 = vperm.xlu1 %800, %v251_v26   ;;  %v386_v29 = vand.u32 %v801_v27, %v381_v23  ;;  %v805_v30 = vld [vmem:[%s1001_s9 + $0x80] ss:$16 sps:$4 sm:$0x3f]   ;;  %v806_v31 = vld [vmem:[%s1001_s9 + $0x88] ss:$16 sps:$4 sm:$0x3f]   ;;  %v392_v32 = vand.u32 %v803_v28, %v381_v23 }
  0x2a   : > { %v807_v33 = vld [vmem:[%s1001_s9 + $0x64] ss:$16 sps:$4 sm:$0xff]   ;;  %v383_v34 = vand.u32 %v805_v30, %v381_v23  ;;  %v389_v35 = vand.u32 %v806_v31, %v381_v23  ;;  %v811_v37 = vld [vmem:[%s1001_s9 + $0x60] ss:$16 sps:$4 sm:$0xff]   ;;  %v812_v38 = vld [vmem:[%s1001_s9 + $0x68] ss:$16 sps:$4 sm:$0xff]  }
  0x2b   : > { %400 = vmatprep.subr.bf16.mxu0 %v386_v29  ;;  %451 = vmatprep.subr.bf16.mxu1 %v392_v32  ;;  %v813_v39 = vld [vmem:[%s1001_s9 + $0x44] ss:$16 sps:$4 sm:$0xff]   ;;  %v815_v40 = vld [vmem:[%s1001_s9 + $0x4c] ss:$16 sps:$4 sm:$0xff]   ;;  %v817_v41 = vld [vmem:[%s1001_s9 + $0x40] ss:$16 sps:$4 sm:$0xff]  }
  0x2c   : > { %401 = vmatpush1.bf16.msra.mxu0 %v383_v34  ;;  %452 = vmatpush1.bf16.msra.mxu1 %v389_v35  ;;  %v818_v42 = vld [vmem:[%s1001_s9 + $0x48] ss:$16 sps:$4 sm:$0xff]   ;;  %v819_v43 = vld [vmem:[%s1001_s9 + $0x24] ss:$16 sps:$4 sm:$0xff]   ;;  %v821_v44 = vld [vmem:[%s1001_s9 + $0x2c] ss:$16 sps:$4 sm:$0xff]  }
  0x2d   : > { %259 = vperm.xlu0 %799, %v250_v25   ;;  %402 = vmatprep.subr.bf16.mxu0 %v807_v33  ;;  %v823_v45 = vld [vmem:[%s1001_s9 + $0x20] ss:$16 sps:$4 sm:$0xff]   ;;  %v824_v46 = vld [vmem:[%s1001_s9 + $0x28] ss:$16 sps:$4 sm:$0xff]   ;;  %v825_v47 = vld [vmem:[%s1001_s9 + $0x4] ss:$16 sps:$4 sm:$0xff]  }
  0x2e   : > { %453 = vmatprep.subr.bf16.mxu1 %v809_v36  ;;  %v827_v48 = vld [vmem:[%s1001_s9 + $0xc] ss:$16 sps:$4 sm:$0xff]   ;;  %v829_v49 = vld [vmem:[%s1001_s9] ss:$16 sps:$4 sm:$0xff]   ;;  %v830_v50 = vld [vmem:[%s1001_s9 + $0x8] ss:$16 sps:$4 sm:$0xff]  }
  0x2f   : > { %vm371_vm2 = vcmask 613376   ;;  %v832_v52 = vld [vmem:[%s1122_s0 + $0x8] ss:$0 sps:$4 sm:$0xff]   ;;  %s769_s22 = sshll.u32 (%p933_p5), %s707_s15, 4 }
  0x30   : > { %403 = vmatpush1.bf16.msra.mxu0 %v811_v37  ;;  %454 = vmatpush1.bf16.msra.mxu1 %v812_v38  ;;  %s623_s25 = scalar_lea.vmem (%p933_p5), %s1125_s3, %s769_s22 }
  0x31   : > { %404 = vmatprep.subr.bf16.mxu0 %v813_v39  ;;  %455 = vmatprep.subr.bf16.mxu1 %v815_v40 }
  0x34   : > { %405 = vmatpush1.bf16.msra.mxu0 %v817_v41  ;;  %456 = vmatpush1.bf16.msra.mxu1 %v818_v42 }
  0x35   : > { %406 = vmatprep.subr.bf16.mxu0 %v819_v43  ;;  %457 = vmatprep.subr.bf16.mxu1 %v821_v44 }
  0x38   : > { %407 = vmatpush1.bf16.msra.mxu0 %v823_v45  ;;  %458 = vmatpush1.bf16.msra.mxu1 %v824_v46 }
  0x39   : > { %408 = vmatprep.subr.bf16.mxu0 %v825_v47  ;;  %459 = vmatprep.subr.bf16.mxu1 %v827_v48 }
  0x3c   : > { %409 = vmatpush1.bf16.msra.mxu0 %v829_v49  ;;  %460 = vmatpush1.bf16.msra.mxu1 %v830_v50 }
  0x3f   : > { %736 = vmatmul.mubr.msk.bf16.vlgmr.msra.gmra.mxu0 %vm371_vm2, %v831_v51  ;;  %738 = vmatmul.mubr.msk.bf16.vlgmr.msra.gmra.mxu1 %vm371_vm2, %v831_v51 }
  0x40   : > { %436 = vmatprep.mubr.bf16.mxu0 %v882_v22  ;;  %487 = vmatprep.mubr.bf16.mxu1 %v882_v22 }
  0x47   : > { %737 = vmatmul.mubr.msk.bf16.gmra.mxu0 %vm371_vm2, %v832_v52  ;;  %739 = vmatmul.mubr.msk.bf16.gmra.mxu1 %vm371_vm2, %v832_v52 }
  0xa4   : > { %v255_v53 = vpop.permute.xlu0 %254  ;;  %v265_v13 = vpop.permute.xlu1 %264 }
  0xa8   : > { %v260_v58 = vpop.permute.xlu0 %259 }
  0xff   : > { %v428_v54 = vpop.f32.mrf.mxu0  ;;  %v479_v55 = vpop.f32.mrf.mxu1 }
 0x100   : > { %v1029_v56 = vadd.f32 %v428_v54, %v255_v53  ;;  %v1031_v57 = vadd.f32 %v479_v55, %v255_v53 }
 0x101   : > { %v430_v59 = vpop.f32.mrf.mxu0  ;;  %v481_v60 = vpop.f32.mrf.mxu1 }
 0x102   : > { %v496_v61 = vmin.f32 %v1029_v56, 0.0  ;;  %v498_v62 = vmin.f32 %v1031_v57, 0.0  ;;  %v1035_v63 = vadd.f32 %v430_v59, %v255_v53  ;;  %v1037_v0 = vadd.f32 %v481_v60, %v255_v53 }
 0x103   : > { %v432_v1 = vpop.f32.mrf.mxu0  ;;  %v483_v2 = vpop.f32.mrf.mxu1  ;;  %vm544_vm3 = vcmp.gt.f32.partialorder %v1029_v56, 0.0  ;;  %vm546_vm5 = vcmp.gt.f32.partialorder %v1031_v57, 0.0 }
 0x104   : > { %v508_v3 = vmul.f32 1.442695, %v496_v61  ;;  %v512_v4 = vmul.f32 1.442695, %v498_v62  ;;  %v1039_v5 = vadd.f32 %v432_v1, %v260_v58  ;;  %v1041_v6 = vadd.f32 %v483_v2, %v260_v58 }
 0x105   : > { %v497_v7 = vmin.f32 %v1035_v63, 0.0  ;;  %v499_v8 = vmin.f32 %v1037_v0, 0.0  ;;  %v434_v9 = vpop.f32.mrf.mxu0  ;;  %v485_v10 = vpop.f32.mrf.mxu1  ;;  %vm545_vm4 = vcmp.gt.f32.partialorder %v1035_v63, 0.0  ;;  %vm547_vm6 = vcmp.gt.f32.partialorder %v1037_v0, 0.0 }
 0x106   : > { %833 = vpow2.f32 %v508_v3  ;;  %v500_v11 = vmin.f32 %v1039_v5, 0.0  ;;  %v502_v12 = vmin.f32 %v1041_v6, 0.0  ;;  %v1047_v20 = vadd.f32 %v434_v9, %v260_v58 }
 0x107   : > { %835 = vpow2.f32 %v512_v4  ;;  %v510_v14 = vmul.f32 1.442695, %v497_v7  ;;  %v514_v15 = vmul.f32 1.442695, %v499_v8  ;;  %v438_v16 = vpop.f32.mrf.mxu0  ;;  %v489_v17 = vpop.f32.mrf.mxu1  ;;  %v1049_v21 = vadd.f32 %v485_v10, %v260_v58 }
 0x108   : > { %v516_v18 = vmul.f32 1.442695, %v500_v11  ;;  %v520_v19 = vmul.f32 1.442695, %v502_v12  ;;  %v1051_v22 = vadd.f32 %v438_v16, %v265_v13  ;;  %v1053_v23 = vadd.f32 %v489_v17, %v265_v13 }
 0x109   : > { %837 = vpow2.f32 %v510_v14  ;;  %v440_v24 = vpop.f32.mrf.mxu0  ;;  %v491_v25 = vpop.f32.mrf.mxu1  ;;  %v501_v26 = vmin.f32 %v1047_v20, 0.0  ;;  %v503_v27 = vmin.f32 %v1049_v21, 0.0  ;;  %vm548_vm7 = vcmp.gt.f32.partialorder %v1039_v5, 0.0 }
 0x10a   : > { %839 = vpow2.f32 %v514_v15  ;;  %v504_v28 = vmin.f32 %v1051_v22, 0.0  ;;  %v506_v33 = vmin.f32 %v1053_v23, 0.0  ;;  %v1059_v35 = vadd.f32 %v440_v24, %v265_v13 }
 0x10b   : > { %841 = vpow2.f32 %v516_v18  ;;  %v442_v29 = vpop.f32.mrf.mxu0  ;;  %v493_v30 = vpop.f32.mrf.mxu1  ;;  %v518_v31 = vmul.f32 1.442695, %v501_v26  ;;  %v522_v32 = vmul.f32 1.442695, %v503_v27  ;;  %v1061_v36 = vadd.f32 %v491_v25, %v265_v13 }
 0x10c   : > { %843 = vpow2.f32 %v520_v19  ;;  %v524_v34 = vmul.f32 1.442695, %v504_v28  ;;  %v528_v39 = vmul.f32 1.442695, %v506_v33  ;;  %v505_v40 = vmin.f32 %v1059_v35, 0.0 }
 0x10d   : > { %v443_v37 = vpop.f32.mrf.mxu0  ;;  %v494_v38 = vpop.f32.mrf.mxu1  ;;  %845 = vpow2.f32 %v518_v31  ;;  %v507_v41 = vmin.f32 %v1061_v36, 0.0  ;;  %vm549_vm8 = vcmp.gt.f32.partialorder %v1047_v20, 0.0  ;;  %vm550_vm9 = vcmp.gt.f32.partialorder %v1041_v6, 0.0 }
 0x10e   : > { %847 = vpow2.f32 %v522_v32  ;;  %v526_v42 = vmul.f32 1.442695, %v505_v40  ;;  %vm551_vm10 = vcmp.gt.f32.partialorder %v1049_v21, 0.0  ;;  %vm552_vm11 = vcmp.gt.f32.partialorder %v1051_v22, 0.0 }
 0x10f   : > { %849 = vpow2.f32 %v524_v34  ;;  %v530_v43 = vmul.f32 1.442695, %v507_v41  ;;  %vm553_vm12 = vcmp.gt.f32.partialorder %v1059_v35, 0.0  ;;  %vm554_vm13 = vcmp.gt.f32.partialorder %v1053_v23, 0.0 }
 0x110   : > { %851 = vpow2.f32 %v528_v39  ;;  %vm555_vm14 = vcmp.gt.f32.partialorder %v1061_v36, 0.0 }
 0x111   : > { %853 = vpow2.f32 %v526_v42 }
 0x112   : > { %855 = vpow2.f32 %v530_v43 }
 0x113   : > { %v834_v44 = vpop.eup %833 }
 0x114   : > { %v836_v45 = vpop.eup %835  ;;  %v740_v46 = vadd.f32 -1.0, %v834_v44 }
 0x115   : > { %v742_v48 = vadd.f32 -1.0, %v836_v45 }
 0x116   : > { %v838_v47 = vpop.eup %837  ;;  %v556_v54 = vsel %vm544_vm3, %v1029_v56, %v740_v46 }
 0x117   : > { %v840_v49 = vpop.eup %839  ;;  %v741_v50 = vadd.f32 -1.0, %v838_v47  ;;  %v558_v58 = vsel %vm546_vm5, %v1031_v57, %v742_v48 }
 0x118   : > { %v842_v51 = vpop.eup %841  ;;  %v743_v52 = vadd.f32 -1.0, %v840_v49 }
 0x119   : > { %v844_v53 = vpop.eup %843  ;;  %v557_v55 = vsel %vm545_vm4, %v1035_v63, %v741_v50  ;;  %v744_v61 = vadd.f32 -1.0, %v842_v51 }
 0x11a   : > { %v763_v59 = vpack.c.bf16 %v557_v55, %v556_v54  ;;  %v559_v60 = vsel %vm547_vm6, %v1037_v0, %v743_v52  ;;  %v846_v62 = vpop.eup %845  ;;  %v746_v2 = vadd.f32 -1.0, %v844_v53 }
 0x11b   : > { %v764_v1 = vpack.c.bf16 %v559_v60, %v558_v58  ;;  %v848_v3 = vpop.eup %847  ;;  %v745_v56 = vadd.f32 -1.0, %v846_v62  ;;  %v560_v0 = vsel %vm548_vm7, %v1039_v5, %v744_v61 }
 0x11c   : > { %608 = vst [vmem:[%s1075_s12] sm:$0xff] %v763_v59  ;;  %v850_v4 = vpop.eup %849  ;;  %v747_v57 = vadd.f32 -1.0, %v848_v3  ;;  %v562_v8 = vsel %vm550_vm9, %v1041_v6, %v746_v2 }
 0x11d   : > { %609 = vst [vmem:[%s1075_s12 + $0x8] sm:$0xff] %v764_v1  ;;  %v852_v63 = vpop.eup %851  ;;  %v561_v7 = vsel %vm549_vm8, %v1047_v20, %v745_v56  ;;  %v748_v11 = vadd.f32 -1.0, %v850_v4 }
 0x11e   : > { %v765_v9 = vpack.c.bf16 %v561_v7, %v560_v0  ;;  %v563_v10 = vsel %vm551_vm10, %v1049_v21, %v747_v57  ;;  %v854_v12 = vpop.eup %853  ;;  %v750_v14 = vadd.f32 -1.0, %v852_v63 }
 0x11f   : > { %v766_v13 = vpack.c.bf16 %v563_v10, %v562_v8  ;;  %v856_v15 = vpop.eup %855  ;;  %v749_v5 = vadd.f32 -1.0, %v854_v12  ;;  %v564_v6 = vsel %vm552_vm11, %v1051_v22, %v748_v11 }
 0x120   : > { %610 = vst [vmem:[%s1075_s12 + $0x10] sm:$0xff] %v765_v9  ;;  %v751_v16 = vadd.f32 -1.0, %v856_v15  ;;  %v566_v18 = vsel %vm554_vm13, %v1053_v23, %v750_v14 }
 0x121   : > { %611 = vst [vmem:[%s1075_s12 + $0x18] sm:$0xff] %v766_v13  ;;  %v565_v17 = vsel %vm553_vm12, %v1059_v35, %v749_v5  ;;  %620 = sbr.rel (!%p933_p5) target bundleno = 302 (0x12e), region = 59 }
 0x122   : > { %v767_v19 = vpack.c.bf16 %v565_v17, %v564_v6  ;;  %v567_v20 = vsel %vm555_vm14, %v1061_v36, %v751_v16 }
 0x123   : > { %v768_v21 = vpack.c.bf16 %v567_v20, %v566_v18  ;;  %v636_v22 = vld [vmem:[%s1075_s12] sm:$0xff] (%p933_p5) }
 0x124   : > { %612 = vst [vmem:[%s1075_s12 + $0x20] sm:$0xff] %v767_v19  ;;  %v638_v23 = vld [vmem:[%s1075_s12 + $0x8] sm:$0xff] (%p933_p5)  ;;  %637 = vst [vmem:[%s623_s25] sm:$0xff] (%p933_p5), %v636_v22 }
 0x125   : > { %613 = vst [vmem:[%s1075_s12 + $0x28] sm:$0xff] %v768_v21  ;;  %639 = vst [vmem:[%s623_s25 + $0x8] sm:$0xff] (%p933_p5), %v638_v23 }
 0x127   : > { %v640_v24 = vld [vmem:[%s1075_s12 + $0x10] sm:$0xff] }
 0x128   : > { %v642_v25 = vld [vmem:[%s1075_s12 + $0x18] sm:$0xff]  ;;  %641 = vst [vmem:[%s623_s25 + $0xc0] sm:$0xff] %v640_v24 }
 0x129   : > { %643 = vst [vmem:[%s623_s25 + $0xc8] sm:$0xff] %v642_v25 }
 0x12b   : > { %v644_v26 = vld [vmem:[%s1075_s12 + $0x20] sm:$0xff] }
 0x12c   : > { %v646_v27 = vld [vmem:[%s1075_s12 + $0x28] sm:$0xff]  ;;  %645 = vst [vmem:[%s623_s25 + $0x180] sm:$0xff] %v644_v26 }
 0x12d   : > { %647 = vst [vmem:[%s623_s25 + $0x188] sm:$0xff] %v646_v27 }
 0x12e PF: > { %p10_p10 = scmp.ge.s32.totalorder %s920_s16, 14   ;;  %s1127_s12 = smov %s875_s13 }
 0x12f   : > { %s1128_s13 = smov %s931_s19  ;;  %s1129_s14 = smov %s920_s16 }
 0x130   :  { %12 = sbr.rel (!%p10_p10) target bundleno = 2 (0x2), region = 113 }

// kernel: nvidia_net_forward.7
= control target key start
LH: loop header
LB: loop body
LE: loop exit
PB: predicated region body
PF: predicated region fallthrough
CT: control target
= control target key end

     0   :  { %s2620_s12 = smov 0   ;;  %s2622_s13 = smov 0   ;;  %s3298_s0 = inlined_call_operand.vmem [shape: bf16[32,600], index: 0, kind: input, shape index: {}]   ;;  %s3299_s1 = inlined_call_operand.vmem [shape: f32[32,1], index: 1, kind: input, shape index: {}]   ;;  %s3300_s2 = inlined_call_operand.vmem [shape: bf16[600,1536], index: 2, kind: input, shape index: {}]   ;;  %s3301_s3 = inlined_call_operand.vmem [shape: bf16[32,1536], index: 3, kind: output, shape index: {}]  }
   0x1   :  { %s2624_s14 = smov 0  }
   0x2 LB: > { %s2059_s15 = sadd.s32 4294967295, %s2597_s14   ;;  %s2637_s16 = sadd.s32 1, %s2597_s14   ;;  %s2597_s14 = sphi %s2624_s14, %s3305_s14   ;;  %s2593_s13 = sphi %s2622_s13, %s3304_s13   ;;  %s2589_s12 = sphi %s2620_s12, %s3303_s12  }
   0x3   : > { %s59_s17 = ssub.s32 %s2597_s14, %s2637_s16  ;;  %s62_s18 = sadd.s32 1, %s2593_s13 }
   0x4   : > { %p60_p0 = scmp.eq.s32.totalorder %s59_s17, 0  ;;  %p69_p1 = scmp.ne.s32.totalorder %s2593_s13, %s2589_s12 }
   0x5   : > { %p70_p2 = scmp.eq.s32.totalorder %s2597_s14, 0  ;;  %p99_p3 = scmp.eq.s32.totalorder %s2059_s15, 2 }
   0x6   : > { %s2648_s19 = scalar_select %p60_p0, %s2593_s13, %s62_s18  }
   0x7   : > { %p71_p4 = por %p70_p2, %p69_p1  ;;  %p2650_p5 = por %p99_p3, %p69_p1 }
   0x8   : > { %p2062_p6 = scmp.ge.s32.totalorder %s2597_s14, 3 }
   0xa   : > { %127 = sbr.rel (%p2062_p6) target bundleno = 95 (0x5f), region = 24 }
   0xf   : > { %130 = sbr.rel (!%p71_p4) target bundleno = 95 (0x5f), region = 28  ;;  %s132_s21 = sand.u32 (%p71_p4), 1, %s2593_s13  }
  0x10   : > { %s2264_s22 = sshll.u32 (%p71_p4), %s2597_s14, 4  ;;  %s2274_s23 = smul.u32 (%p71_p4), 1200, %s132_s21 }
  0x11   : > { %s2660_s26 = scalar_lea.vmem (%p71_p4), %s3300_s2, %s2264_s22 }
  0x12   : > { %v150_v0 = vld [vmem:[%s2660_s26] sm:$0xff] (%p71_p4)  ;;  %v152_v1 = vld [vmem:[%s2660_s26 + $0x8] sm:$0xff] (%p71_p4)  ;;  %v154_v2 = vld [vmem:[%s2660_s26 + $0x30] sm:$0xff] (%p71_p4)  ;;  %s2668_s27 = scalar_lea.vmem (%p71_p4), [#allocation2], %s2274_s23 }
  0x13   : > { %v156_v3 = vld [vmem:[%s2660_s26 + $0x38] sm:$0xff] (%p71_p4)  ;;  %v158_v4 = vld [vmem:[%s2660_s26 + $0x60] sm:$0xff] (%p71_p4)  ;;  %v160_v5 = vld [vmem:[%s2660_s26 + $0x68] sm:$0xff] (%p71_p4)  ;;  %151 = vst [vmem:[%s2668_s27] sm:$0xff] (%p71_p4), %v150_v0 }
  0x14   : > { %153 = vst [vmem:[%s2668_s27 + $0x8] sm:$0xff] %v152_v1  ;;  %155 = vst [vmem:[%s2668_s27 + $0x10] sm:$0xff] %v154_v2  ;;  %v162_v6 = vld [vmem:[%s2660_s26 + $0x90] sm:$0xff]  ;;  %v164_v7 = vld [vmem:[%s2660_s26 + $0x98] sm:$0xff] }
  0x15   : > { %157 = vst [vmem:[%s2668_s27 + $0x18] sm:$0xff] %v156_v3  ;;  %159 = vst [vmem:[%s2668_s27 + $0x20] sm:$0xff] %v158_v4  ;;  %v166_v8 = vld [vmem:[%s2660_s26 + $0xc0] sm:$0xff]  ;;  %v168_v9 = vld [vmem:[%s2660_s26 + $0xc8] sm:$0xff] }
  0x16   : > { %161 = vst [vmem:[%s2668_s27 + $0x28] sm:$0xff] %v160_v5  ;;  %163 = vst [vmem:[%s2668_s27 + $0x30] sm:$0xff] %v162_v6  ;;  %v170_v10 = vld [vmem:[%s2660_s26 + $0xf0] sm:$0xff]  ;;  %v172_v11 = vld [vmem:[%s2660_s26 + $0xf8] sm:$0xff] }
  0x17   : > { %165 = vst [vmem:[%s2668_s27 + $0x38] sm:$0xff] %v164_v7  ;;  %167 = vst [vmem:[%s2668_s27 + $0x40] sm:$0xff] %v166_v8  ;;  %v174_v12 = vld [vmem:[%s2660_s26 + $0x120] sm:$0xff]  ;;  %v176_v13 = vld [vmem:[%s2660_s26 + $0x128] sm:$0xff] }
  0x18   : > { %169 = vst [vmem:[%s2668_s27 + $0x48] sm:$0xff] %v168_v9  ;;  %171 = vst [vmem:[%s2668_s27 + $0x50] sm:$0xff] %v170_v10  ;;  %v178_v14 = vld [vmem:[%s2660_s26 + $0x150] sm:$0xff]  ;;  %v180_v15 = vld [vmem:[%s2660_s26 + $0x158] sm:$0xff] }
  0x19   : > { %173 = vst [vmem:[%s2668_s27 + $0x58] sm:$0xff] %v172_v11  ;;  %175 = vst [vmem:[%s2668_s27 + $0x60] sm:$0xff] %v174_v12  ;;  %v182_v16 = vld [vmem:[%s2660_s26 + $0x180] sm:$0xff]  ;;  %v184_v17 = vld [vmem:[%s2660_s26 + $0x188] sm:$0xff] }
  0x1a   : > { %177 = vst [vmem:[%s2668_s27 + $0x68] sm:$0xff] %v176_v13  ;;  %179 = vst [vmem:[%s2668_s27 + $0x70] sm:$0xff] %v178_v14  ;;  %v186_v18 = vld [vmem:[%s2660_s26 + $0x1b0] sm:$0xff]  ;;  %v188_v19 = vld [vmem:[%s2660_s26 + $0x1b8] sm:$0xff] }
  0x1b   : > { %181 = vst [vmem:[%s2668_s27 + $0x78] sm:$0xff] %v180_v15  ;;  %183 = vst [vmem:[%s2668_s27 + $0x80] sm:$0xff] %v182_v16  ;;  %v190_v20 = vld [vmem:[%s2660_s26 + $0x1e0] sm:$0xff]  ;;  %v192_v21 = vld [vmem:[%s2660_s26 + $0x1e8] sm:$0xff] }
  0x1c   : > { %185 = vst [vmem:[%s2668_s27 + $0x88] sm:$0xff] %v184_v17  ;;  %187 = vst [vmem:[%s2668_s27 + $0x90] sm:$0xff] %v186_v18  ;;  %v194_v22 = vld [vmem:[%s2660_s26 + $0x210] sm:$0xff]  ;;  %v196_v23 = vld [vmem:[%s2660_s26 + $0x218] sm:$0xff] }
  0x1d   : > { %189 = vst [vmem:[%s2668_s27 + $0x98] sm:$0xff] %v188_v19  ;;  %191 = vst [vmem:[%s2668_s27 + $0xa0] sm:$0xff] %v190_v20  ;;  %v198_v24 = vld [vmem:[%s2660_s26 + $0x240] sm:$0xff]  ;;  %v200_v25 = vld [vmem:[%s2660_s26 + $0x248] sm:$0xff] }
  0x1e   : > { %193 = vst [vmem:[%s2668_s27 + $0xa8] sm:$0xff] %v192_v21  ;;  %195 = vst [vmem:[%s2668_s27 + $0xb0] sm:$0xff] %v194_v22  ;;  %v202_v26 = vld [vmem:[%s2660_s26 + $0x270] sm:$0xff]  ;;  %v204_v27 = vld [vmem:[%s2660_s26 + $0x278] sm:$0xff] }
  0x1f   : > { %197 = vst [vmem:[%s2668_s27 + $0xb8] sm:$0xff] %v196_v23  ;;  %199 = vst [vmem:[%s2668_s27 + $0xc0] sm:$0xff] %v198_v24  ;;  %v206_v28 = vld [vmem:[%s2660_s26 + $0x2a0] sm:$0xff]  ;;  %v208_v29 = vld [vmem:[%s2660_s26 + $0x2a8] sm:$0xff] }
  0x20   : > { %201 = vst [vmem:[%s2668_s27 + $0xc8] sm:$0xff] %v200_v25  ;;  %203 = vst [vmem:[%s2668_s27 + $0xd0] sm:$0xff] %v202_v26  ;;  %v210_v30 = vld [vmem:[%s2660_s26 + $0x2d0] sm:$0xff]  ;;  %v212_v31 = vld [vmem:[%s2660_s26 + $0x2d8] sm:$0xff] }
  0x21   : > { %205 = vst [vmem:[%s2668_s27 + $0xd8] sm:$0xff] %v204_v27  ;;  %207 = vst [vmem:[%s2668_s27 + $0xe0] sm:$0xff] %v206_v28  ;;  %v214_v32 = vld [vmem:[%s2660_s26 + $0x300] sm:$0xff]  ;;  %v216_v33 = vld [vmem:[%s2660_s26 + $0x308] sm:$0xff] }
  0x22   : > { %209 = vst [vmem:[%s2668_s27 + $0xe8] sm:$0xff] %v208_v29  ;;  %211 = vst [vmem:[%s2668_s27 + $0xf0] sm:$0xff] %v210_v30  ;;  %v218_v34 = vld [vmem:[%s2660_s26 + $0x330] sm:$0xff]  ;;  %v220_v35 = vld [vmem:[%s2660_s26 + $0x338] sm:$0xff] }
  0x23   : > { %213 = vst [vmem:[%s2668_s27 + $0xf8] sm:$0xff] %v212_v31  ;;  %215 = vst [vmem:[%s2668_s27 + $0x100] sm:$0xff] %v214_v32  ;;  %v222_v36 = vld [vmem:[%s2660_s26 + $0x360] sm:$0xff]  ;;  %v224_v37 = vld [vmem:[%s2660_s26 + $0x368] sm:$0xff] }
  0x24   : > { %217 = vst [vmem:[%s2668_s27 + $0x108] sm:$0xff] %v216_v33  ;;  %219 = vst [vmem:[%s2668_s27 + $0x110] sm:$0xff] %v218_v34  ;;  %v226_v38 = vld [vmem:[%s2660_s26 + $0x390] sm:$0xff]  ;;  %v228_v39 = vld [vmem:[%s2660_s26 + $0x398] sm:$0xff] }
  0x25   : > { %221 = vst [vmem:[%s2668_s27 + $0x118] sm:$0xff] %v220_v35  ;;  %223 = vst [vmem:[%s2668_s27 + $0x120] sm:$0xff] %v222_v36  ;;  %v230_v40 = vld [vmem:[%s2660_s26 + $0x3c0] sm:$0xff]  ;;  %v232_v41 = vld [vmem:[%s2660_s26 + $0x3c8] sm:$0xff] }
  0x26   : > { %225 = vst [vmem:[%s2668_s27 + $0x128] sm:$0xff] %v224_v37  ;;  %227 = vst [vmem:[%s2668_s27 + $0x130] sm:$0xff] %v226_v38  ;;  %v234_v42 = vld [vmem:[%s2660_s26 + $0x3f0] sm:$0xff]  ;;  %v236_v43 = vld [vmem:[%s2660_s26 + $0x3f8] sm:$0xff] }
  0x27   : > { %229 = vst [vmem:[%s2668_s27 + $0x138] sm:$0xff] %v228_v39  ;;  %231 = vst [vmem:[%s2668_s27 + $0x140] sm:$0xff] %v230_v40  ;;  %v238_v44 = vld [vmem:[%s2660_s26 + $0x420] sm:$0xff]  ;;  %v240_v45 = vld [vmem:[%s2660_s26 + $0x428] sm:$0xff] }
  0x28   : > { %233 = vst [vmem:[%s2668_s27 + $0x148] sm:$0xff] %v232_v41  ;;  %235 = vst [vmem:[%s2668_s27 + $0x150] sm:$0xff] %v234_v42  ;;  %v242_v46 = vld [vmem:[%s2660_s26 + $0x450] sm:$0xff]  ;;  %v244_v47 = vld [vmem:[%s2660_s26 + $0x458] sm:$0xff] }
  0x29   : > { %237 = vst [vmem:[%s2668_s27 + $0x158] sm:$0xff] %v236_v43  ;;  %239 = vst [vmem:[%s2668_s27 + $0x160] sm:$0xff] %v238_v44  ;;  %v246_v48 = vld [vmem:[%s2660_s26 + $0x480] sm:$0xff]  ;;  %v248_v49 = vld [vmem:[%s2660_s26 + $0x488] sm:$0xff] }
  0x2a   : > { %241 = vst [vmem:[%s2668_s27 + $0x168] sm:$0xff] %v240_v45  ;;  %243 = vst [vmem:[%s2668_s27 + $0x170] sm:$0xff] %v242_v46  ;;  %v250_v50 = vld [vmem:[%s2660_s26 + $0x4b0] sm:$0xff]  ;;  %v252_v51 = vld [vmem:[%s2660_s26 + $0x4b8] sm:$0xff] }
  0x2b   : > { %245 = vst [vmem:[%s2668_s27 + $0x178] sm:$0xff] %v244_v47  ;;  %247 = vst [vmem:[%s2668_s27 + $0x180] sm:$0xff] %v246_v48  ;;  %v254_v52 = vld [vmem:[%s2660_s26 + $0x4e0] sm:$0xff]  ;;  %v256_v53 = vld [vmem:[%s2660_s26 + $0x4e8] sm:$0xff] }
  0x2c   : > { %249 = vst [vmem:[%s2668_s27 + $0x188] sm:$0xff] %v248_v49  ;;  %251 = vst [vmem:[%s2668_s27 + $0x190] sm:$0xff] %v250_v50  ;;  %v258_v54 = vld [vmem:[%s2660_s26 + $0x510] sm:$0xff]  ;;  %v260_v55 = vld [vmem:[%s2660_s26 + $0x518] sm:$0xff] }
  0x2d   : > { %253 = vst [vmem:[%s2668_s27 + $0x198] sm:$0xff] %v252_v51  ;;  %255 = vst [vmem:[%s2668_s27 + $0x1a0] sm:$0xff] %v254_v52  ;;  %v262_v56 = vld [vmem:[%s2660_s26 + $0x540] sm:$0xff]  ;;  %v264_v57 = vld [vmem:[%s2660_s26 + $0x548] sm:$0xff] }
  0x2e   : > { %257 = vst [vmem:[%s2668_s27 + $0x1a8] sm:$0xff] %v256_v53  ;;  %259 = vst [vmem:[%s2668_s27 + $0x1b0] sm:$0xff] %v258_v54  ;;  %v266_v58 = vld [vmem:[%s2660_s26 + $0x570] sm:$0xff]  ;;  %v268_v59 = vld [vmem:[%s2660_s26 + $0x578] sm:$0xff] }
  0x2f   : > { %261 = vst [vmem:[%s2668_s27 + $0x1b8] sm:$0xff] %v260_v55  ;;  %263 = vst [vmem:[%s2668_s27 + $0x1c0] sm:$0xff] %v262_v56  ;;  %v270_v60 = vld [vmem:[%s2660_s26 + $0x5a0] sm:$0xff]  ;;  %v272_v61 = vld [vmem:[%s2660_s26 + $0x5a8] sm:$0xff] }
  0x30   : > { %265 = vst [vmem:[%s2668_s27 + $0x1c8] sm:$0xff] %v264_v57  ;;  %267 = vst [vmem:[%s2668_s27 + $0x1d0] sm:$0xff] %v266_v58  ;;  %v274_v62 = vld [vmem:[%s2660_s26 + $0x5d0] sm:$0xff]  ;;  %v276_v63 = vld [vmem:[%s2660_s26 + $0x5d8] sm:$0xff] }
  0x31   : > { %269 = vst [vmem:[%s2668_s27 + $0x1d8] sm:$0xff] %v268_v59  ;;  %271 = vst [vmem:[%s2668_s27 + $0x1e0] sm:$0xff] %v270_v60  ;;  %v278_v0 = vld [vmem:[%s2660_s26 + $0x600] sm:$0xff]  ;;  %v280_v1 = vld [vmem:[%s2660_s26 + $0x608] sm:$0xff] }
  0x32   : > { %273 = vst [vmem:[%s2668_s27 + $0x1e8] sm:$0xff] %v272_v61  ;;  %275 = vst [vmem:[%s2668_s27 + $0x1f0] sm:$0xff] %v274_v62  ;;  %v282_v2 = vld [vmem:[%s2660_s26 + $0x630] sm:$0xff]  ;;  %v284_v3 = vld [vmem:[%s2660_s26 + $0x638] sm:$0xff] }
  0x33   : > { %277 = vst [vmem:[%s2668_s27 + $0x1f8] sm:$0xff] %v276_v63  ;;  %279 = vst [vmem:[%s2668_s27 + $0x200] sm:$0xff] %v278_v0  ;;  %v286_v4 = vld [vmem:[%s2660_s26 + $0x660] sm:$0xff]  ;;  %v288_v5 = vld [vmem:[%s2660_s26 + $0x668] sm:$0xff] }
  0x34   : > { %281 = vst [vmem:[%s2668_s27 + $0x208] sm:$0xff] %v280_v1  ;;  %283 = vst [vmem:[%s2668_s27 + $0x210] sm:$0xff] %v282_v2  ;;  %v290_v6 = vld [vmem:[%s2660_s26 + $0x690] sm:$0xff]  ;;  %v292_v7 = vld [vmem:[%s2660_s26 + $0x698] sm:$0xff] }
  0x35   : > { %285 = vst [vmem:[%s2668_s27 + $0x218] sm:$0xff] %v284_v3  ;;  %287 = vst [vmem:[%s2668_s27 + $0x220] sm:$0xff] %v286_v4  ;;  %v294_v8 = vld [vmem:[%s2660_s26 + $0x6c0] sm:$0xff]  ;;  %v296_v9 = vld [vmem:[%s2660_s26 + $0x6c8] sm:$0xff] }
  0x36   : > { %289 = vst [vmem:[%s2668_s27 + $0x228] sm:$0xff] %v288_v5  ;;  %291 = vst [vmem:[%s2668_s27 + $0x230] sm:$0xff] %v290_v6  ;;  %v298_v10 = vld [vmem:[%s2660_s26 + $0x6f0] sm:$0xff]  ;;  %v300_v11 = vld [vmem:[%s2660_s26 + $0x6f8] sm:$0xff] }
  0x37   : > { %293 = vst [vmem:[%s2668_s27 + $0x238] sm:$0xff] %v292_v7  ;;  %295 = vst [vmem:[%s2668_s27 + $0x240] sm:$0xff] %v294_v8  ;;  %v302_v12 = vld [vmem:[%s2660_s26 + $0x720] sm:$0xff]  ;;  %v304_v13 = vld [vmem:[%s2660_s26 + $0x728] sm:$0xff] }
  0x38   : > { %297 = vst [vmem:[%s2668_s27 + $0x248] sm:$0xff] %v296_v9  ;;  %299 = vst [vmem:[%s2668_s27 + $0x250] sm:$0xff] %v298_v10  ;;  %v306_v14 = vld [vmem:[%s2660_s26 + $0x750] sm:$0xff]  ;;  %v308_v15 = vld [vmem:[%s2660_s26 + $0x758] sm:$0xff] }
  0x39   : > { %301 = vst [vmem:[%s2668_s27 + $0x258] sm:$0xff] %v300_v11  ;;  %303 = vst [vmem:[%s2668_s27 + $0x260] sm:$0xff] %v302_v12  ;;  %v310_v16 = vld [vmem:[%s2660_s26 + $0x780] sm:$0xff]  ;;  %v312_v17 = vld [vmem:[%s2660_s26 + $0x788] sm:$0xff] }
  0x3a   : > { %305 = vst [vmem:[%s2668_s27 + $0x268] sm:$0xff] %v304_v13  ;;  %307 = vst [vmem:[%s2668_s27 + $0x270] sm:$0xff] %v306_v14  ;;  %v314_v18 = vld [vmem:[%s2660_s26 + $0x7b0] sm:$0xff]  ;;  %v316_v19 = vld [vmem:[%s2660_s26 + $0x7b8] sm:$0xff] }
  0x3b   : > { %309 = vst [vmem:[%s2668_s27 + $0x278] sm:$0xff] %v308_v15  ;;  %311 = vst [vmem:[%s2668_s27 + $0x280] sm:$0xff] %v310_v16  ;;  %v318_v20 = vld [vmem:[%s2660_s26 + $0x7e0] sm:$0xff]  ;;  %v320_v21 = vld [vmem:[%s2660_s26 + $0x7e8] sm:$0xff] }
  0x3c   : > { %313 = vst [vmem:[%s2668_s27 + $0x288] sm:$0xff] %v312_v17  ;;  %315 = vst [vmem:[%s2668_s27 + $0x290] sm:$0xff] %v314_v18  ;;  %v322_v22 = vld [vmem:[%s2660_s26 + $0x810] sm:$0xff]  ;;  %v324_v23 = vld [vmem:[%s2660_s26 + $0x818] sm:$0xff] }
  0x3d   : > { %317 = vst [vmem:[%s2668_s27 + $0x298] sm:$0xff] %v316_v19  ;;  %319 = vst [vmem:[%s2668_s27 + $0x2a0] sm:$0xff] %v318_v20  ;;  %v326_v24 = vld [vmem:[%s2660_s26 + $0x840] sm:$0xff]  ;;  %v328_v25 = vld [vmem:[%s2660_s26 + $0x848] sm:$0xff] }
  0x3e   : > { %321 = vst [vmem:[%s2668_s27 + $0x2a8] sm:$0xff] %v320_v21  ;;  %323 = vst [vmem:[%s2668_s27 + $0x2b0] sm:$0xff] %v322_v22  ;;  %v330_v26 = vld [vmem:[%s2660_s26 + $0x870] sm:$0xff]  ;;  %v332_v27 = vld [vmem:[%s2660_s26 + $0x878] sm:$0xff] }
  0x3f   : > { %325 = vst [vmem:[%s2668_s27 + $0x2b8] sm:$0xff] %v324_v23  ;;  %327 = vst [vmem:[%s2668_s27 + $0x2c0] sm:$0xff] %v326_v24  ;;  %v334_v28 = vld [vmem:[%s2660_s26 + $0x8a0] sm:$0xff]  ;;  %v336_v29 = vld [vmem:[%s2660_s26 + $0x8a8] sm:$0xff] }
  0x40   : > { %329 = vst [vmem:[%s2668_s27 + $0x2c8] sm:$0xff] %v328_v25  ;;  %331 = vst [vmem:[%s2668_s27 + $0x2d0] sm:$0xff] %v330_v26  ;;  %v338_v30 = vld [vmem:[%s2660_s26 + $0x8d0] sm:$0xff]  ;;  %v340_v31 = vld [vmem:[%s2660_s26 + $0x8d8] sm:$0xff] }
  0x41   : > { %333 = vst [vmem:[%s2668_s27 + $0x2d8] sm:$0xff] %v332_v27  ;;  %335 = vst [vmem:[%s2668_s27 + $0x2e0] sm:$0xff] %v334_v28  ;;  %v342_v32 = vld [vmem:[%s2660_s26 + $0x900] sm:$0xff]  ;;  %v344_v33 = vld [vmem:[%s2660_s26 + $0x908] sm:$0xff] }
  0x42   : > { %337 = vst [vmem:[%s2668_s27 + $0x2e8] sm:$0xff] %v336_v29  ;;  %339 = vst [vmem:[%s2668_s27 + $0x2f0] sm:$0xff] %v338_v30  ;;  %v346_v34 = vld [vmem:[%s2660_s26 + $0x930] sm:$0xff]  ;;  %v348_v35 = vld [vmem:[%s2660_s26 + $0x938] sm:$0xff] }
  0x43   : > { %341 = vst [vmem:[%s2668_s27 + $0x2f8] sm:$0xff] %v340_v31  ;;  %343 = vst [vmem:[%s2668_s27 + $0x300] sm:$0xff] %v342_v32  ;;  %v350_v36 = vld [vmem:[%s2660_s26 + $0x960] sm:$0xff]  ;;  %v352_v37 = vld [vmem:[%s2660_s26 + $0x968] sm:$0xff] }
  0x44   : > { %345 = vst [vmem:[%s2668_s27 + $0x308] sm:$0xff] %v344_v33  ;;  %347 = vst [vmem:[%s2668_s27 + $0x310] sm:$0xff] %v346_v34  ;;  %v354_v38 = vld [vmem:[%s2660_s26 + $0x990] sm:$0xff]  ;;  %v356_v39 = vld [vmem:[%s2660_s26 + $0x998] sm:$0xff] }
  0x45   : > { %349 = vst [vmem:[%s2668_s27 + $0x318] sm:$0xff] %v348_v35  ;;  %351 = vst [vmem:[%s2668_s27 + $0x320] sm:$0xff] %v350_v36  ;;  %v358_v40 = vld [vmem:[%s2660_s26 + $0x9c0] sm:$0xff]  ;;  %v360_v41 = vld [vmem:[%s2660_s26 + $0x9c8] sm:$0xff] }
  0x46   : > { %353 = vst [vmem:[%s2668_s27 + $0x328] sm:$0xff] %v352_v37  ;;  %355 = vst [vmem:[%s2668_s27 + $0x330] sm:$0xff] %v354_v38  ;;  %v362_v42 = vld [vmem:[%s2660_s26 + $0x9f0] sm:$0xff]  ;;  %v364_v43 = vld [vmem:[%s2660_s26 + $0x9f8] sm:$0xff] }
  0x47   : > { %357 = vst [vmem:[%s2668_s27 + $0x338] sm:$0xff] %v356_v39  ;;  %359 = vst [vmem:[%s2668_s27 + $0x340] sm:$0xff] %v358_v40  ;;  %v366_v44 = vld [vmem:[%s2660_s26 + $0xa20] sm:$0xff]  ;;  %v368_v45 = vld [vmem:[%s2660_s26 + $0xa28] sm:$0xff] }
  0x48   : > { %361 = vst [vmem:[%s2668_s27 + $0x348] sm:$0xff] %v360_v41  ;;  %363 = vst [vmem:[%s2668_s27 + $0x350] sm:$0xff] %v362_v42  ;;  %v370_v46 = vld [vmem:[%s2660_s26 + $0xa50] sm:$0xff]  ;;  %v372_v47 = vld [vmem:[%s2660_s26 + $0xa58] sm:$0xff] }
  0x49   : > { %365 = vst [vmem:[%s2668_s27 + $0x358] sm:$0xff] %v364_v43  ;;  %367 = vst [vmem:[%s2668_s27 + $0x360] sm:$0xff] %v366_v44  ;;  %v374_v48 = vld [vmem:[%s2660_s26 + $0xa80] sm:$0xff]  ;;  %v376_v49 = vld [vmem:[%s2660_s26 + $0xa88] sm:$0xff] }
  0x4a   : > { %369 = vst [vmem:[%s2668_s27 + $0x368] sm:$0xff] %v368_v45  ;;  %371 = vst [vmem:[%s2668_s27 + $0x370] sm:$0xff] %v370_v46  ;;  %v378_v50 = vld [vmem:[%s2660_s26 + $0xab0] sm:$0xff]  ;;  %v380_v51 = vld [vmem:[%s2660_s26 + $0xab8] sm:$0xff] }
  0x4b   : > { %373 = vst [vmem:[%s2668_s27 + $0x378] sm:$0xff] %v372_v47  ;;  %375 = vst [vmem:[%s2668_s27 + $0x380] sm:$0xff] %v374_v48  ;;  %v382_v52 = vld [vmem:[%s2660_s26 + $0xae0] sm:$0xff]  ;;  %v384_v53 = vld [vmem:[%s2660_s26 + $0xae8] sm:$0xff] }
  0x4c   : > { %377 = vst [vmem:[%s2668_s27 + $0x388] sm:$0xff] %v376_v49  ;;  %379 = vst [vmem:[%s2668_s27 + $0x390] sm:$0xff] %v378_v50  ;;  %v386_v54 = vld [vmem:[%s2660_s26 + $0xb10] sm:$0xff]  ;;  %v388_v55 = vld [vmem:[%s2660_s26 + $0xb18] sm:$0xff] }
  0x4d   : > { %381 = vst [vmem:[%s2668_s27 + $0x398] sm:$0xff] %v380_v51  ;;  %383 = vst [vmem:[%s2668_s27 + $0x3a0] sm:$0xff] %v382_v52  ;;  %v390_v56 = vld [vmem:[%s2660_s26 + $0xb40] sm:$0xff]  ;;  %v392_v57 = vld [vmem:[%s2660_s26 + $0xb48] sm:$0xff] }
  0x4e   : > { %385 = vst [vmem:[%s2668_s27 + $0x3a8] sm:$0xff] %v384_v53  ;;  %387 = vst [vmem:[%s2668_s27 + $0x3b0] sm:$0xff] %v386_v54  ;;  %v394_v58 = vld [vmem:[%s2660_s26 + $0xb70] sm:$0xff]  ;;  %v396_v59 = vld [vmem:[%s2660_s26 + $0xb78] sm:$0xff] }
  0x4f   : > { %389 = vst [vmem:[%s2668_s27 + $0x3b8] sm:$0xff] %v388_v55  ;;  %391 = vst [vmem:[%s2668_s27 + $0x3c0] sm:$0xff] %v390_v56  ;;  %v398_v60 = vld [vmem:[%s2660_s26 + $0xba0] sm:$0xff]  ;;  %v400_v61 = vld [vmem:[%s2660_s26 + $0xba8] sm:$0xff] }
  0x50   : > { %393 = vst [vmem:[%s2668_s27 + $0x3c8] sm:$0xff] %v392_v57  ;;  %395 = vst [vmem:[%s2668_s27 + $0x3d0] sm:$0xff] %v394_v58  ;;  %v402_v62 = vld [vmem:[%s2660_s26 + $0xbd0] sm:$0xff]  ;;  %v404_v63 = vld [vmem:[%s2660_s26 + $0xbd8] sm:$0xff] }
  0x51   : > { %397 = vst [vmem:[%s2668_s27 + $0x3d8] sm:$0xff] %v396_v59  ;;  %399 = vst [vmem:[%s2668_s27 + $0x3e0] sm:$0xff] %v398_v60  ;;  %v406_v0 = vld [vmem:[%s2660_s26 + $0xc00] sm:$0xff]  ;;  %v408_v1 = vld [vmem:[%s2660_s26 + $0xc08] sm:$0xff] }
  0x52   : > { %401 = vst [vmem:[%s2668_s27 + $0x3e8] sm:$0xff] %v400_v61  ;;  %403 = vst [vmem:[%s2668_s27 + $0x3f0] sm:$0xff] %v402_v62  ;;  %v410_v2 = vld [vmem:[%s2660_s26 + $0xc30] sm:$0xff]  ;;  %v412_v3 = vld [vmem:[%s2660_s26 + $0xc38] sm:$0xff] }
  0x53   : > { %405 = vst [vmem:[%s2668_s27 + $0x3f8] sm:$0xff] %v404_v63  ;;  %407 = vst [vmem:[%s2668_s27 + $0x400] sm:$0xff] %v406_v0  ;;  %v414_v4 = vld [vmem:[%s2660_s26 + $0xc60] sm:$0xff]  ;;  %v416_v5 = vld [vmem:[%s2660_s26 + $0xc68] sm:$0xff] }
  0x54   : > { %409 = vst [vmem:[%s2668_s27 + $0x408] sm:$0xff] %v408_v1  ;;  %411 = vst [vmem:[%s2668_s27 + $0x410] sm:$0xff] %v410_v2  ;;  %v418_v6 = vld [vmem:[%s2660_s26 + $0xc90] sm:$0xff]  ;;  %v420_v7 = vld [vmem:[%s2660_s26 + $0xc98] sm:$0xff] }
  0x55   : > { %413 = vst [vmem:[%s2668_s27 + $0x418] sm:$0xff] %v412_v3  ;;  %415 = vst [vmem:[%s2668_s27 + $0x420] sm:$0xff] %v414_v4  ;;  %v422_v8 = vld [vmem:[%s2660_s26 + $0xcc0] sm:$0xff]  ;;  %v424_v9 = vld [vmem:[%s2660_s26 + $0xcc8] sm:$0xff] }
  0x56   : > { %417 = vst [vmem:[%s2668_s27 + $0x428] sm:$0xff] %v416_v5  ;;  %419 = vst [vmem:[%s2668_s27 + $0x430] sm:$0xff] %v418_v6  ;;  %v426_v10 = vld [vmem:[%s2660_s26 + $0xcf0] sm:$0xff]  ;;  %v428_v11 = vld [vmem:[%s2660_s26 + $0xcf8] sm:$0xff] }
  0x57   : > { %421 = vst [vmem:[%s2668_s27 + $0x438] sm:$0xff] %v420_v7  ;;  %423 = vst [vmem:[%s2668_s27 + $0x440] sm:$0xff] %v422_v8  ;;  %v430_v12 = vld [vmem:[%s2660_s26 + $0xd20] sm:$0xff]  ;;  %v432_v13 = vld [vmem:[%s2660_s26 + $0xd28] sm:$0xff] }
  0x58   : > { %425 = vst [vmem:[%s2668_s27 + $0x448] sm:$0xff] %v424_v9  ;;  %427 = vst [vmem:[%s2668_s27 + $0x450] sm:$0xff] %v426_v10  ;;  %v434_v14 = vld [vmem:[%s2660_s26 + $0xd50] sm:$0xff]  ;;  %v436_v15 = vld [vmem:[%s2660_s26 + $0xd58] sm:$0xff] }
  0x59   : > { %429 = vst [vmem:[%s2668_s27 + $0x458] sm:$0xff] %v428_v11  ;;  %431 = vst [vmem:[%s2668_s27 + $0x460] sm:$0xff] %v430_v12  ;;  %v438_v16 = vld [vmem:[%s2660_s26 + $0xd80] sm:$0xff]  ;;  %v440_v17 = vld [vmem:[%s2660_s26 + $0xd88] sm:$0xff] }
  0x5a   : > { %433 = vst [vmem:[%s2668_s27 + $0x468] sm:$0xff] %v432_v13  ;;  %435 = vst [vmem:[%s2668_s27 + $0x470] sm:$0xff] %v434_v14  ;;  %v442_v18 = vld [vmem:[%s2660_s26 + $0xdb0] sm:$0xff]  ;;  %v444_v19 = vld [vmem:[%s2660_s26 + $0xdb8] sm:$0xff] }
  0x5b   : > { %437 = vst [vmem:[%s2668_s27 + $0x478] sm:$0xff] %v436_v15  ;;  %439 = vst [vmem:[%s2668_s27 + $0x480] sm:$0xff] %v438_v16  ;;  %v446_v20 = vld [vmem:[%s2660_s26 + $0xde0] sm:$0xff]  ;;  %v448_v21 = vld [vmem:[%s2660_s26 + $0xde8] sm:$0xff] }
  0x5c   : > { %441 = vst [vmem:[%s2668_s27 + $0x488] sm:$0xff] %v440_v17  ;;  %443 = vst [vmem:[%s2668_s27 + $0x490] sm:$0xff] %v442_v18 }
  0x5d   : > { %445 = vst [vmem:[%s2668_s27 + $0x498] sm:$0xff] %v444_v19  ;;  %447 = vst [vmem:[%s2668_s27 + $0x4a0] sm:$0xff] %v446_v20 }
  0x5e   : > { %449 = vst [vmem:[%s2668_s27 + $0x4a8] sm:$0xff] %v448_v21 }
  0x5f PF: > { %p2065_p7 = scmp.ge.s32.totalorder %s2597_s14, 1  ;;  %p454_p8 = scmp.lt.s32.totalorder %s2597_s14, 4 }
  0x61   : > { %p455_p9 = pnand %p2065_p7, %p454_p8 }
  0x62   : > { %s461_s28 = sand.u32 (!%p455_p9), 1, %s2589_s12  }
  0x63   : > { %458 = sbr.rel (%p455_p9) target bundleno = 502 (0x1f6), region = 51 }
  0x64   : > { %s2275_s29 = smul.u32 (!%p455_p9), 1200, %s461_s28 }
  0x66   : > { %s2982_s7 = scalar_lea.vmem (!%p455_p9), [#allocation2], %s2275_s29 }
  0x68   : > { %v2972_v22 = vld [vmem:[%s3298_s0 + $0x4] ss:$20 sps:$4 sm:$0xff]   ;;  %v2977_v23 = vld [vmem:[%s3298_s0 + $0xc] ss:$20 sps:$4 sm:$0xff]   ;;  %v2599_v24 = vmov 0   ;;  %vm1479_vm0 = vcmask 1043456  }
  0x69   : > { %2301 = vset.pattern.permute.xlu0 %v2599_v24  ;;  %2302 = vset.pattern.permute.xlu1 %v2599_v24  ;;  %v2303_v25 = vld [vmem:[%s2982_s7 + $0xe4] ss:$16 sps:$4 sm:$0xff]   ;;  %v2307_v27 = vld [vmem:[%s2982_s7 + $0xe0] ss:$16 sps:$4 sm:$0xff]   ;;  %vm1472_vm1 = vcmask 719872   ;;  %s2273_s12 = sshll.u32 (%p2650_p5), %s2059_s15, 4 }
  0x6a   : > { %1524 = vmatprep.mubr.bf16.mxu0 %v2972_v22  ;;  %1577 = vmatprep.mubr.bf16.mxu1 %v2977_v23  ;;  %v2305_v26 = vld [vmem:[%s2982_s7 + $0x2e4] ss:$16 sps:$4 sm:$0xff]   ;;  %v2308_v28 = vld [vmem:[%s2982_s7 + $0x2e0] ss:$16 sps:$4 sm:$0xff]   ;;  %s1971_s23 = scalar_lea.vmem (%p2650_p5), %s3301_s3, %s2273_s12 }
  0x6b   : > { %1492 = vmatprep.subr.bf16.mxu0 %v2303_v25  ;;  %1545 = vmatprep.subr.bf16.mxu1 %v2305_v26  ;;  %v2309_v29 = vld [vmem:[%s2982_s7 + $0xc4] ss:$16 sps:$4 sm:$0xff]   ;;  %v2313_v31 = vld [vmem:[%s2982_s7 + $0xc0] ss:$16 sps:$4 sm:$0xff]  }
  0x6c   : > { %1493 = vmatpush1.bf16.msra.mxu0 %v2307_v27  ;;  %1546 = vmatpush1.bf16.msra.mxu1 %v2308_v28  ;;  %v2311_v30 = vld [vmem:[%s2982_s7 + $0x2c4] ss:$16 sps:$4 sm:$0xff]   ;;  %v2314_v32 = vld [vmem:[%s2982_s7 + $0x2c0] ss:$16 sps:$4 sm:$0xff]  }
  0x6d   : > { %1494 = vmatprep.subr.bf16.mxu0 %v2309_v29  ;;  %1547 = vmatprep.subr.bf16.mxu1 %v2311_v30  ;;  %v2315_v33 = vld [vmem:[%s2982_s7 + $0xa4] ss:$16 sps:$4 sm:$0xff]   ;;  %v2319_v35 = vld [vmem:[%s2982_s7 + $0xa0] ss:$16 sps:$4 sm:$0xff]  }
  0x6e   : > { %v2317_v34 = vld [vmem:[%s2982_s7 + $0x2a4] ss:$16 sps:$4 sm:$0xff]   ;;  %v2320_v36 = vld [vmem:[%s2982_s7 + $0x2a0] ss:$16 sps:$4 sm:$0xff]  }
  0x6f   : > { %v2321_v37 = vld [vmem:[%s2982_s7 + $0x84] ss:$16 sps:$4 sm:$0xff]   ;;  %v2325_v39 = vld [vmem:[%s2982_s7 + $0x80] ss:$16 sps:$4 sm:$0xff]  }
  0x70   : > { %1495 = vmatpush1.bf16.msra.mxu0 %v2313_v31  ;;  %1548 = vmatpush1.bf16.msra.mxu1 %v2314_v32  ;;  %v2323_v38 = vld [vmem:[%s2982_s7 + $0x284] ss:$16 sps:$4 sm:$0xff]   ;;  %v2326_v40 = vld [vmem:[%s2982_s7 + $0x280] ss:$16 sps:$4 sm:$0xff]   ;;  %v2408_v31 = vld [vmem:[%s2982_s7 + $0xec] ss:$16 sps:$4 sm:$0xff]  }
  0x71   : > { %1496 = vmatprep.subr.bf16.mxu0 %v2315_v33  ;;  %1549 = vmatprep.subr.bf16.mxu1 %v2317_v34  ;;  %v2327_v41 = vld [vmem:[%s2982_s7 + $0x64] ss:$16 sps:$4 sm:$0xff]   ;;  %v2331_v43 = vld [vmem:[%s2982_s7 + $0x60] ss:$16 sps:$4 sm:$0xff]   ;;  %v3059_v33 = vld [vmem:[%s3298_s0 + $0x8] ss:$20 sps:$4 sm:$0xff]  }
  0x72   : > { %v2329_v42 = vld [vmem:[%s2982_s7 + $0x264] ss:$16 sps:$4 sm:$0xff]   ;;  %v2332_v44 = vld [vmem:[%s2982_s7 + $0x260] ss:$16 sps:$4 sm:$0xff]   ;;  %v2406_v34 = vld [vmem:[%s2982_s7 + $0xe8] ss:$16 sps:$4 sm:$0xff]  }
  0x73   : > { %v2333_v45 = vld [vmem:[%s2982_s7 + $0x44] ss:$16 sps:$4 sm:$0xff]   ;;  %v2337_v47 = vld [vmem:[%s2982_s7 + $0x40] ss:$16 sps:$4 sm:$0xff]  }
  0x74   : > { %1497 = vmatpush1.bf16.msra.mxu0 %v2319_v35  ;;  %1550 = vmatpush1.bf16.msra.mxu1 %v2320_v36  ;;  %v2335_v46 = vld [vmem:[%s2982_s7 + $0x244] ss:$16 sps:$4 sm:$0xff]   ;;  %v2338_v48 = vld [vmem:[%s2982_s7 + $0x240] ss:$16 sps:$4 sm:$0xff]  }
  0x75   : > { %1498 = vmatprep.subr.bf16.mxu0 %v2321_v37  ;;  %1551 = vmatprep.subr.bf16.mxu1 %v2323_v38  ;;  %v2339_v49 = vld [vmem:[%s2982_s7 + $0x24] ss:$16 sps:$4 sm:$0xff]   ;;  %v2343_v51 = vld [vmem:[%s2982_s7 + $0x20] ss:$16 sps:$4 sm:$0xff]   ;;  %v2415_v38 = vld [vmem:[%s2982_s7 + $0xcc] ss:$16 sps:$4 sm:$0xff]  }
  0x76   : > { %v2341_v50 = vld [vmem:[%s2982_s7 + $0x224] ss:$16 sps:$4 sm:$0xff]   ;;  %v2344_v52 = vld [vmem:[%s2982_s7 + $0x220] ss:$16 sps:$4 sm:$0xff]  }
  0x77   : > { %v2345_v53 = vld [vmem:[%s2982_s7 + $0x4] ss:$16 sps:$4 sm:$0xff]   ;;  %v2349_v55 = vld [vmem:[%s2982_s7] ss:$16 sps:$4 sm:$0xff]  }
  0x78   : > { %1499 = vmatpush1.bf16.msra.mxu0 %v2325_v39  ;;  %1552 = vmatpush1.bf16.msra.mxu1 %v2326_v40  ;;  %v2347_v54 = vld [vmem:[%s2982_s7 + $0x204] ss:$16 sps:$4 sm:$0xff]   ;;  %v2350_v56 = vld [vmem:[%s2982_s7 + $0x200] ss:$16 sps:$4 sm:$0xff]  }
  0x79   : > { %1500 = vmatprep.subr.bf16.mxu0 %v2327_v41  ;;  %1553 = vmatprep.subr.bf16.mxu1 %v2329_v42  ;;  %v2351_v57 = vld [vmem:[%s2982_s7 + $0x1e4] ss:$16 sps:$4 sm:$0xff]   ;;  %v2355_v59 = vld [vmem:[%s2982_s7 + $0x1e0] ss:$16 sps:$4 sm:$0xff]   ;;  %v2413_v41 = vld [vmem:[%s2982_s7 + $0xc8] ss:$16 sps:$4 sm:$0xff]  }
  0x7a   : > { %v2353_v58 = vld [vmem:[%s2982_s7 + $0x3e4] ss:$16 sps:$4 sm:$0xff]   ;;  %v2356_v60 = vld [vmem:[%s2982_s7 + $0x3e0] ss:$16 sps:$4 sm:$0xff]  }
  0x7b   : > { %v2357_v61 = vld [vmem:[%s2982_s7 + $0x1c4] ss:$16 sps:$4 sm:$0xff]   ;;  %v2361_v63 = vld [vmem:[%s2982_s7 + $0x1c0] ss:$16 sps:$4 sm:$0xff]  }
  0x7c   : > { %1501 = vmatpush1.bf16.msra.mxu0 %v2331_v43  ;;  %1554 = vmatpush1.bf16.msra.mxu1 %v2332_v44  ;;  %v2359_v62 = vld [vmem:[%s2982_s7 + $0x3c4] ss:$16 sps:$4 sm:$0xff]   ;;  %v2362_v0 = vld [vmem:[%s2982_s7 + $0x3c0] ss:$16 sps:$4 sm:$0xff]   ;;  %v2421_v43 = vld [vmem:[%s2982_s7 + $0xac] ss:$16 sps:$4 sm:$0xff]  }
  0x7d   : > { %1502 = vmatprep.subr.bf16.mxu0 %v2333_v45  ;;  %1555 = vmatprep.subr.bf16.mxu1 %v2335_v46  ;;  %v2363_v1 = vld [vmem:[%s2982_s7 + $0x1a4] ss:$16 sps:$4 sm:$0xff]   ;;  %v2367_v3 = vld [vmem:[%s2982_s7 + $0x1a0] ss:$16 sps:$4 sm:$0xff]   ;;  %v3086_v44 = vld [vmem:[%s3298_s0 + $0x28] ss:$20 sps:$4 sm:$0xff]  }
  0x7e   : > { %v2365_v2 = vld [vmem:[%s2982_s7 + $0x3a4] ss:$16 sps:$4 sm:$0xff]   ;;  %v2368_v4 = vld [vmem:[%s2982_s7 + $0x3a0] ss:$16 sps:$4 sm:$0xff]  }
  0x7f   : > { %v2369_v5 = vld [vmem:[%s2982_s7 + $0x184] ss:$16 sps:$4 sm:$0xff]   ;;  %v2373_v7 = vld [vmem:[%s2982_s7 + $0x180] ss:$16 sps:$4 sm:$0xff]  }
  0x80   : > { %1503 = vmatpush1.bf16.msra.mxu0 %v2337_v47  ;;  %1556 = vmatpush1.bf16.msra.mxu1 %v2338_v48  ;;  %v2371_v6 = vld [vmem:[%s2982_s7 + $0x384] ss:$16 sps:$4 sm:$0xff]   ;;  %v2374_v8 = vld [vmem:[%s2982_s7 + $0x380] ss:$16 sps:$4 sm:$0xff]   ;;  %v2419_v47 = vld [vmem:[%s2982_s7 + $0xa8] ss:$16 sps:$4 sm:$0xff]  }
  0x81   : > { %1504 = vmatprep.subr.bf16.mxu0 %v2339_v49  ;;  %1557 = vmatprep.subr.bf16.mxu1 %v2341_v50  ;;  %v2375_v9 = vld [vmem:[%s2982_s7 + $0x164] ss:$16 sps:$4 sm:$0xff]   ;;  %v2379_v11 = vld [vmem:[%s2982_s7 + $0x160] ss:$16 sps:$4 sm:$0xff]   ;;  %v2432_v49 = vld [vmem:[%s2982_s7 + $0x8c] ss:$16 sps:$4 sm:$0xff]  }
  0x82   : > { %v2377_v10 = vld [vmem:[%s2982_s7 + $0x364] ss:$16 sps:$4 sm:$0xff]   ;;  %v2380_v12 = vld [vmem:[%s2982_s7 + $0x360] ss:$16 sps:$4 sm:$0xff]  }
  0x83   : > { %v2381_v13 = vld [vmem:[%s2982_s7 + $0x144] ss:$16 sps:$4 sm:$0xff]   ;;  %v2385_v15 = vld [vmem:[%s2982_s7 + $0x140] ss:$16 sps:$4 sm:$0xff]  }
  0x84   : > { %1505 = vmatpush1.bf16.msra.mxu0 %v2343_v51  ;;  %1558 = vmatpush1.bf16.msra.mxu1 %v2344_v52  ;;  %v2383_v14 = vld [vmem:[%s2982_s7 + $0x344] ss:$16 sps:$4 sm:$0xff]   ;;  %v2386_v16 = vld [vmem:[%s2982_s7 + $0x340] ss:$16 sps:$4 sm:$0xff]   ;;  %v2430_v51 = vld [vmem:[%s2982_s7 + $0x88] ss:$16 sps:$4 sm:$0xff]  }
  0x85   : > { %1506 = vmatprep.subr.bf16.mxu0 %v2345_v53  ;;  %1559 = vmatprep.subr.bf16.mxu1 %v2347_v54  ;;  %v2387_v17 = vld [vmem:[%s2982_s7 + $0x124] ss:$16 sps:$4 sm:$0xff]   ;;  %v2391_v19 = vld [vmem:[%s2982_s7 + $0x120] ss:$16 sps:$4 sm:$0xff]   ;;  %v2439_v53 = vld [vmem:[%s2982_s7 + $0x6c] ss:$16 sps:$4 sm:$0xff]  }
  0x86   : > { %v2389_v18 = vld [vmem:[%s2982_s7 + $0x324] ss:$16 sps:$4 sm:$0xff]   ;;  %v2392_v20 = vld [vmem:[%s2982_s7 + $0x320] ss:$16 sps:$4 sm:$0xff]  }
  0x87   : > { %v2393_v21 = vld [vmem:[%s2982_s7 + $0x104] ss:$16 sps:$4 sm:$0xff]   ;;  %v2397_v27 = vld [vmem:[%s2982_s7 + $0x100] ss:$16 sps:$4 sm:$0xff]  }
  0x88   : > { %1507 = vmatpush1.bf16.msra.mxu0 %v2349_v55  ;;  %1560 = vmatpush1.bf16.msra.mxu1 %v2350_v56  ;;  %v2395_v25 = vld [vmem:[%s2982_s7 + $0x304] ss:$16 sps:$4 sm:$0xff]   ;;  %v2398_v28 = vld [vmem:[%s2982_s7 + $0x300] ss:$16 sps:$4 sm:$0xff]   ;;  %v2437_v55 = vld [vmem:[%s2982_s7 + $0x68] ss:$16 sps:$4 sm:$0xff]  }
  0x89   : > { %1508 = vmatprep.subr.bf16.mxu0 %v2351_v57  ;;  %1561 = vmatprep.subr.bf16.mxu1 %v2353_v58  ;;  %v646_v26 = vld [vmem:[%s2982_s7 + $0x4a0] sm:$0xff]  ;;  %v2445_v57 = vld [vmem:[%s2982_s7 + $0x4c] ss:$16 sps:$4 sm:$0xff]  }
  0x8a   : > { %v2225_v29 = vcombine.low %v646_v26, %v646_v26  ;;  %v2226_v30 = vcombine.high %v646_v26, %v646_v26  ;;  %v3054_v32 = vld [vmem:[%s3298_s0] ss:$20 sps:$4 sm:$0xff]   ;;  %v3093_v46 = vld [vmem:[%s3298_s0 + $0x30] ss:$20 sps:$4 sm:$0xff]   ;;  %v2481_v26 = vld [vmem:[%s2982_s7 + $0x248] ss:$16 sps:$4 sm:$0xff]  }
  0x8b   : > { %v2412_v36 = vld [vmem:[%s2982_s7 + $0x484] ss:$16 sps:$4 sm:$0xff]   ;;  %v3067_v37 = vld [vmem:[%s3298_s0 + $0x2c] ss:$20 sps:$4 sm:$0xff]  }
  0x8c   : > { %1509 = vmatpush2.bf16.msra.mxu0 %v2355_v59  ;;  %1562 = vmatpush2.bf16.msra.mxu1 %v2356_v60  ;;  %v1481_v35 = vsel %vm1479_vm0, %v2225_v29, 0  ;;  %v3074_v39 = vld [vmem:[%s3298_s0 + $0x34] ss:$20 sps:$4 sm:$0xff]   ;;  %v2410_v40 = vld [vmem:[%s2982_s7 + $0x480] ss:$16 sps:$4 sm:$0xff]  }
  0x8d   : > { %1510 = vmatprep.subr.bf16.mxu0 %v2357_v61  ;;  %1563 = vmatprep.subr.bf16.mxu1 %v2359_v62  ;;  %v2418_v42 = vld [vmem:[%s2982_s7 + $0x464] ss:$16 sps:$4 sm:$0xff]   ;;  %v2416_v45 = vld [vmem:[%s2982_s7 + $0x460] ss:$16 sps:$4 sm:$0xff]   ;;  %v2443_v59 = vld [vmem:[%s2982_s7 + $0x48] ss:$16 sps:$4 sm:$0xff]  }
  0x8e   : > { %v2429_v48 = vld [vmem:[%s2982_s7 + $0x444] ss:$16 sps:$4 sm:$0xff]   ;;  %v2427_v50 = vld [vmem:[%s2982_s7 + $0x440] ss:$16 sps:$4 sm:$0xff]   ;;  %v2449_v60 = vld [vmem:[%s2982_s7 + $0x2c] ss:$16 sps:$4 sm:$0xff]  }
  0x8f   : > { %v2436_v52 = vld [vmem:[%s2982_s7 + $0x424] ss:$16 sps:$4 sm:$0xff]   ;;  %v2434_v54 = vld [vmem:[%s2982_s7 + $0x420] ss:$16 sps:$4 sm:$0xff]   ;;  %v2447_v62 = vld [vmem:[%s2982_s7 + $0x28] ss:$16 sps:$4 sm:$0xff]  }
  0x90   : > { %1511 = vmatpush2.bf16.msra.mxu0 %v2361_v63  ;;  %1564 = vmatpush2.bf16.msra.mxu1 %v2362_v0  ;;  %v2442_v56 = vld [vmem:[%s2982_s7 + $0x404] ss:$16 sps:$4 sm:$0xff]   ;;  %v2440_v58 = vld [vmem:[%s2982_s7 + $0x400] ss:$16 sps:$4 sm:$0xff]   ;;  %v2450_v63 = vld [vmem:[%s2982_s7 + $0x2e8] ss:$16 sps:$4 sm:$0xff]  }
  0x91   : > { %1512 = vmatprep.subr.bf16.mxu0 %v2363_v1  ;;  %1565 = vmatprep.subr.bf16.mxu1 %v2365_v2  ;;  %v3117_v61 = vld [vmem:[%s3298_s0 + $0x10] ss:$20 sps:$4 sm:$0xff]   ;;  %v2455_v0 = vld [vmem:[%s2982_s7 + $0xc] ss:$16 sps:$4 sm:$0xff]   ;;  %v2453_v2 = vld [vmem:[%s2982_s7 + $0x8] ss:$16 sps:$4 sm:$0xff]  }
  0x92   : > { %v2458_v1 = vld [vmem:[%s2982_s7 + $0x2cc] ss:$16 sps:$4 sm:$0xff]   ;;  %v2484_v29 = vld [vmem:[%s2982_s7 + $0x168] ss:$16 sps:$4 sm:$0xff]  }
  0x94   : > { %1513 = vmatpush2.bf16.msra.mxu0 %v2367_v3  ;;  %1566 = vmatpush2.bf16.msra.mxu1 %v2368_v4  ;;  %v2456_v3 = vld [vmem:[%s2982_s7 + $0x2c8] ss:$16 sps:$4 sm:$0xff]   ;;  %v648_v4 = vld [vmem:[%s3299_s1] sm:$0xff] }
  0x95   : > { %1514 = vmatprep.subr.bf16.mxu0 %v2369_v5  ;;  %1567 = vmatprep.subr.bf16.mxu1 %v2371_v6  ;;  %v2462_v5 = vld [vmem:[%s2982_s7 + $0x1ec] ss:$16 sps:$4 sm:$0xff]  }
  0x96   : > { %v2465_v6 = vld [vmem:[%s2982_s7 + $0x2ac] ss:$16 sps:$4 sm:$0xff]   ;;  %654 = vperm.xlu0 %2301, %v648_v4   ;;  %v2534_v4 = vld [vmem:[%s2982_s7 + $0x428] ss:$16 sps:$4 sm:$0xff]  }
  0x98   : > { %1515 = vmatpush2.bf16.msra.mxu0 %v2373_v7  ;;  %1568 = vmatpush2.bf16.msra.mxu1 %v2374_v8  ;;  %v3136_v7 = vld [vmem:[%s3298_s0 + $0x38] ss:$20 sps:$4 sm:$0xff]  }
  0x99   : > { %1516 = vmatprep.subr.bf16.mxu0 %v2375_v9  ;;  %1569 = vmatprep.subr.bf16.mxu1 %v2377_v10  ;;  %v649_v8 = vld [vmem:[%s3299_s1 + $0x8] sm:$0xff] }
  0x9a   : > { %v2460_v9 = vld [vmem:[%s2982_s7 + $0x1e8] ss:$16 sps:$4 sm:$0xff]   ;;  %659 = vperm.xlu0 %2301, %v649_v8  }
  0x9b   : > { %v2463_v10 = vld [vmem:[%s2982_s7 + $0x2a8] ss:$16 sps:$4 sm:$0xff]  }
  0x9c   : > { %1517 = vmatpush2.bf16.msra.mxu0 %v2379_v11  ;;  %1570 = vmatpush2.bf16.msra.mxu1 %v2380_v12  ;;  %v2468_v11 = vld [vmem:[%s2982_s7 + $0x1cc] ss:$16 sps:$4 sm:$0xff]   ;;  %v2540_v8 = vld [vmem:[%s2982_s7 + $0x408] ss:$16 sps:$4 sm:$0xff]  }
  0x9d   : > { %1518 = vmatprep.subr.bf16.mxu0 %v2381_v13  ;;  %1571 = vmatprep.subr.bf16.mxu1 %v2383_v14  ;;  %v2471_v12 = vld [vmem:[%s2982_s7 + $0x28c] ss:$16 sps:$4 sm:$0xff]   ;;  %v2466_v13 = vld [vmem:[%s2982_s7 + $0x1c8] ss:$16 sps:$4 sm:$0xff]  }
  0x9e   : > { %v2469_v14 = vld [vmem:[%s2982_s7 + $0x288] ss:$16 sps:$4 sm:$0xff]  }
  0xa0   : > { %1519 = vmatpush2.bf16.msra.mxu0 %v2385_v15  ;;  %1572 = vmatpush2.bf16.msra.mxu1 %v2386_v16  ;;  %v2474_v15 = vld [vmem:[%s2982_s7 + $0x1ac] ss:$16 sps:$4 sm:$0xff]   ;;  %v650_v16 = vld [vmem:[%s3299_s1 + $0x10] sm:$0xff] }
  0xa1   : > { %1520 = vmatprep.subr.bf16.mxu0 %v2387_v17  ;;  %1573 = vmatprep.subr.bf16.mxu1 %v2389_v18  ;;  %v2477_v17 = vld [vmem:[%s2982_s7 + $0x26c] ss:$16 sps:$4 sm:$0xff]  }
  0xa2   : > { %664 = vperm.xlu1 %2302, %v650_v16   ;;  %v651_v18 = vld [vmem:[%s3299_s1 + $0x18] sm:$0xff] }
  0xa4   : > { %1521 = vmatpush2.bf16.msra.mxu0 %v2391_v19  ;;  %1574 = vmatpush2.bf16.msra.mxu1 %v2392_v20  ;;  %v2472_v19 = vld [vmem:[%s2982_s7 + $0x1a8] ss:$16 sps:$4 sm:$0xff]  }
  0xa5   : > { %1522 = vmatprep.subr.bf16.mxu0 %v2393_v21  ;;  %1575 = vmatprep.subr.bf16.mxu1 %v2395_v25  ;;  %v2475_v20 = vld [vmem:[%s2982_s7 + $0x268] ss:$16 sps:$4 sm:$0xff]   ;;  %v2480_v21 = vld [vmem:[%s2982_s7 + $0x18c] ss:$16 sps:$4 sm:$0xff]  }
  0xa6   : > { %v2483_v25 = vld [vmem:[%s2982_s7 + $0x24c] ss:$16 sps:$4 sm:$0xff]   ;;  %669 = vperm.xlu1 %2302, %v651_v18  }
  0xa8   : > { %1523 = vmatpush2.bf16.msra.mxu0 %v2397_v27  ;;  %1576 = vmatpush2.bf16.msra.mxu1 %v2398_v28  ;;  %v2486_v27 = vld [vmem:[%s2982_s7 + $0x16c] ss:$16 sps:$4 sm:$0xff]  }
  0xa9   : > { %2229 = vmatprep.subr.msk.bf16.mxu0 %vm1479_vm0, %v2226_v30  ;;  %1651 = vmatprep.subr.bf16.mxu1 %v2408_v31  ;;  %v2489_v28 = vld [vmem:[%s2982_s7 + $0x22c] ss:$16 sps:$4 sm:$0xff]   ;;  %v2487_v30 = vld [vmem:[%s2982_s7 + $0x228] ss:$16 sps:$4 sm:$0xff]  }
  0xaa   : > { %v2492_v31 = vld [vmem:[%s2982_s7 + $0x14c] ss:$16 sps:$4 sm:$0xff]  }
  0xab   : > { %1525 = vmatmul.mubr.bf16.vlgmr.msra.gmra.mxu0 %v3054_v32  ;;  %1578 = vmatmul.mubr.bf16.vlgmr.msra.gmra.mxu1 %v3059_v33 }
  0xac   : > { %1603 = vmatpush1.bf16.msra.mxu0 %v1481_v35  ;;  %1652 = vmatpush1.bf16.msra.mxu1 %v2406_v34  ;;  %v2495_v34 = vld [vmem:[%s2982_s7 + $0x20c] ss:$16 sps:$4 sm:$0xff]   ;;  %v2490_v35 = vld [vmem:[%s2982_s7 + $0x148] ss:$16 sps:$4 sm:$0xff]  }
  0xad   : > { %1604 = vmatprep.subr.bf16.mxu0 %v2412_v36  ;;  %1653 = vmatprep.subr.bf16.mxu1 %v2415_v38  ;;  %v2493_v36 = vld [vmem:[%s2982_s7 + $0x208] ss:$16 sps:$4 sm:$0xff]   ;;  %v2498_v38 = vld [vmem:[%s2982_s7 + $0x12c] ss:$16 sps:$4 sm:$0xff]  }
  0xae   : > { %1534 = vmatprep.mubr.bf16.mxu0 %v3067_v37  ;;  %1587 = vmatprep.mubr.bf16.mxu1 %v3074_v39 }
  0xb0   : > { %1605 = vmatpush1.bf16.msra.mxu0 %v2410_v40  ;;  %1654 = vmatpush1.bf16.msra.mxu1 %v2413_v41  ;;  %v2501_v40 = vld [vmem:[%s2982_s7 + $0x3ec] ss:$16 sps:$4 sm:$0xff]   ;;  %v2496_v41 = vld [vmem:[%s2982_s7 + $0x128] ss:$16 sps:$4 sm:$0xff]  }
  0xb1   : > { %1606 = vmatprep.subr.bf16.mxu0 %v2418_v42  ;;  %1655 = vmatprep.subr.bf16.mxu1 %v2421_v43  ;;  %v2499_v42 = vld [vmem:[%s2982_s7 + $0x3e8] ss:$16 sps:$4 sm:$0xff]   ;;  %v2504_v43 = vld [vmem:[%s2982_s7 + $0x10c] ss:$16 sps:$4 sm:$0xff]  }
  0xb3   : > { %1535 = vmatmul.mubr.bf16.gmra.mxu0 %v3086_v44  ;;  %1588 = vmatmul.mubr.bf16.gmra.mxu1 %v3093_v46 }
  0xb4   : > { %1607 = vmatpush1.bf16.msra.mxu0 %v2416_v45  ;;  %1656 = vmatpush1.bf16.msra.mxu1 %v2419_v47  ;;  %v2507_v45 = vld [vmem:[%s2982_s7 + $0x3cc] ss:$16 sps:$4 sm:$0xff]  }
  0xb5   : > { %1608 = vmatprep.subr.bf16.mxu0 %v2429_v48  ;;  %1657 = vmatprep.subr.bf16.mxu1 %v2432_v49  ;;  %v647_v47 = vld [vmem:[%s2982_s7 + $0x4a8] sm:$0xff] }
  0xb6   : > { %1630 = vmatprep.mubr.bf16.mxu0 %v2599_v24  ;;  %1683 = vmatprep.mubr.bf16.mxu1 %v2972_v22  ;;  %v2452_v22 = vld [vmem:[%s2982_s7 + $0x2ec] ss:$16 sps:$4 sm:$0xff]   ;;  %v2502_v48 = vld [vmem:[%s2982_s7 + $0x108] ss:$16 sps:$4 sm:$0xff]  }
  0xb7   : > { %v2505_v49 = vld [vmem:[%s2982_s7 + $0x3c8] ss:$16 sps:$4 sm:$0xff]  }
  0xb8   : > { %1609 = vmatpush1.bf16.msra.mxu0 %v2427_v50  ;;  %1658 = vmatpush1.bf16.msra.mxu1 %v2430_v51  ;;  %v2510_v50 = vld [vmem:[%s2982_s7 + $0x3ac] ss:$16 sps:$4 sm:$0xff]   ;;  %v2228_v51 = vcombine.high %v647_v47, %v647_v47 }
  0xb9   : > { %1610 = vmatprep.subr.bf16.mxu0 %v2436_v52  ;;  %1659 = vmatprep.subr.bf16.mxu1 %v2439_v53  ;;  %v2227_v52 = vcombine.low %v647_v47, %v647_v47  ;;  %v2508_v53 = vld [vmem:[%s2982_s7 + $0x3a8] ss:$16 sps:$4 sm:$0xff]  }
  0xbc   : > { %1611 = vmatpush1.bf16.msra.mxu0 %v2434_v54  ;;  %1660 = vmatpush1.bf16.msra.mxu1 %v2437_v55  ;;  %v1487_v54 = vsel %vm1479_vm0, %v2227_v52, 0  ;;  %v2515_v55 = vld [vmem:[%s2982_s7 + $0x38c] ss:$16 sps:$4 sm:$0xff]  }
  0xbd   : > { %1612 = vmatprep.subr.bf16.mxu0 %v2442_v56  ;;  %1661 = vmatprep.subr.bf16.mxu1 %v2445_v57  ;;  %v2518_v56 = vld [vmem:[%s2982_s7 + $0x48c] ss:$16 sps:$4 sm:$0xff]   ;;  %v2513_v57 = vld [vmem:[%s2982_s7 + $0x388] ss:$16 sps:$4 sm:$0xff]  }
  0xc0   : > { %1613 = vmatpush1.bf16.msra.mxu0 %v2440_v58  ;;  %1662 = vmatpush1.bf16.msra.mxu1 %v2443_v59  ;;  %v2516_v58 = vld [vmem:[%s2982_s7 + $0x488] ss:$16 sps:$4 sm:$0xff]   ;;  %v2521_v59 = vld [vmem:[%s2982_s7 + $0x36c] ss:$16 sps:$4 sm:$0xff]  }
  0xc1   : > { %1663 = vmatprep.subr.bf16.mxu1 %v2449_v60  ;;  %1704 = vmatprep.subr.bf16.mxu0 %v2452_v22  ;;  %v2524_v60 = vld [vmem:[%s2982_s7 + $0x46c] ss:$16 sps:$4 sm:$0xff]   ;;  %v2519_v22 = vld [vmem:[%s2982_s7 + $0x368] ss:$16 sps:$4 sm:$0xff]  }
  0xc3   : > { %2230 = vmatmul.mubr.msk.bf16.vlgmr.msra.gmra.mxu0 %vm1472_vm1, %v3117_v61 }
  0xc4   : > { %1664 = vmatpush1.bf16.msra.mxu1 %v2447_v62  ;;  %1705 = vmatpush1.bf16.msra.mxu0 %v2450_v63  ;;  %v2527_v62 = vld [vmem:[%s2982_s7 + $0x34c] ss:$16 sps:$4 sm:$0xff]  }
  0xc5   : > { %1665 = vmatprep.subr.bf16.mxu1 %v2455_v0  ;;  %1706 = vmatprep.subr.bf16.mxu0 %v2458_v1  ;;  %v2530_v63 = vld [vmem:[%s2982_s7 + $0x44c] ss:$16 sps:$4 sm:$0xff]   ;;  %v2525_v0 = vld [vmem:[%s2982_s7 + $0x348] ss:$16 sps:$4 sm:$0xff]  }
  0xc6   : > { %1640 = vmatprep.mubr.bf16.mxu0 %v2599_v24  ;;  %v2533_v1 = vld [vmem:[%s2982_s7 + $0x32c] ss:$16 sps:$4 sm:$0xff]  }
  0xc8   : > { %1666 = vmatpush1.bf16.msra.mxu1 %v2453_v2  ;;  %1707 = vmatpush1.bf16.msra.mxu0 %v2456_v3  ;;  %v2536_v2 = vld [vmem:[%s2982_s7 + $0x42c] ss:$16 sps:$4 sm:$0xff]   ;;  %v2531_v3 = vld [vmem:[%s2982_s7 + $0x328] ss:$16 sps:$4 sm:$0xff]  }
  0xc9   : > { %1667 = vmatprep.subr.bf16.mxu1 %v2462_v5  ;;  %1708 = vmatprep.subr.bf16.mxu0 %v2465_v6  ;;  %v2542_v5 = vld [vmem:[%s2982_s7 + $0x40c] ss:$16 sps:$4 sm:$0xff]   ;;  %v2537_v6 = vld [vmem:[%s2982_s7 + $0x308] ss:$16 sps:$4 sm:$0xff]  }
  0xcb   : > { %2231 = vmatmul.mubr.msk.bf16.gmra.mxu0 %vm1472_vm1, %v3136_v7 }
  0xcc   : > { %1668 = vmatpush2.bf16.msra.mxu1 %v2460_v9  ;;  %1709 = vmatpush1.bf16.msra.mxu0 %v2463_v10 }
  0xcd   : > { %1669 = vmatprep.subr.bf16.mxu1 %v2468_v11  ;;  %1710 = vmatprep.subr.bf16.mxu0 %v2471_v12 }
  0xce   : > { %1736 = vmatprep.mubr.bf16.mxu0 %v2977_v23  ;;  %v2478_v23 = vld [vmem:[%s2982_s7 + $0x188] ss:$16 sps:$4 sm:$0xff]  }
  0xd0   : > { %1670 = vmatpush2.bf16.msra.mxu1 %v2466_v13  ;;  %1711 = vmatpush1.bf16.msra.mxu0 %v2469_v14 }
  0xd1   : > { %1671 = vmatprep.subr.bf16.mxu1 %v2474_v15  ;;  %1712 = vmatprep.subr.bf16.mxu0 %v2477_v17 }
  0xd4   : > { %1672 = vmatpush2.bf16.msra.mxu1 %v2472_v19  ;;  %1713 = vmatpush1.bf16.msra.mxu0 %v2475_v20 }
  0xd5   : > { %1673 = vmatprep.subr.bf16.mxu1 %v2480_v21  ;;  %1714 = vmatprep.subr.bf16.mxu0 %v2483_v25 }
  0xd8   : > { %1674 = vmatpush2.bf16.msra.mxu1 %v2478_v23  ;;  %1715 = vmatpush1.bf16.msra.mxu0 %v2481_v26 }
  0xd9   : > { %1675 = vmatprep.subr.bf16.mxu1 %v2486_v27  ;;  %1716 = vmatprep.subr.bf16.mxu0 %v2489_v28 }
  0xdc   : > { %1676 = vmatpush2.bf16.msra.mxu1 %v2484_v29  ;;  %1717 = vmatpush1.bf16.msra.mxu0 %v2487_v30 }
  0xdd   : > { %1677 = vmatprep.subr.bf16.mxu1 %v2492_v31  ;;  %1718 = vmatprep.subr.bf16.mxu0 %v2495_v34 }
  0xe0   : > { %1678 = vmatpush2.bf16.msra.mxu1 %v2490_v35  ;;  %1719 = vmatpush1.bf16.msra.mxu0 %v2493_v36 }
  0xe1   : > { %1679 = vmatprep.subr.bf16.mxu1 %v2498_v38  ;;  %1720 = vmatprep.subr.bf16.mxu0 %v2501_v40 }
  0xe4   : > { %1680 = vmatpush2.bf16.msra.mxu1 %v2496_v41  ;;  %1721 = vmatpush2.bf16.msra.mxu0 %v2499_v42 }
  0xe5   : > { %1681 = vmatprep.subr.bf16.mxu1 %v2504_v43  ;;  %1722 = vmatprep.subr.bf16.mxu0 %v2507_v45 }
  0xe8   : > { %1682 = vmatpush2.bf16.msra.mxu1 %v2502_v48  ;;  %1723 = vmatpush2.bf16.msra.mxu0 %v2505_v49 }
  0xe9   : > { %1724 = vmatprep.subr.bf16.mxu0 %v2510_v50  ;;  %2232 = vmatprep.subr.msk.bf16.mxu1 %vm1479_vm0, %v2228_v51 }
  0xeb   : > { %1684 = vmatmul.mubr.bf16.vlgmr.msra.gmra.mxu1 %v3054_v32  ;;  %v2522_v32 = vld [vmem:[%s2982_s7 + $0x468] ss:$16 sps:$4 sm:$0xff]  }
  0xec   : > { %1725 = vmatpush2.bf16.msra.mxu0 %v2508_v53  ;;  %1762 = vmatpush1.bf16.msra.mxu1 %v1487_v54 }
  0xed   : > { %1726 = vmatprep.subr.bf16.mxu0 %v2515_v55  ;;  %1763 = vmatprep.subr.bf16.mxu1 %v2518_v56 }
  0xee   : > { %1693 = vmatprep.mubr.bf16.mxu1 %v3067_v37  ;;  %v2528_v37 = vld [vmem:[%s2982_s7 + $0x448] ss:$16 sps:$4 sm:$0xff]  }
  0xf0   : > { %1727 = vmatpush2.bf16.msra.mxu0 %v2513_v57  ;;  %1764 = vmatpush1.bf16.msra.mxu1 %v2516_v58 }
  0xf1   : > { %1728 = vmatprep.subr.bf16.mxu0 %v2521_v59  ;;  %1765 = vmatprep.subr.bf16.mxu1 %v2524_v60 }
  0xf3   : > { %1694 = vmatmul.mubr.bf16.gmra.mxu1 %v3086_v44  ;;  %v2539_v44 = vld [vmem:[%s2982_s7 + $0x30c] ss:$16 sps:$4 sm:$0xff]   ;;  %s2066_s7 = sshll.u32 %s461_s28, 6 }
  0xf4   : > { %1729 = vmatpush2.bf16.msra.mxu0 %v2519_v22  ;;  %1766 = vmatpush1.bf16.msra.mxu1 %v2522_v32  ;;  %s3243_s21 = scalar_lea.vmem [#allocation3], %s2066_s7 }
  0xf5   : > { %1730 = vmatprep.subr.bf16.mxu0 %v2527_v62  ;;  %1767 = vmatprep.subr.bf16.mxu1 %v2530_v63 }
  0xf6   : > { %1789 = vmatprep.mubr.bf16.mxu1 %v2599_v24 }
  0xf8   : > { %1731 = vmatpush2.bf16.msra.mxu0 %v2525_v0  ;;  %1768 = vmatpush1.bf16.msra.mxu1 %v2528_v37 }
  0xf9   : > { %1732 = vmatprep.subr.bf16.mxu0 %v2533_v1  ;;  %1769 = vmatprep.subr.bf16.mxu1 %v2536_v2 }
  0xfc   : > { %1733 = vmatpush2.bf16.msra.mxu0 %v2531_v3  ;;  %1770 = vmatpush1.bf16.msra.mxu1 %v2534_v4 }
  0xfd   : > { %1734 = vmatprep.subr.bf16.mxu0 %v2539_v44  ;;  %1771 = vmatprep.subr.bf16.mxu1 %v2542_v5 }
 0x100   : > { %1735 = vmatpush2.bf16.msra.mxu0 %v2537_v6  ;;  %1772 = vmatpush1.bf16.msra.mxu1 %v2540_v8 }
 0x103   : > { %1737 = vmatmul.mubr.bf16.vlgmr.msra.gmra.mxu0 %v3059_v33  ;;  %2233 = vmatmul.mubr.msk.bf16.vlgmr.msra.gmra.mxu1 %vm1472_vm1, %v3117_v61 }
 0x104   : > { %1746 = vmatprep.mubr.bf16.mxu0 %v3074_v39  ;;  %1799 = vmatprep.mubr.bf16.mxu1 %v2599_v24 }
 0x10b   : > { %1747 = vmatmul.mubr.bf16.gmra.mxu0 %v3093_v46  ;;  %2234 = vmatmul.mubr.msk.bf16.gmra.mxu1 %vm1472_vm1, %v3136_v7 }
 0x111   : > { %v3217_v33 = vpop.permute.xlu0 %654 }
 0x115   : > { %v3220_v24 = vpop.permute.xlu0 %659 }
 0x11d   : > { %v3223_v7 = vpop.permute.xlu1 %664 }
 0x121   : > { %v3231_v38 = vpop.permute.xlu1 %669 }
 0x16b   : > { %v1526_v9 = vpop.f32.mrf.mxu0  ;;  %v1579_v13 = vpop.f32.mrf.mxu1 }
 0x16c   : > { %v1527_v39 = vadd.f32 %v1526_v9, %v3217_v33 }
 0x16d   : > { %v1528_v10 = vpop.f32.mrf.mxu0  ;;  %v1581_v15 = vpop.f32.mrf.mxu1 }
 0x16e   : > { %v1529_v46 = vadd.f32 %v1528_v10, %v3217_v33  ;;  %v1580_v20 = vadd.f32 %v1579_v13, %v1527_v39 }
 0x16f   : > { %v1530_v11 = vpop.f32.mrf.mxu0  ;;  %v1583_v61 = vpop.f32.mrf.mxu1 }
 0x170   : > { %v1531_v21 = vadd.f32 %v1530_v11, %v3220_v24  ;;  %v1582_v26 = vadd.f32 %v1581_v15, %v1529_v46 }
 0x171   : > { %v1532_v12 = vpop.f32.mrf.mxu0  ;;  %v1585_v18 = vpop.f32.mrf.mxu1 }
 0x172   : > { %v1533_v28 = vadd.f32 %v1532_v12, %v3220_v24  ;;  %v1584_v31 = vadd.f32 %v1583_v61, %v1531_v21 }
 0x173   : > { %v1536_v14 = vpop.f32.mrf.mxu0  ;;  %v1589_v25 = vpop.f32.mrf.mxu1 }
 0x174   : > { %v1537_v29 = vadd.f32 %v1536_v14, %v3223_v7  ;;  %v1586_v47 = vadd.f32 %v1585_v18, %v1533_v28 }
 0x175   : > { %v1538_v16 = vpop.f32.mrf.mxu0  ;;  %v1591_v34 = vpop.f32.mrf.mxu1 }
 0x176   : > { %v1539_v41 = vadd.f32 %v1538_v16, %v3223_v7  ;;  %v1590_v48 = vadd.f32 %v1589_v25, %v1537_v29 }
 0x177   : > { %v1540_v17 = vpop.f32.mrf.mxu0  ;;  %v1593_v51 = vpop.f32.mrf.mxu1 }
 0x178   : > { %v1541_v50 = vadd.f32 %v1540_v17, %v3231_v38  ;;  %v1592_v56 = vadd.f32 %v1591_v34, %v1539_v41 }
 0x179   : > { %v1542_v19 = vpop.f32.mrf.mxu0  ;;  %v1595_v62 = vpop.f32.mrf.mxu1 }
 0x17a   : > { %v1543_v59 = vadd.f32 %v1542_v19, %v3231_v38  ;;  %v1594_v32 = vadd.f32 %v1593_v51, %v1541_v50 }
 0x17c   : > { %v1596_v44 = vadd.f32 %v1595_v62, %v1543_v59 }
 0x183   : > { %v1632_v23 = vpop.f32.mrf.mxu0 }
 0x184   : > { %v3226_v27 = vadd.f32 %v1632_v23, %v1580_v20 }
 0x185   : > { %v1634_v30 = vpop.f32.mrf.mxu0 }
 0x186   : > { %v1810_v35 = vmin.f32 %v3226_v27, 0.0  ;;  %v1635_v36 = vadd.f32 %v1634_v30, %v1582_v26  ;;  %vm1874_vm2 = vcmp.gt.f32.partialorder %v3226_v27, 0.0 }
 0x187   : > { %v1636_v40 = vpop.f32.mrf.mxu0 }
 0x188   : > { %v1826_v42 = vmul.f32 1.442695, %v1810_v35  ;;  %v1811_v43 = vmin.f32 %v1635_v36, 0.0  ;;  %v3234_v45 = vadd.f32 %v1636_v40, %v1584_v31  ;;  %vm1875_vm3 = vcmp.gt.f32.partialorder %v1635_v36, 0.0 }
 0x189   : > { %v1638_v49 = vpop.f32.mrf.mxu0 }
 0x18a   : > { %2543 = vpow2.f32 %v1826_v42  ;;  %v1828_v52 = vmul.f32 1.442695, %v1811_v43  ;;  %v1814_v53 = vmin.f32 %v3234_v45, 0.0  ;;  %v1639_v54 = vadd.f32 %v1638_v49, %v1586_v47 }
 0x18b   : > { %v1642_v55 = vpop.f32.mrf.mxu0  ;;  %vm1878_vm4 = vcmp.gt.f32.partialorder %v3234_v45, 0.0 }
 0x18c   : > { %2545 = vpow2.f32 %v1828_v52  ;;  %v1834_v57 = vmul.f32 1.442695, %v1814_v53  ;;  %v1643_v58 = vadd.f32 %v1642_v55, %v1590_v48  ;;  %v1815_v60 = vmin.f32 %v1639_v54, 0.0 }
 0x18d   : > { %v1644_v22 = vpop.f32.mrf.mxu0  ;;  %vm1879_vm5 = vcmp.gt.f32.partialorder %v1639_v54, 0.0 }
 0x18e   : > { %2547 = vpow2.f32 %v1834_v57  ;;  %v1818_v63 = vmin.f32 %v1643_v58, 0.0  ;;  %v1645_v0 = vadd.f32 %v1644_v22, %v1592_v56  ;;  %v1836_v37 = vmul.f32 1.442695, %v1815_v60 }
 0x18f   : > { %v1646_v1 = vpop.f32.mrf.mxu0  ;;  %vm1882_vm6 = vcmp.gt.f32.partialorder %v1643_v58, 0.0 }
 0x190   : > { %v1842_v2 = vmul.f32 1.442695, %v1818_v63  ;;  %v1819_v3 = vmin.f32 %v1645_v0, 0.0  ;;  %v1647_v4 = vadd.f32 %v1646_v1, %v1594_v32  ;;  %2549 = vpow2.f32 %v1836_v37 }
 0x191   : > { %v1648_v5 = vpop.f32.mrf.mxu0  ;;  %vm1883_vm7 = vcmp.gt.f32.partialorder %v1645_v0, 0.0 }
 0x192   : > { %2551 = vpow2.f32 %v1842_v2  ;;  %v1844_v6 = vmul.f32 1.442695, %v1819_v3  ;;  %v1822_v8 = vmin.f32 %v1647_v4, 0.0  ;;  %v1649_v9 = vadd.f32 %v1648_v5, %v1596_v44 }
 0x193   : > { %vm1886_vm8 = vcmp.gt.f32.partialorder %v1647_v4, 0.0 }
 0x194   : > { %2553 = vpow2.f32 %v1844_v6  ;;  %v1850_v10 = vmul.f32 1.442695, %v1822_v8  ;;  %v1823_v11 = vmin.f32 %v1649_v9, 0.0  ;;  %vm1887_vm9 = vcmp.gt.f32.partialorder %v1649_v9, 0.0 }
 0x196   : > { %2555 = vpow2.f32 %v1850_v10  ;;  %v1852_v13 = vmul.f32 1.442695, %v1823_v11 }
 0x197   : > { %v2544_v12 = vpop.eup %2543 }
 0x198   : > { %v2235_v14 = vadd.f32 -1.0, %v2544_v12  ;;  %2557 = vpow2.f32 %v1852_v13 }
 0x199   : > { %v2546_v15 = vpop.eup %2545 }
 0x19a   : > { %v2236_v16 = vadd.f32 -1.0, %v2546_v15  ;;  %v1890_v17 = vsel %vm1874_vm2, %v3226_v27, %v2235_v14 }
 0x19b   : > { %v2548_v61 = vpop.eup %2547 }
 0x19c   : > { %v1891_v39 = vsel %vm1875_vm3, %v1635_v36, %v2236_v16  ;;  %v2239_v18 = vadd.f32 -1.0, %v2548_v61 }
 0x19d   : > { %v2265_v46 = vpack.c.bf16 %v1891_v39, %v1890_v17  ;;  %v2550_v19 = vpop.eup %2549 }
 0x19e   : > { %v2240_v21 = vadd.f32 -1.0, %v2550_v19  ;;  %v1894_v26 = vsel %vm1878_vm4, %v3234_v45, %v2239_v18 }
 0x19f   : > { %v2552_v20 = vpop.eup %2551  ;;  %1954 = vst [vmem:[%s3243_s21] sm:$0xff] %v2265_v46 }
 0x1a0   : > { %v2243_v25 = vadd.f32 -1.0, %v2552_v20  ;;  %v1895_v27 = vsel %vm1879_vm5, %v1639_v54, %v2240_v21 }
 0x1a1   : > { %v2554_v23 = vpop.eup %2553  ;;  %v2267_v28 = vpack.c.bf16 %v1895_v27, %v1894_v26 }
 0x1a2   : > { %v2244_v29 = vadd.f32 -1.0, %v2554_v23  ;;  %v1898_v31 = vsel %vm1882_vm6, %v1643_v58, %v2243_v25 }
 0x1a3   : > { %v2556_v30 = vpop.eup %2555  ;;  %1956 = vst [vmem:[%s3243_s21 + $0x10] sm:$0xff] %v2267_v28 }
 0x1a4   : > { %v1899_v34 = vsel %vm1883_vm7, %v1645_v0, %v2244_v29  ;;  %v2247_v36 = vadd.f32 -1.0, %v2556_v30 }
 0x1a5   : > { %v2269_v35 = vpack.c.bf16 %v1899_v34, %v1898_v31  ;;  %v2558_v40 = vpop.eup %2557 }
 0x1a6   : > { %v2248_v41 = vadd.f32 -1.0, %v2558_v40  ;;  %v1902_v42 = vsel %vm1886_vm8, %v1647_v4, %v2247_v36 }
 0x1a7   : > { %1958 = vst [vmem:[%s3243_s21 + $0x20] sm:$0xff] %v2269_v35 }
 0x1a8   : > { %v1903_v43 = vsel %vm1887_vm9, %v1649_v9, %v2248_v41 }
 0x1a9   : > { %v2271_v45 = vpack.c.bf16 %v1903_v43, %v1902_v42 }
 0x1ab   : > { %v1685_v47 = vpop.f32.mrf.mxu1  ;;  %1960 = vst [vmem:[%s3243_s21 + $0x30] sm:$0xff] %v2271_v45 }
 0x1ac   : > { %v1686_v55 = vadd.f32 %v1685_v47, %v3217_v33 }
 0x1ad   : > { %v1687_v48 = vpop.f32.mrf.mxu1 }
 0x1ae   : > { %v1688_v58 = vadd.f32 %v1687_v48, %v3217_v33 }
 0x1af   : > { %v1689_v49 = vpop.f32.mrf.mxu1 }
 0x1b0   : > { %v1690_v32 = vadd.f32 %v1689_v49, %v3220_v24 }
 0x1b1   : > { %v1691_v50 = vpop.f32.mrf.mxu1 }
 0x1b2   : > { %v1692_v4 = vadd.f32 %v1691_v50, %v3220_v24 }
 0x1b3   : > { %v1695_v51 = vpop.f32.mrf.mxu1 }
 0x1b4   : > { %v1696_v9 = vadd.f32 %v1695_v51, %v3223_v7 }
 0x1b5   : > { %v1697_v52 = vpop.f32.mrf.mxu1 }
 0x1b6   : > { %v1698_v13 = vadd.f32 %v1697_v52, %v3223_v7 }
 0x1b7   : > { %v1699_v53 = vpop.f32.mrf.mxu1 }
 0x1b8   : > { %v1700_v39 = vadd.f32 %v1699_v53, %v3231_v38 }
 0x1b9   : > { %v1701_v54 = vpop.f32.mrf.mxu1 }
 0x1ba   : > { %v1702_v23 = vadd.f32 %v1701_v54, %v3231_v38 }
 0x1c3   : > { %v1738_v56 = vpop.f32.mrf.mxu0  ;;  %v1791_v57 = vpop.f32.mrf.mxu1 }
 0x1c4   : > { %v1739_v59 = vadd.f32 %v1738_v56, %v1686_v55 }
 0x1c5   : > { %v1740_v60 = vpop.f32.mrf.mxu0  ;;  %v1793_v22 = vpop.f32.mrf.mxu1 }
 0x1c6   : > { %v3254_v62 = vadd.f32 %v1791_v57, %v1739_v59  ;;  %v1741_v63 = vadd.f32 %v1740_v60, %v1688_v58 }
 0x1c7   : > { %v1742_v0 = vpop.f32.mrf.mxu0  ;;  %v1795_v37 = vpop.f32.mrf.mxu1 }
 0x1c8   : > { %v1812_v1 = vmin.f32 %v3254_v62, 0.0  ;;  %v1794_v2 = vadd.f32 %v1793_v22, %v1741_v63  ;;  %v1743_v3 = vadd.f32 %v1742_v0, %v1690_v32  ;;  %vm1876_vm10 = vcmp.gt.f32.partialorder %v3254_v62, 0.0 }
 0x1c9   : > { %v1744_v44 = vpop.f32.mrf.mxu0  ;;  %v1797_v5 = vpop.f32.mrf.mxu1 }
 0x1ca   : > { %v1830_v6 = vmul.f32 1.442695, %v1812_v1  ;;  %v1813_v33 = vmin.f32 %v1794_v2, 0.0  ;;  %v3258_v8 = vadd.f32 %v1795_v37, %v1743_v3  ;;  %v1745_v10 = vadd.f32 %v1744_v44, %v1692_v4 }
 0x1cb   : > { %v1748_v11 = vpop.f32.mrf.mxu0  ;;  %v1801_v12 = vpop.f32.mrf.mxu1  ;;  %vm1877_vm11 = vcmp.gt.f32.partialorder %v1794_v2, 0.0 }
 0x1cc   : > { %2559 = vpow2.f32 %v1830_v6  ;;  %v1832_v14 = vmul.f32 1.442695, %v1813_v33  ;;  %v1816_v15 = vmin.f32 %v3258_v8, 0.0  ;;  %v1798_v16 = vadd.f32 %v1797_v5, %v1745_v10  ;;  %v1988_v10 = vld [vmem:[%s3243_s21 + $0x10] sm:$0xff] (%p2650_p5) }
 0x1cd   : > { %v1749_v61 = vadd.f32 %v1748_v11, %v1696_v9  ;;  %v1750_v24 = vpop.f32.mrf.mxu0  ;;  %v1803_v17 = vpop.f32.mrf.mxu1  ;;  %vm1880_vm12 = vcmp.gt.f32.partialorder %v3258_v8, 0.0  ;;  %1989 = vst [vmem:[%s1971_s23 + $0x30] sm:$0xff] (%p2650_p5), %v1988_v10 }
 0x1ce   : > { %2561 = vpow2.f32 %v1832_v14  ;;  %v1838_v46 = vmul.f32 1.442695, %v1816_v15  ;;  %v1751_v18 = vadd.f32 %v1750_v24, %v1698_v13  ;;  %v1817_v19 = vmin.f32 %v1798_v16, 0.0  ;;  %v1996_v14 = vld [vmem:[%s3243_s21 + $0x30] sm:$0xff] (%p2650_p5) }
 0x1cf   : > { %v1802_v20 = vadd.f32 %v1801_v12, %v1749_v61  ;;  %v1752_v21 = vpop.f32.mrf.mxu0  ;;  %v1805_v25 = vpop.f32.mrf.mxu1  ;;  %vm1881_vm13 = vcmp.gt.f32.partialorder %v1798_v16, 0.0  ;;  %v1992_v12 = vld [vmem:[%s3243_s21 + $0x20] sm:$0xff] (%p2650_p5)  ;;  %1997 = vst [vmem:[%s1971_s23 + $0x90] sm:$0xff] (%p2650_p5), %v1996_v14 }
 0x1d0   : > { %2563 = vpow2.f32 %v1838_v46  ;;  %v1804_v7 = vadd.f32 %v1803_v17, %v1751_v18  ;;  %v1753_v26 = vadd.f32 %v1752_v21, %v1700_v39  ;;  %v1840_v27 = vmul.f32 1.442695, %v1817_v19  ;;  %1993 = vst [vmem:[%s1971_s23 + $0x60] sm:$0xff] (%p2650_p5), %v1992_v12 }
 0x1d1   : > { %v1820_v28 = vmin.f32 %v1802_v20, 0.0  ;;  %v1754_v29 = vpop.f32.mrf.mxu0  ;;  %v1807_v36 = vpop.f32.mrf.mxu1  ;;  %vm1884_vm14 = vcmp.gt.f32.partialorder %v1802_v20, 0.0 }
 0x1d2   : > { %v1821_v30 = vmin.f32 %v1804_v7, 0.0  ;;  %v1806_v31 = vadd.f32 %v1805_v25, %v1753_v26  ;;  %v1755_v34 = vadd.f32 %v1754_v29, %v1702_v23  ;;  %2565 = vpow2.f32 %v1840_v27 }
 0x1d3   : > { %v1846_v35 = vmul.f32 1.442695, %v1820_v28  ;;  %vm1885_vm15 = vcmp.gt.f32.partialorder %v1804_v7, 0.0 }
 0x1d4   : > { %v1848_v40 = vmul.f32 1.442695, %v1821_v30  ;;  %v1824_v41 = vmin.f32 %v1806_v31, 0.0  ;;  %v1808_v42 = vadd.f32 %v1807_v36, %v1755_v34  ;;  %vm1888_vm0 = vcmp.gt.f32.partialorder %v1806_v31, 0.0 }
 0x1d5   : > { %2567 = vpow2.f32 %v1846_v35 }
 0x1d6   : > { %2569 = vpow2.f32 %v1848_v40  ;;  %v1854_v43 = vmul.f32 1.442695, %v1824_v41  ;;  %v1825_v45 = vmin.f32 %v1808_v42, 0.0  ;;  %vm1889_vm1 = vcmp.gt.f32.partialorder %v1808_v42, 0.0 }
 0x1d8   : > { %2571 = vpow2.f32 %v1854_v43  ;;  %v1856_v38 = vmul.f32 1.442695, %v1825_v45 }
 0x1d9   : > { %v2560_v47 = vpop.eup %2559 }
 0x1da   : > { %v2237_v48 = vadd.f32 -1.0, %v2560_v47  ;;  %2573 = vpow2.f32 %v1856_v38 }
 0x1db   : > { %v2562_v49 = vpop.eup %2561 }
 0x1dc   : > { %v2238_v50 = vadd.f32 -1.0, %v2562_v49  ;;  %v1892_v52 = vsel %vm1876_vm10, %v3254_v62, %v2237_v48 }
 0x1dd   : > { %v2564_v51 = vpop.eup %2563 }
 0x1de   : > { %v1893_v53 = vsel %vm1877_vm11, %v1794_v2, %v2238_v50  ;;  %v2241_v55 = vadd.f32 -1.0, %v2564_v51 }
 0x1df   : > { %v2266_v54 = vpack.c.bf16 %v1893_v53, %v1892_v52  ;;  %v2566_v56 = vpop.eup %2565 }
 0x1e0   : > { %v2242_v57 = vadd.f32 -1.0, %v2566_v56  ;;  %v1896_v60 = vsel %vm1880_vm12, %v3258_v8, %v2241_v55  ;;  %v1984_v8 = vld [vmem:[%s3243_s21] sm:$0xff] (%p2650_p5) }
 0x1e1   : > { %1955 = vst [vmem:[%s3243_s21 + $0x8] sm:$0xff] %v2266_v54  ;;  %1985 = vst [vmem:[%s1971_s23] sm:$0xff] (%p2650_p5), %v1984_v8 }
 0x1e2   : > { %v2568_v58 = vpop.eup %2567  ;;  %v1897_v22 = vsel %vm1881_vm13, %v1798_v16, %v2242_v57 }
 0x1e3   : > { %v2570_v59 = vpop.eup %2569  ;;  %v2245_v32 = vadd.f32 -1.0, %v2568_v58  ;;  %v2268_v63 = vpack.c.bf16 %v1897_v22, %v1896_v60 }
 0x1e4   : > { %v2246_v0 = vadd.f32 -1.0, %v2570_v59 }
 0x1e5   : > { %v2572_v62 = vpop.eup %2571  ;;  %1957 = vst [vmem:[%s3243_s21 + $0x18] sm:$0xff] %v2268_v63  ;;  %v1900_v37 = vsel %vm1884_vm14, %v1802_v20, %v2245_v32 }
 0x1e6   : > { %v1901_v1 = vsel %vm1885_vm15, %v1804_v7, %v2246_v0  ;;  %v2249_v2 = vadd.f32 -1.0, %v2572_v62 }
 0x1e7   : > { %v2574_v3 = vpop.eup %2573  ;;  %v2270_v4 = vpack.c.bf16 %v1901_v1, %v1900_v37 }
 0x1e8   : > { %v2250_v44 = vadd.f32 -1.0, %v2574_v3  ;;  %v1904_v5 = vsel %vm1888_vm0, %v1806_v31, %v2249_v2  ;;  %v1986_v9 = vld [vmem:[%s3243_s21 + $0x8] sm:$0xff] (%p2650_p5) }
 0x1e9   : > { %1959 = vst [vmem:[%s3243_s21 + $0x28] sm:$0xff] %v2270_v4  ;;  %1968 = sbr.rel (!%p2650_p5) target bundleno = 502 (0x1f6), region = 59  ;;  %1987 = vst [vmem:[%s1971_s23 + $0x8] sm:$0xff] (%p2650_p5), %v1986_v9 }
 0x1ea   : > { %v1905_v6 = vsel %vm1889_vm1, %v1808_v42, %v2250_v44 }
 0x1eb   : > { %v2272_v33 = vpack.c.bf16 %v1905_v6, %v1904_v5 }
 0x1ec   : > { %v1990_v11 = vld [vmem:[%s3243_s21 + $0x18] sm:$0xff] (%p2650_p5) }
 0x1ed   : > { %1961 = vst [vmem:[%s3243_s21 + $0x38] sm:$0xff] %v2272_v33  ;;  %1991 = vst [vmem:[%s1971_s23 + $0x38] sm:$0xff] (%p2650_p5), %v1990_v11 }
 0x1f0   : > { %v1994_v13 = vld [vmem:[%s3243_s21 + $0x28] sm:$0xff] }
 0x1f1   : > { %1995 = vst [vmem:[%s1971_s23 + $0x68] sm:$0xff] %v1994_v13 }
 0x1f4   : > { %v1998_v15 = vld [vmem:[%s3243_s21 + $0x38] sm:$0xff] }
 0x1f5   : > { %1999 = vst [vmem:[%s1971_s23 + $0x98] sm:$0xff] %v1998_v15 }
 0x1f6 PF: > { %p10_p10 = scmp.ge.s32.totalorder %s2637_s16, 5   ;;  %s3303_s12 = smov %s2593_s13 }
 0x1f7   : > { %s3304_s13 = smov %s2648_s19  ;;  %s3305_s14 = smov %s2637_s16 }
 0x1f8   :  { %12 = sbr.rel (!%p10_p10) target bundleno = 2 (0x2), region = 113 }

// kernel: nvidia_net_forward.8
= control target key start
LH: loop header
LB: loop body
LE: loop exit
PB: predicated region body
PF: predicated region fallthrough
CT: control target
= control target key end

     0   :  { %v1515_v1 = vmov 0   ;;  %vm780_vm0 = vcmask 261120   ;;  %s2022_s2 = inlined_call_operand.vmem [shape: bf16[800,256], index: 2, kind: input, shape index: {}]   ;;  %s2023_s0 = inlined_call_operand.vmem [shape: bf16[48,800], index: 0, kind: input, shape index: {}]   ;;  %s2024_s1 = inlined_call_operand.vmem [shape: f32[48,1], index: 1, kind: input, shape index: {}]   ;;  %s2025_s3 = inlined_call_operand.vmem [shape: bf16[48,256], index: 3, kind: output, shape index: {}]  }
   0x1   :  { %v1311_v0 = vld [vmem:[%s2022_s2 + $0x74] ss:$8 sps:$4 sm:$0xff]   ;;  %1309 = vset.pattern.permute.xlu0 %v1515_v1  ;;  %1310 = vset.pattern.permute.xlu1 %v1515_v1  ;;  %v1313_v2 = vld [vmem:[%s2022_s2 + $0x70] ss:$8 sps:$4 sm:$0xff]   ;;  %v1317_v5 = vld [vmem:[%s2022_s2 + $0x64] ss:$8 sps:$4 sm:$0xff]  }
   0x2   :  { %790 = vmatprep.subr.bf16.mxu0 %v1311_v0  ;;  %v1314_v3 = vld [vmem:[%s2022_s2 + $0x174] ss:$8 sps:$4 sm:$0xff]   ;;  %v1316_v4 = vld [vmem:[%s2022_s2 + $0x170] ss:$8 sps:$4 sm:$0xff]   ;;  %v1319_v6 = vld [vmem:[%s2022_s2 + $0x60] ss:$8 sps:$4 sm:$0xff]  }
   0x3   :  { %791 = vmatpush1.bf16.msra.mxu0 %v1313_v2  ;;  %853 = vmatprep.subr.bf16.mxu1 %v1314_v3  ;;  %v1320_v7 = vld [vmem:[%s2022_s2 + $0x164] ss:$8 sps:$4 sm:$0xff]   ;;  %v1322_v8 = vld [vmem:[%s2022_s2 + $0x160] ss:$8 sps:$4 sm:$0xff]   ;;  %v1323_v9 = vld [vmem:[%s2022_s2 + $0x54] ss:$8 sps:$4 sm:$0xff]  }
   0x4   :  { %854 = vmatpush1.bf16.msra.mxu1 %v1316_v4  ;;  %792 = vmatprep.subr.bf16.mxu0 %v1317_v5  ;;  %v1325_v10 = vld [vmem:[%s2022_s2 + $0x50] ss:$8 sps:$4 sm:$0xff]   ;;  %v1326_v11 = vld [vmem:[%s2022_s2 + $0x154] ss:$8 sps:$4 sm:$0xff]   ;;  %v1329_v12 = vld [vmem:[%s2022_s2 + $0x44] ss:$8 sps:$4 sm:$0xff]  }
   0x5   :  { %855 = vmatprep.subr.bf16.mxu1 %v1320_v7  ;;  %v1328_v13 = vld [vmem:[%s2022_s2 + $0x150] ss:$8 sps:$4 sm:$0xff]   ;;  %v1332_v14 = vld [vmem:[%s2022_s2 + $0x144] ss:$8 sps:$4 sm:$0xff]   ;;  %v1331_v15 = vld [vmem:[%s2022_s2 + $0x40] ss:$8 sps:$4 sm:$0xff]  }
   0x6   :  { %v1335_v16 = vld [vmem:[%s2022_s2 + $0x34] ss:$8 sps:$4 sm:$0xff]   ;;  %v1334_v17 = vld [vmem:[%s2022_s2 + $0x140] ss:$8 sps:$4 sm:$0xff]   ;;  %v1337_v19 = vld [vmem:[%s2022_s2 + $0x30] ss:$8 sps:$4 sm:$0xff]  }
   0x7   :  { %793 = vmatpush1.bf16.msra.mxu0 %v1319_v6  ;;  %v1338_v18 = vld [vmem:[%s2022_s2 + $0x134] ss:$8 sps:$4 sm:$0xff]   ;;  %v1341_v20 = vld [vmem:[%s2022_s2 + $0x24] ss:$8 sps:$4 sm:$0xff]   ;;  %v1340_v21 = vld [vmem:[%s2022_s2 + $0x130] ss:$8 sps:$4 sm:$0xff]  }
   0x8   :  { %794 = vmatprep.subr.bf16.mxu0 %v1323_v9  ;;  %856 = vmatpush1.bf16.msra.mxu1 %v1322_v8  ;;  %v1344_v22 = vld [vmem:[%s2022_s2 + $0x124] ss:$8 sps:$4 sm:$0xff]   ;;  %v1343_v23 = vld [vmem:[%s2022_s2 + $0x20] ss:$8 sps:$4 sm:$0xff]   ;;  %v1347_v24 = vld [vmem:[%s2022_s2 + $0x14] ss:$8 sps:$4 sm:$0xff]  }
   0x9   :  { %857 = vmatprep.subr.bf16.mxu1 %v1326_v11  ;;  %v1346_v25 = vld [vmem:[%s2022_s2 + $0x120] ss:$8 sps:$4 sm:$0xff]   ;;  %v1350_v26 = vld [vmem:[%s2022_s2 + $0x114] ss:$8 sps:$4 sm:$0xff]   ;;  %v1349_v27 = vld [vmem:[%s2022_s2 + $0x10] ss:$8 sps:$4 sm:$0xff]  }
   0xa   :  { %v1353_v28 = vld [vmem:[%s2022_s2 + $0x4] ss:$8 sps:$4 sm:$0xff]   ;;  %v1352_v29 = vld [vmem:[%s2022_s2 + $0x110] ss:$8 sps:$4 sm:$0xff]   ;;  %v1355_v31 = vld [vmem:[%s2022_s2] ss:$8 sps:$4 sm:$0xff]  }
   0xb   :  { %795 = vmatpush1.bf16.msra.mxu0 %v1325_v10  ;;  %v1356_v30 = vld [vmem:[%s2022_s2 + $0x104] ss:$8 sps:$4 sm:$0xff]   ;;  %v1359_v32 = vld [vmem:[%s2022_s2 + $0xf4] ss:$8 sps:$4 sm:$0xff]   ;;  %v1358_v33 = vld [vmem:[%s2022_s2 + $0x100] ss:$8 sps:$4 sm:$0xff]  }
   0xc   :  { %796 = vmatprep.subr.bf16.mxu0 %v1329_v12  ;;  %858 = vmatpush1.bf16.msra.mxu1 %v1328_v13  ;;  %v1362_v34 = vld [vmem:[%s2022_s2 + $0x1f4] ss:$8 sps:$4 sm:$0xff]   ;;  %v1361_v35 = vld [vmem:[%s2022_s2 + $0xf0] ss:$8 sps:$4 sm:$0xff]   ;;  %v1365_v36 = vld [vmem:[%s2022_s2 + $0xe4] ss:$8 sps:$4 sm:$0xff]  }
   0xd   :  { %859 = vmatprep.subr.bf16.mxu1 %v1332_v14  ;;  %v1364_v37 = vld [vmem:[%s2022_s2 + $0x1f0] ss:$8 sps:$4 sm:$0xff]   ;;  %v1368_v38 = vld [vmem:[%s2022_s2 + $0x1e4] ss:$8 sps:$4 sm:$0xff]   ;;  %v1367_v39 = vld [vmem:[%s2022_s2 + $0xe0] ss:$8 sps:$4 sm:$0xff]  }
   0xe   :  { %v1371_v40 = vld [vmem:[%s2022_s2 + $0xd4] ss:$8 sps:$4 sm:$0xff]   ;;  %v1370_v41 = vld [vmem:[%s2022_s2 + $0x1e0] ss:$8 sps:$4 sm:$0xff]   ;;  %v1373_v43 = vld [vmem:[%s2022_s2 + $0xd0] ss:$8 sps:$4 sm:$0xff]  }
   0xf   :  { %797 = vmatpush1.bf16.msra.mxu0 %v1331_v15  ;;  %v1374_v42 = vld [vmem:[%s2022_s2 + $0x1d4] ss:$8 sps:$4 sm:$0xff]   ;;  %v1377_v44 = vld [vmem:[%s2022_s2 + $0xc4] ss:$8 sps:$4 sm:$0xff]   ;;  %v1376_v45 = vld [vmem:[%s2022_s2 + $0x1d0] ss:$8 sps:$4 sm:$0xff]  }
  0x10   :  { %798 = vmatprep.subr.bf16.mxu0 %v1335_v16  ;;  %860 = vmatpush1.bf16.msra.mxu1 %v1334_v17  ;;  %v1380_v46 = vld [vmem:[%s2022_s2 + $0x1c4] ss:$8 sps:$4 sm:$0xff]   ;;  %v1379_v47 = vld [vmem:[%s2022_s2 + $0xc0] ss:$8 sps:$4 sm:$0xff]   ;;  %v1383_v49 = vld [vmem:[%s2022_s2 + $0xb4] ss:$8 sps:$4 sm:$0xff]  }
  0x11   :  { %861 = vmatprep.subr.bf16.mxu1 %v1338_v18  ;;  %v1408_v48 = vld [vmem:[%s2023_s0 + $0x4] ss:$28 sps:$4 sm:$0xff]   ;;  %v1386_v51 = vld [vmem:[%s2022_s2 + $0x1b4] ss:$8 sps:$4 sm:$0xff]   ;;  %v1415_v52 = vld [vmem:[%s2023_s0 + $0xc] ss:$28 sps:$4 sm:$0xff]  }
  0x12   :  { %v1382_v50 = vld [vmem:[%s2022_s2 + $0x1c0] ss:$8 sps:$4 sm:$0xff]   ;;  %822 = vmatprep.mubr.bf16.mxu0 %v1408_v48  ;;  %v1385_v53 = vld [vmem:[%s2022_s2 + $0xb0] ss:$8 sps:$4 sm:$0xff]   ;;  %v1389_v54 = vld [vmem:[%s2022_s2 + $0xa4] ss:$8 sps:$4 sm:$0xff]   ;;  %885 = vmatprep.mubr.bf16.mxu1 %v1415_v52 }
  0x13   :  { %799 = vmatpush1.bf16.msra.mxu0 %v1337_v19  ;;  %v1388_v55 = vld [vmem:[%s2022_s2 + $0x1b0] ss:$8 sps:$4 sm:$0xff]   ;;  %v1392_v56 = vld [vmem:[%s2022_s2 + $0x1a4] ss:$8 sps:$4 sm:$0xff]   ;;  %v1391_v57 = vld [vmem:[%s2022_s2 + $0xa0] ss:$8 sps:$4 sm:$0xff]  }
  0x14   :  { %800 = vmatprep.subr.bf16.mxu0 %v1341_v20  ;;  %862 = vmatpush1.bf16.msra.mxu1 %v1340_v21  ;;  %v1395_v58 = vld [vmem:[%s2022_s2 + $0x94] ss:$8 sps:$4 sm:$0xff]   ;;  %v1394_v59 = vld [vmem:[%s2022_s2 + $0x1a0] ss:$8 sps:$4 sm:$0xff]   ;;  %v1397_v61 = vld [vmem:[%s2022_s2 + $0x90] ss:$8 sps:$4 sm:$0xff]  }
  0x15   :  { %863 = vmatprep.subr.bf16.mxu1 %v1344_v22  ;;  %v1398_v60 = vld [vmem:[%s2022_s2 + $0x194] ss:$8 sps:$4 sm:$0xff]   ;;  %v1401_v62 = vld [vmem:[%s2022_s2 + $0x84] ss:$8 sps:$4 sm:$0xff]   ;;  %v1400_v63 = vld [vmem:[%s2022_s2 + $0x190] ss:$8 sps:$4 sm:$0xff]  }
  0x16   :  { %v1404_v0 = vld [vmem:[%s2022_s2 + $0x184] ss:$8 sps:$4 sm:$0xff]   ;;  %v1403_v2 = vld [vmem:[%s2022_s2 + $0x80] ss:$8 sps:$4 sm:$0xff]   ;;  %v1412_v5 = vld [vmem:[%s2022_s2 + $0x274] ss:$8 sps:$4 sm:$0xff]  }
  0x17   :  { %801 = vmatpush1.bf16.msra.mxu0 %v1343_v23  ;;  %v1409_v3 = vld [vmem:[%s2022_s2 + $0x180] ss:$8 sps:$4 sm:$0xff]   ;;  %v1410_v6 = vld [vmem:[%s2022_s2 + $0x270] ss:$8 sps:$4 sm:$0xff]   ;;  %v1450_v8 = vld [vmem:[%s2022_s2 + $0x314] ss:$8 sps:$4 sm:$0xff]  }
  0x18   :  { %802 = vmatprep.subr.bf16.mxu0 %v1347_v24  ;;  %864 = vmatpush1.bf16.msra.mxu1 %v1346_v25  ;;  %v1406_v4 = vld [vmem:[%s2023_s0] ss:$28 sps:$4 sm:$0xff]   ;;  %v1413_v7 = vld [vmem:[%s2023_s0 + $0x8] ss:$28 sps:$4 sm:$0xff]   ;;  %v1448_v11 = vld [vmem:[%s2022_s2 + $0x310] ss:$8 sps:$4 sm:$0xff]  }
  0x19   :  { %865 = vmatprep.subr.bf16.mxu1 %v1350_v26  ;;  %v1418_v9 = vld [vmem:[%s2022_s2 + $0x264] ss:$8 sps:$4 sm:$0xff]   ;;  %v1446_v10 = vld [vmem:[%s2023_s0 + $0x3c] ss:$28 sps:$4 sm:$0xff]   ;;  %v1416_v13 = vld [vmem:[%s2022_s2 + $0x260] ss:$8 sps:$4 sm:$0xff]  }
  0x1a   :  { %v1452_v12 = vld [vmem:[%s2023_s0 + $0x44] ss:$28 sps:$4 sm:$0xff]   ;;  %v1421_v14 = vld [vmem:[%s2022_s2 + $0x254] ss:$8 sps:$4 sm:$0xff]   ;;  %v1419_v15 = vld [vmem:[%s2022_s2 + $0x250] ss:$8 sps:$4 sm:$0xff]  }
  0x1b   :  { %803 = vmatpush1.bf16.msra.mxu0 %v1349_v27  ;;  %v1424_v16 = vld [vmem:[%s2022_s2 + $0x244] ss:$8 sps:$4 sm:$0xff]   ;;  %v1451_v17 = vld [vmem:[%s2023_s0 + $0x38] ss:$28 sps:$4 sm:$0xff]   ;;  %v1470_v19 = vld [vmem:[%s2022_s2 + $0x300] ss:$8 sps:$4 sm:$0xff]  }
  0x1c   :  { %804 = vmatprep.subr.bf16.mxu0 %v1353_v28  ;;  %866 = vmatpush1.bf16.msra.mxu1 %v1352_v29  ;;  %v1461_v18 = vld [vmem:[%s2023_s0 + $0x74] ss:$28 sps:$4 sm:$0xff]   ;;  %v1472_v20 = vld [vmem:[%s2022_s2 + $0x304] ss:$8 sps:$4 sm:$0xff]   ;;  %v1454_v21 = vld [vmem:[%s2023_s0 + $0x40] ss:$28 sps:$4 sm:$0xff]  }
  0x1d   :  { %867 = vmatprep.subr.bf16.mxu1 %v1356_v30  ;;  %v1464_v22 = vld [vmem:[%s2023_s0 + $0x7c] ss:$28 sps:$4 sm:$0xff]   ;;  %v1422_v23 = vld [vmem:[%s2022_s2 + $0x240] ss:$8 sps:$4 sm:$0xff]   ;;  %v1463_v25 = vld [vmem:[%s2023_s0 + $0x70] ss:$28 sps:$4 sm:$0xff]  }
  0x1e   :  { %v1427_v24 = vld [vmem:[%s2022_s2 + $0x234] ss:$8 sps:$4 sm:$0xff]   ;;  %v139_v26 = vld [vmem:[%s2024_s1] sm:$0xff]  ;;  %v1425_v27 = vld [vmem:[%s2022_s2 + $0x230] ss:$8 sps:$4 sm:$0xff]  }
  0x1f   :  { %805 = vmatpush1.bf16.msra.mxu0 %v1355_v31  ;;  %v1430_v28 = vld [vmem:[%s2022_s2 + $0x224] ss:$8 sps:$4 sm:$0xff]   ;;  %v1482_v29 = vld [vmem:[%s2023_s0 + $0x14] ss:$28 sps:$4 sm:$0xff]   ;;  %147 = vperm.xlu0 %1309, %v139_v26  }
  0x20   :  { %806 = vmatprep.subr.bf16.mxu0 %v1359_v32  ;;  %868 = vmatpush1.bf16.msra.mxu1 %v1358_v33  ;;  %v1466_v30 = vld [vmem:[%s2023_s0 + $0x78] ss:$28 sps:$4 sm:$0xff]   ;;  %v140_v31 = vld [vmem:[%s2024_s1 + $0x8] sm:$0xff] }
  0x21   :  { %869 = vmatprep.subr.bf16.mxu1 %v1362_v34  ;;  %v1428_v32 = vld [vmem:[%s2022_s2 + $0x220] ss:$8 sps:$4 sm:$0xff]   ;;  %v141_v33 = vld [vmem:[%s2024_s1 + $0x10] sm:$0xff] }
  0x22   :  { %v1433_v34 = vld [vmem:[%s2022_s2 + $0x214] ss:$8 sps:$4 sm:$0xff]   ;;  %157 = vperm.xlu1 %1310, %v141_v33   ;;  %v1443_v48 = vld [vmem:[%s2022_s2 + $0x2d0] ss:$8 sps:$4 sm:$0xff]  }
  0x23   :  { %807 = vmatpush2.bf16.msra.mxu0 %v1361_v35  ;;  %152 = vperm.xlu0 %1309, %v140_v31   ;;  %v143_v35 = vld [vmem:[%s2024_s1 + $0x20] sm:$0xff]  ;;  %v1458_v52 = vld [vmem:[%s2022_s2 + $0x2b0] ss:$8 sps:$4 sm:$0xff]  }
  0x24   :  { %808 = vmatprep.subr.bf16.mxu0 %v1365_v36  ;;  %870 = vmatpush2.bf16.msra.mxu1 %v1364_v37  ;;  %v1431_v36 = vld [vmem:[%s2022_s2 + $0x210] ss:$8 sps:$4 sm:$0xff]  }
  0x25   :  { %871 = vmatprep.subr.bf16.mxu1 %v1368_v38  ;;  %v142_v37 = vld [vmem:[%s2024_s1 + $0x18] sm:$0xff]  ;;  %v1436_v38 = vld [vmem:[%s2022_s2 + $0x204] ss:$8 sps:$4 sm:$0xff]  }
  0x26   :  { %162 = vperm.xlu1 %1310, %v142_v37  }
  0x27   :  { %809 = vmatpush2.bf16.msra.mxu0 %v1367_v39  ;;  %v1479_v39 = vld [vmem:[%s2023_s0 + $0x18] ss:$28 sps:$4 sm:$0xff]   ;;  %167 = vperm.xlu0 %1309, %v143_v35  }
  0x28   :  { %810 = vmatprep.subr.bf16.mxu0 %v1371_v40  ;;  %872 = vmatpush2.bf16.msra.mxu1 %v1370_v41  ;;  %v1434_v40 = vld [vmem:[%s2022_s2 + $0x200] ss:$8 sps:$4 sm:$0xff]  }
  0x29   :  { %873 = vmatprep.subr.bf16.mxu1 %v1374_v42  ;;  %v144_v41 = vld [vmem:[%s2024_s1 + $0x28] sm:$0xff]  ;;  %v1439_v42 = vld [vmem:[%s2022_s2 + $0x2f4] ss:$8 sps:$4 sm:$0xff]  }
  0x2a   :  { %172 = vperm.xlu1 %1310, %v144_v41  }
  0x2b   :  { %811 = vmatpush2.bf16.msra.mxu0 %v1373_v43  ;;  %v1437_v43 = vld [vmem:[%s2022_s2 + $0x2f0] ss:$8 sps:$4 sm:$0xff]  }
  0x2c   :  { %812 = vmatprep.subr.bf16.mxu0 %v1377_v44  ;;  %874 = vmatpush2.bf16.msra.mxu1 %v1376_v45  ;;  %v1442_v44 = vld [vmem:[%s2022_s2 + $0x2e4] ss:$8 sps:$4 sm:$0xff]  }
  0x2d   :  { %875 = vmatprep.subr.bf16.mxu1 %v1380_v46  ;;  %v1483_v45 = vld [vmem:[%s2023_s0 + $0x50] ss:$28 sps:$4 sm:$0xff]   ;;  %v1440_v46 = vld [vmem:[%s2022_s2 + $0x2e0] ss:$8 sps:$4 sm:$0xff]  }
  0x2f   :  { %813 = vmatpush2.bf16.msra.mxu0 %v1379_v47  ;;  %v1445_v47 = vld [vmem:[%s2022_s2 + $0x2d4] ss:$8 sps:$4 sm:$0xff]  }
  0x30   :  { %814 = vmatprep.subr.bf16.mxu0 %v1383_v49  ;;  %876 = vmatpush2.bf16.msra.mxu1 %v1382_v50  ;;  %v1457_v49 = vld [vmem:[%s2022_s2 + $0x2c4] ss:$8 sps:$4 sm:$0xff]  }
  0x31   :  { %877 = vmatprep.subr.bf16.mxu1 %v1386_v51  ;;  %v1487_v50 = vld [vmem:[%s2023_s0 + $0x88] ss:$28 sps:$4 sm:$0xff]  }
  0x32   :  { %v1455_v51 = vld [vmem:[%s2022_s2 + $0x2c0] ss:$8 sps:$4 sm:$0xff]  }
  0x33   :  { %815 = vmatpush2.bf16.msra.mxu0 %v1385_v53  ;;  %v1469_v53 = vld [vmem:[%s2022_s2 + $0x2a4] ss:$8 sps:$4 sm:$0xff]  }
  0x34   :  { %816 = vmatprep.subr.bf16.mxu0 %v1389_v54  ;;  %878 = vmatpush2.bf16.msra.mxu1 %v1388_v55  ;;  %v1467_v54 = vld [vmem:[%s2022_s2 + $0x2a0] ss:$8 sps:$4 sm:$0xff]   ;;  %v1475_v55 = vld [vmem:[%s2022_s2 + $0x294] ss:$8 sps:$4 sm:$0xff]  }
  0x35   :  { %879 = vmatprep.subr.bf16.mxu1 %v1392_v56  ;;  %v1473_v56 = vld [vmem:[%s2022_s2 + $0x290] ss:$8 sps:$4 sm:$0xff]  }
  0x37   :  { %817 = vmatpush2.bf16.msra.mxu0 %v1391_v57  ;;  %v1478_v57 = vld [vmem:[%s2022_s2 + $0x284] ss:$8 sps:$4 sm:$0xff]  }
  0x38   :  { %818 = vmatprep.subr.bf16.mxu0 %v1395_v58  ;;  %880 = vmatpush2.bf16.msra.mxu1 %v1394_v59  ;;  %v1476_v58 = vld [vmem:[%s2022_s2 + $0x280] ss:$8 sps:$4 sm:$0xff]   ;;  %v1480_v59 = vld [vmem:[%s2023_s0 + $0x10] ss:$28 sps:$4 sm:$0xff]  }
  0x39   :  { %881 = vmatprep.subr.bf16.mxu1 %v1398_v60  ;;  %v1484_v60 = vld [vmem:[%s2023_s0 + $0x4c] ss:$28 sps:$4 sm:$0xff]  }
  0x3b   :  { %819 = vmatpush2.bf16.msra.mxu0 %v1397_v61  ;;  %v1486_v61 = vld [vmem:[%s2023_s0 + $0x48] ss:$28 sps:$4 sm:$0xff]  }
  0x3c   :  { %820 = vmatprep.subr.bf16.mxu0 %v1401_v62  ;;  %882 = vmatpush2.bf16.msra.mxu1 %v1400_v63  ;;  %v1488_v62 = vld [vmem:[%s2023_s0 + $0x84] ss:$28 sps:$4 sm:$0xff]  }
  0x3d   :  { %883 = vmatprep.subr.bf16.mxu1 %v1404_v0  ;;  %v1490_v63 = vld [vmem:[%s2023_s0 + $0x80] ss:$28 sps:$4 sm:$0xff]  }
  0x3f   :  { %821 = vmatpush2.bf16.msra.mxu0 %v1403_v2 }
  0x40   :  { %916 = vmatprep.subr.bf16.mxu0 %v1412_v5  ;;  %884 = vmatpush2.bf16.msra.mxu1 %v1409_v3 }
  0x41   :  { %991 = vmatprep.subr.bf16.mxu1 %v1450_v8 }
  0x42   :  { %823 = vmatmul.mubr.bf16.vlgmr.msra.gmra.mxu0 %v1406_v4 }
  0x43   :  { %917 = vmatpush1.bf16.msra.mxu0 %v1410_v6  ;;  %832 = vmatprep.mubr.bf16.mxu0 %v1446_v10 }
  0x44   :  { %886 = vmatmul.mubr.bf16.vlgmr.msra.gmra.mxu1 %v1413_v7  ;;  %918 = vmatprep.subr.bf16.mxu0 %v1418_v9 }
  0x45   :  { %992 = vmatpush1.bf16.msra.mxu1 %v1448_v11  ;;  %895 = vmatprep.mubr.bf16.mxu1 %v1452_v12 }
  0x46   :  { %993 = vmatprep.subr.bf16.mxu1 %v1472_v20 }
  0x47   :  { %919 = vmatpush1.bf16.msra.mxu0 %v1416_v13 }
  0x48   :  { %920 = vmatprep.subr.bf16.mxu0 %v1421_v14 }
  0x49   :  { %994 = vmatpush1.bf16.msra.mxu1 %v1470_v19 }
  0x4a   :  { %833 = vmatmul.mubr.bf16.gmra.mxu0 %v1451_v17 }
  0x4b   :  { %921 = vmatpush1.bf16.msra.mxu0 %v1419_v15  ;;  %842 = vmatprep.mubr.bf16.mxu0 %v1461_v18 }
  0x4c   :  { %922 = vmatprep.subr.bf16.mxu0 %v1424_v16  ;;  %896 = vmatmul.mubr.bf16.gmra.mxu1 %v1454_v21 }
  0x4d   :  { %905 = vmatprep.mubr.bf16.mxu1 %v1464_v22 }
  0x4f   :  { %923 = vmatpush1.bf16.msra.mxu0 %v1422_v23 }
  0x50   :  { %924 = vmatprep.subr.bf16.mxu0 %v1427_v24 }
  0x52   :  { %843 = vmatmul.mubr.bf16.gmra.mxu0 %v1463_v25 }
  0x53   :  { %925 = vmatpush1.bf16.msra.mxu0 %v1425_v27  ;;  %948 = vmatprep.mubr.bf16.mxu0 %v1482_v29 }
  0x54   :  { %926 = vmatprep.subr.bf16.mxu0 %v1430_v28  ;;  %906 = vmatmul.mubr.bf16.gmra.mxu1 %v1466_v30 }
  0x55   :  { %1011 = vmatprep.mubr.bf16.mxu1 %v1515_v1 }
  0x57   :  { %927 = vmatpush1.bf16.msra.mxu0 %v1428_v32 }
  0x58   :  { %928 = vmatprep.subr.bf16.mxu0 %v1433_v34 }
  0x5b   :  { %929 = vmatpush1.bf16.msra.mxu0 %v1431_v36 }
  0x5c   :  { %930 = vmatprep.subr.bf16.mxu0 %v1436_v38  ;;  %1281 = vmatmul.mubr.msk.bf16.vlgmr.msra.gmra.mxu1 %vm780_vm0, %v1479_v39 }
  0x5d   :  { %1021 = vmatprep.mubr.bf16.mxu1 %v1515_v1 }
  0x5f   :  { %931 = vmatpush1.bf16.msra.mxu0 %v1434_v40 }
  0x60   :  { %932 = vmatprep.subr.bf16.mxu0 %v1439_v42 }
  0x63   :  { %933 = vmatpush2.bf16.msra.mxu0 %v1437_v43 }
  0x64   :  { %934 = vmatprep.subr.bf16.mxu0 %v1442_v44  ;;  %1282 = vmatmul.mubr.msk.bf16.gmra.mxu1 %vm780_vm0, %v1483_v45 }
  0x65   :  { %1031 = vmatprep.mubr.bf16.mxu1 %v1515_v1  ;;  %v1460_v1 = vld [vmem:[%s2022_s2 + $0x2b4] ss:$8 sps:$4 sm:$0xff]  }
  0x67   :  { %935 = vmatpush2.bf16.msra.mxu0 %v1440_v46 }
  0x68   :  { %936 = vmatprep.subr.bf16.mxu0 %v1445_v47 }
  0x6b   :  { %937 = vmatpush2.bf16.msra.mxu0 %v1443_v48 }
  0x6c   :  { %938 = vmatprep.subr.bf16.mxu0 %v1457_v49  ;;  %1283 = vmatmul.mubr.msk.bf16.gmra.mxu1 %vm780_vm0, %v1487_v50 }
  0x6f   :  { %939 = vmatpush2.bf16.msra.mxu0 %v1455_v51 }
  0x70   :  { %940 = vmatprep.subr.bf16.mxu0 %v1460_v1 }
  0x73   :  { %941 = vmatpush2.bf16.msra.mxu0 %v1458_v52 }
  0x74   :  { %942 = vmatprep.subr.bf16.mxu0 %v1469_v53 }
  0x77   :  { %943 = vmatpush2.bf16.msra.mxu0 %v1467_v54 }
  0x78   :  { %944 = vmatprep.subr.bf16.mxu0 %v1475_v55 }
  0x7b   :  { %945 = vmatpush2.bf16.msra.mxu0 %v1473_v56 }
  0x7c   :  { %946 = vmatprep.subr.bf16.mxu0 %v1478_v57 }
  0x7f   :  { %947 = vmatpush2.bf16.msra.mxu0 %v1476_v58 }
  0x82   :  { %949 = vmatmul.mubr.bf16.vlgmr.msra.gmra.mxu0 %v1480_v59 }
  0x83   :  { %958 = vmatprep.mubr.bf16.mxu0 %v1484_v60 }
  0x8a   :  { %959 = vmatmul.mubr.bf16.gmra.mxu0 %v1486_v61 }
  0x8b   :  { %968 = vmatprep.mubr.bf16.mxu0 %v1488_v62 }
  0x92   :  { %969 = vmatmul.mubr.bf16.gmra.mxu0 %v1490_v63 }
  0x9a   :  { %v148_v25 = vpop.permute.xlu0 %147 }
  0x9d   :  { %v158_v33 = vpop.permute.xlu1 %157 }
  0x9e   :  { %v153_v30 = vpop.permute.xlu0 %152 }
  0xa1   :  { %v163_v48 = vpop.permute.xlu1 %162 }
 0x102   :  { %v824_v7 = vpop.f32.mrf.mxu0 }
 0x103   :  { %v825_v29 = vadd.f32 %v824_v7, %v148_v25 }
 0x104   :  { %v887_v0 = vpop.f32.mrf.mxu1  ;;  %v826_v9 = vpop.f32.mrf.mxu0 }
 0x105   :  { %v827_v31 = vadd.f32 %v826_v9, %v148_v25  ;;  %v888_v35 = vadd.f32 %v887_v0, %v825_v29  ;;  %v168_v0 = vpop.permute.xlu0 %167 }
 0x106   :  { %v889_v2 = vpop.f32.mrf.mxu1  ;;  %v828_v11 = vpop.f32.mrf.mxu0 }
 0x107   :  { %v829_v36 = vadd.f32 %v828_v11, %v153_v30  ;;  %v890_v38 = vadd.f32 %v889_v2, %v827_v31 }
 0x108   :  { %v891_v3 = vpop.f32.mrf.mxu1  ;;  %v830_v13 = vpop.f32.mrf.mxu0 }
 0x109   :  { %v831_v41 = vadd.f32 %v830_v13, %v153_v30  ;;  %v892_v43 = vadd.f32 %v891_v3, %v829_v36 }
 0x10a   :  { %v893_v4 = vpop.f32.mrf.mxu1  ;;  %v834_v15 = vpop.f32.mrf.mxu0 }
 0x10b   :  { %v835_v46 = vadd.f32 %v834_v15, %v158_v33  ;;  %v894_v53 = vadd.f32 %v893_v4, %v831_v41 }
 0x10c   :  { %v897_v5 = vpop.f32.mrf.mxu1  ;;  %v836_v17 = vpop.f32.mrf.mxu0 }
 0x10d   :  { %v837_v47 = vadd.f32 %v836_v17, %v158_v33  ;;  %v898_v59 = vadd.f32 %v897_v5, %v835_v46  ;;  %v173_v5 = vpop.permute.xlu1 %172 }
 0x10e   :  { %v899_v6 = vpop.f32.mrf.mxu1  ;;  %v838_v19 = vpop.f32.mrf.mxu0 }
 0x10f   :  { %v839_v55 = vadd.f32 %v838_v19, %v163_v48  ;;  %v900_v60 = vadd.f32 %v899_v6, %v837_v47 }
 0x110   :  { %v1925_v8 = vpop.f32.mrf.mxu1  ;;  %v840_v21 = vpop.f32.mrf.mxu0 }
 0x111   :  { %v841_v63 = vadd.f32 %v840_v21, %v163_v48  ;;  %v902_v13 = vadd.f32 %v1925_v8, %v839_v55 }
 0x112   :  { %v1927_v10 = vpop.f32.mrf.mxu1  ;;  %v844_v23 = vpop.f32.mrf.mxu0 }
 0x113   :  { %v845_v6 = vadd.f32 %v844_v23, %v168_v0 }
 0x114   :  { %v1929_v12 = vpop.f32.mrf.mxu1  ;;  %v846_v26 = vpop.f32.mrf.mxu0 }
 0x115   :  { %v847_v29 = vadd.f32 %v846_v26, %v168_v0 }
 0x116   :  { %v1931_v14 = vpop.f32.mrf.mxu1  ;;  %v1937_v28 = vpop.f32.mrf.mxu0 }
 0x117   :  { %v849_v33 = vadd.f32 %v1937_v28, %v173_v5 }
 0x118   :  { %v1933_v16 = vpop.f32.mrf.mxu1  ;;  %v1939_v34 = vpop.f32.mrf.mxu0 }
 0x11a   :  { %v1935_v18 = vpop.f32.mrf.mxu1 }
 0x11c   :  { %v1013_v20 = vpop.f32.mrf.mxu1 }
 0x11e   :  { %v1015_v22 = vpop.f32.mrf.mxu1 }
 0x120   :  { %v1017_v24 = vpop.f32.mrf.mxu1 }
 0x122   :  { %v1019_v27 = vpop.f32.mrf.mxu1 }
 0x124   :  { %v1023_v32 = vpop.f32.mrf.mxu1 }
 0x126   :  { %v1025_v40 = vpop.f32.mrf.mxu1 }
 0x128   :  { %v1027_v52 = vpop.f32.mrf.mxu1 }
 0x12a   :  { %v1029_v7 = vpop.f32.mrf.mxu1 }
 0x142   :  { %v950_v37 = vpop.f32.mrf.mxu0 }
 0x143   :  { %v951_v39 = vadd.f32 %v950_v37, %v888_v35 }
 0x144   :  { %v952_v42 = vpop.f32.mrf.mxu0 }
 0x145   :  { %v1941_v44 = vadd.f32 %v1013_v20, %v951_v39  ;;  %v953_v45 = vadd.f32 %v952_v42, %v890_v38  ;;  %v851_v38 = vadd.f32 %v1939_v34, %v173_v5  ;;  %v910_v42 = vadd.f32 %v1931_v14, %v847_v29 }
 0x146   :  { %v954_v49 = vpop.f32.mrf.mxu0 }
 0x147   :  { %v1042_v50 = vmin.f32 %v1941_v44, 0.0  ;;  %v1944_v51 = vadd.f32 %v1015_v22, %v953_v45  ;;  %v955_v1 = vadd.f32 %v954_v49, %v892_v43  ;;  %v904_v22 = vadd.f32 %v1927_v10, %v841_v63 }
 0x148   :  { %v956_v54 = vpop.f32.mrf.mxu0  ;;  %v908_v10 = vadd.f32 %v1929_v12, %v845_v6  ;;  %v912_v45 = vadd.f32 %v1933_v16, %v849_v33  ;;  %v914_v49 = vadd.f32 %v1935_v18, %v851_v38  ;;  %vm1090_vm1 = vcmp.gt.f32.partialorder %v1941_v44, 0.0 }
 0x149   :  { %v1054_v56 = vmul.f32 1.442695, %v1042_v50  ;;  %v1043_v57 = vmin.f32 %v1944_v51, 0.0  ;;  %v1947_v58 = vadd.f32 %v1017_v24, %v955_v1  ;;  %v957_v61 = vadd.f32 %v956_v54, %v894_v53 }
 0x14a   :  { %v960_v62 = vpop.f32.mrf.mxu0  ;;  %vm1091_vm2 = vcmp.gt.f32.partialorder %v1944_v51, 0.0 }
 0x14b   :  { %1491 = vpow2.f32 %v1054_v56  ;;  %v1056_v2 = vmul.f32 1.442695, %v1043_v57  ;;  %v1044_v3 = vmin.f32 %v1947_v58, 0.0  ;;  %v1950_v9 = vadd.f32 %v1019_v27, %v957_v61  ;;  %v1033_v27 = vpop.f32.mrf.mxu1 }
 0x14c   :  { %v961_v4 = vadd.f32 %v960_v62, %v898_v59  ;;  %v962_v11 = vpop.f32.mrf.mxu0  ;;  %vm1092_vm3 = vcmp.gt.f32.partialorder %v1947_v58, 0.0 }
 0x14d   :  { %1493 = vpow2.f32 %v1056_v2  ;;  %v1058_v15 = vmul.f32 1.442695, %v1044_v3  ;;  %v963_v17 = vadd.f32 %v962_v11, %v900_v60  ;;  %v1045_v19 = vmin.f32 %v1950_v9, 0.0  ;;  %v1035_v41 = vpop.f32.mrf.mxu1 }
 0x14e   :  { %v1954_v20 = vadd.f32 %v1023_v32, %v961_v4  ;;  %v964_v21 = vpop.f32.mrf.mxu0  ;;  %vm1093_vm4 = vcmp.gt.f32.partialorder %v1950_v9, 0.0 }
 0x14f   :  { %1495 = vpow2.f32 %v1058_v15  ;;  %v1957_v24 = vadd.f32 %v1025_v40, %v963_v17  ;;  %v965_v25 = vadd.f32 %v964_v21, %v902_v13  ;;  %v1060_v30 = vmul.f32 1.442695, %v1045_v19  ;;  %v1037_v1 = vpop.f32.mrf.mxu1 }
 0x150   :  { %v1046_v8 = vmin.f32 %v1954_v20, 0.0  ;;  %v966_v31 = vpop.f32.mrf.mxu0  ;;  %vm1094_vm5 = vcmp.gt.f32.partialorder %v1954_v20, 0.0 }
 0x151   :  { %v1047_v23 = vmin.f32 %v1957_v24, 0.0  ;;  %v1962_v35 = vadd.f32 %v1027_v52, %v965_v25  ;;  %v967_v32 = vadd.f32 %v966_v31, %v904_v22  ;;  %1497 = vpow2.f32 %v1060_v30  ;;  %v1039_v62 = vpop.f32.mrf.mxu1 }
 0x152   :  { %v1062_v36 = vmul.f32 1.442695, %v1046_v8  ;;  %v970_v37 = vpop.f32.mrf.mxu0  ;;  %vm1095_vm6 = vcmp.gt.f32.partialorder %v1957_v24, 0.0 }
 0x153   :  { %v1064_v39 = vmul.f32 1.442695, %v1047_v23  ;;  %v1048_v26 = vmin.f32 %v1962_v35, 0.0  ;;  %v1967_v40 = vadd.f32 %v1029_v7, %v967_v32  ;;  %v971_v28 = vadd.f32 %v970_v37, %v908_v10 }
 0x154   :  { %1499 = vpow2.f32 %v1062_v36  ;;  %v972_v43 = vpop.f32.mrf.mxu0  ;;  %vm1096_vm7 = vcmp.gt.f32.partialorder %v1962_v35, 0.0 }
 0x155   :  { %1501 = vpow2.f32 %v1064_v39  ;;  %v1066_v46 = vmul.f32 1.442695, %v1048_v26  ;;  %v1049_v12 = vmin.f32 %v1967_v40, 0.0  ;;  %v1972_v47 = vadd.f32 %v1033_v27, %v971_v28 }
 0x156   :  { %v973_v34 = vadd.f32 %v972_v43, %v910_v42  ;;  %v974_v48 = vpop.f32.mrf.mxu0  ;;  %vm1097_vm8 = vcmp.gt.f32.partialorder %v1967_v40, 0.0 }
 0x157   :  { %1503 = vpow2.f32 %v1066_v46  ;;  %v1068_v50 = vmul.f32 1.442695, %v1049_v12  ;;  %v975_v52 = vadd.f32 %v974_v48, %v912_v45  ;;  %v1050_v14 = vmin.f32 %v1972_v47, 0.0 }
 0x158   :  { %v1492_v53 = vpop.eup %1491  ;;  %v1976_v54 = vadd.f32 %v1035_v41, %v973_v34  ;;  %v976_v16 = vpop.f32.mrf.mxu0  ;;  %vm1098_vm9 = vcmp.gt.f32.partialorder %v1972_v47, 0.0 }
 0x159   :  { %v1284_v55 = vadd.f32 -1.0, %v1492_v53  ;;  %1505 = vpow2.f32 %v1068_v50  ;;  %v1978_v56 = vadd.f32 %v1037_v1, %v975_v52  ;;  %v977_v57 = vadd.f32 %v976_v16, %v914_v49 }
 0x15a   :  { %v1494_v59 = vpop.eup %1493  ;;  %v1070_v60 = vmul.f32 1.442695, %v1050_v14  ;;  %v1051_v61 = vmin.f32 %v1976_v54, 0.0  ;;  %vm1099_vm10 = vcmp.gt.f32.partialorder %v1976_v54, 0.0 }
 0x15b   :  { %v1285_v18 = vadd.f32 -1.0, %v1494_v59  ;;  %v1052_v63 = vmin.f32 %v1978_v56, 0.0  ;;  %v1040_v3 = vadd.f32 %v1039_v62, %v977_v57  ;;  %v1102_v7 = vsel %vm1090_vm1, %v1941_v44, %v1284_v55 }
 0x15c   :  { %v1496_v0 = vpop.eup %1495  ;;  %1507 = vpow2.f32 %v1070_v60  ;;  %v1072_v2 = vmul.f32 1.442695, %v1051_v61  ;;  %vm1100_vm11 = vcmp.gt.f32.partialorder %v1978_v56, 0.0 }
 0x15d   :  { %v1103_v4 = vsel %vm1091_vm2, %v1944_v51, %v1285_v18  ;;  %v1074_v11 = vmul.f32 1.442695, %v1052_v63  ;;  %v1286_v15 = vadd.f32 -1.0, %v1496_v0  ;;  %v1053_v17 = vmin.f32 %v1040_v3, 0.0 }
 0x15e   :  { %v1302_v13 = vpack.c.bf16 %v1103_v4, %v1102_v7  ;;  %1509 = vpow2.f32 %v1072_v2  ;;  %v1498_v5 = vpop.eup %1497  ;;  %vm1101_vm12 = vcmp.gt.f32.partialorder %v1040_v3, 0.0 }
 0x15f   :  { %1511 = vpow2.f32 %v1074_v11  ;;  %v1287_v6 = vadd.f32 -1.0, %v1498_v5  ;;  %v1076_v19 = vmul.f32 1.442695, %v1053_v17  ;;  %v1104_v51 = vsel %vm1092_vm3, %v1947_v58, %v1286_v15 }
 0x160   :  { %1150 = vst [vmem:[%s2025_s3] sm:$0xff] %v1302_v13 }
 0x161   :  { %v1500_v21 = vpop.eup %1499  ;;  %v1105_v22 = vsel %vm1093_vm4, %v1950_v9, %v1287_v6  ;;  %1513 = vpow2.f32 %v1076_v19 }
 0x162   :  { %v1502_v44 = vpop.eup %1501  ;;  %v1288_v25 = vadd.f32 -1.0, %v1500_v21  ;;  %v1303_v27 = vpack.c.bf16 %v1105_v22, %v1104_v51 }
 0x163   :  { %v1289_v29 = vadd.f32 -1.0, %v1502_v44 }
 0x164   :  { %v1504_v30 = vpop.eup %1503  ;;  %1151 = vst [vmem:[%s2025_s3 + $0x8] sm:$0xff] %v1303_v27  ;;  %v1106_v8 = vsel %vm1094_vm5, %v1954_v20, %v1288_v25 }
 0x165   :  { %v1107_v31 = vsel %vm1095_vm6, %v1957_v24, %v1289_v29  ;;  %v1290_v58 = vadd.f32 -1.0, %v1504_v30 }
 0x166   :  { %v1506_v33 = vpop.eup %1505  ;;  %v1304_v9 = vpack.c.bf16 %v1107_v31, %v1106_v8 }
 0x167   :  { %v1291_v23 = vadd.f32 -1.0, %v1506_v33  ;;  %v1108_v36 = vsel %vm1096_vm7, %v1962_v35, %v1290_v58 }
 0x168   :  { %1152 = vst [vmem:[%s2025_s3 + $0x10] sm:$0xff] %v1304_v9 }
 0x169   :  { %v1508_v32 = vpop.eup %1507  ;;  %v1109_v10 = vsel %vm1097_vm8, %v1967_v40, %v1291_v23 }
 0x16a   :  { %v1305_v20 = vpack.c.bf16 %v1109_v10, %v1108_v36  ;;  %v1292_v37 = vadd.f32 -1.0, %v1508_v32 }
 0x16b   :  { %v1510_v24 = vpop.eup %1509 }
 0x16c   :  { %v1512_v38 = vpop.eup %1511  ;;  %1153 = vst [vmem:[%s2025_s3 + $0x18] sm:$0xff] %v1305_v20  ;;  %v1293_v39 = vadd.f32 -1.0, %v1510_v24  ;;  %v1110_v26 = vsel %vm1098_vm9, %v1972_v47, %v1292_v37 }
 0x16d   :  { %v1294_v35 = vadd.f32 -1.0, %v1512_v38 }
 0x16e   :  { %v1111_v41 = vsel %vm1099_vm10, %v1976_v54, %v1293_v39  ;;  %v1514_v28 = vpop.eup %1513 }
 0x16f   :  { %v1306_v40 = vpack.c.bf16 %v1111_v41, %v1110_v26  ;;  %v1295_v42 = vadd.f32 -1.0, %v1514_v28  ;;  %v1112_v43 = vsel %vm1100_vm11, %v1978_v56, %v1294_v35 }
 0x171   :  { %1154 = vst [vmem:[%s2025_s3 + $0x20] sm:$0xff] %v1306_v40  ;;  %v1113_v45 = vsel %vm1101_vm12, %v1040_v3, %v1295_v42 }
 0x172   :  { %v1307_v46 = vpack.c.bf16 %v1113_v45, %v1112_v43 }
 0x174   :  { %1155 = vst [vmem:[%s2025_s3 + $0x28] sm:$0xff] %v1307_v46 }

// kernel: nvidia_net_forward.9
= control target key start
LH: loop header
LB: loop body
LE: loop exit
PB: predicated region body
PF: predicated region fallthrough
CT: control target
= control target key end

     0   :  { %v810_v0 = vmov 0   ;;  %vm371_vm0 = vcmask 392192   ;;  %s1033_s2 = inlined_call_operand.vmem [shape: bf16[432,128], index: 2, kind: input, shape index: {}]   ;;  %s1034_s0 = inlined_call_operand.vmem [shape: bf16[64,432], index: 0, kind: input, shape index: {}]   ;;  %s1035_s1 = inlined_call_operand.vmem [shape: f32[64,1], index: 1, kind: input, shape index: {}]   ;;  %s1036_s3 = inlined_call_operand.vmem [shape: bf16[64,128], index: 3, kind: output, shape index: {}]  }
   0x1   :  { %449 = vmatprep.subr.bf16.mxu1 %v810_v0  ;;  %v743_v1 = vld [vmem:[%s1033_s2 + $0x78] sm:$0xff]   ;;  %741 = vset.pattern.permute.xlu0 %v810_v0  ;;  %v746_v4 = vld [vmem:[%s1033_s2 + $0x70] sm:$0xff]   ;;  %v749_v7 = vld [vmem:[%s1033_s2 + $0x68] sm:$0xff]  }
   0x2   :  { %v744_v2 = vld [vmem:[%s1033_s2 + $0xb8] sm:$0xff]   ;;  %742 = vset.pattern.permute.xlu1 %v810_v0  ;;  %700 = vmatprep.subr.bf16.mxu0 %v743_v1  ;;  %v747_v5 = vld [vmem:[%s1033_s2 + $0xb0] sm:$0xff]   ;;  %v750_v8 = vld [vmem:[%s1033_s2 + $0xa8] sm:$0xff]  }
   0x3   :  { %v745_v3 = vld [vmem:[%s1033_s2 + $0x38] sm:$0xff]   ;;  %450 = vmatpush1.bf16.msra.mxu1 %v744_v2  ;;  %v748_v6 = vld [vmem:[%s1033_s2 + $0x30] sm:$0xff]   ;;  %v751_v9 = vld [vmem:[%s1033_s2 + $0x28] sm:$0xff]  }
   0x4   :  { %701 = vmatpush3.bf16.msra.mxu0 %v745_v3  ;;  %451 = vmatprep.subr.bf16.mxu1 %v810_v0  ;;  %v752_v10 = vld [vmem:[%s1033_s2 + $0x60] sm:$0xff]   ;;  %v755_v13 = vld [vmem:[%s1033_s2 + $0x58] sm:$0xff]   ;;  %v758_v16 = vld [vmem:[%s1033_s2 + $0x50] sm:$0xff]  }
   0x5   :  { %702 = vmatprep.subr.bf16.mxu0 %v746_v4  ;;  %v753_v11 = vld [vmem:[%s1033_s2 + $0xa0] sm:$0xff]   ;;  %v756_v14 = vld [vmem:[%s1033_s2 + $0x98] sm:$0xff]   ;;  %v759_v17 = vld [vmem:[%s1033_s2 + $0x90] sm:$0xff]  }
   0x6   :  { %v754_v12 = vld [vmem:[%s1033_s2 + $0x20] sm:$0xff]   ;;  %v757_v15 = vld [vmem:[%s1033_s2 + $0x18] sm:$0xff]   ;;  %v760_v18 = vld [vmem:[%s1033_s2 + $0x10] sm:$0xff]  }
   0x7   :  { %452 = vmatpush1.bf16.msra.mxu1 %v747_v5  ;;  %v761_v19 = vld [vmem:[%s1033_s2 + $0x48] sm:$0xff]   ;;  %v764_v22 = vld [vmem:[%s1033_s2 + $0x40] sm:$0xff]   ;;  %v770_v28 = vld [vmem:[%s1033_s2 + $0xd0] sm:$0xff]  }
   0x8   :  { %703 = vmatpush3.bf16.msra.mxu0 %v748_v6  ;;  %453 = vmatprep.subr.bf16.mxu1 %v810_v0  ;;  %v762_v20 = vld [vmem:[%s1033_s2 + $0x88] sm:$0xff]   ;;  %v769_v23 = vld [vmem:[%s1034_s0 + $0x4] ss:$16 sps:$4 sm:$0xff]   ;;  %v767_v26 = vld [vmem:[%s1034_s0] ss:$16 sps:$4 sm:$0xff]  }
   0x9   :  { %704 = vmatprep.subr.bf16.mxu0 %v749_v7  ;;  %v763_v21 = vld [vmem:[%s1033_s2 + $0x8] sm:$0xff]   ;;  %v765_v24 = vld [vmem:[%s1033_s2 + $0x80] sm:$0xff]   ;;  %416 = vmatprep.mubr.bf16.mxu0 %v769_v23  ;;  %v87_v32 = vld [vmem:[%s1035_s1 + $0x10] sm:$0xff] }
   0xa   :  { %v766_v25 = vld [vmem:[%s1033_s2] sm:$0xff]   ;;  %v778_v27 = vld [vmem:[%s1034_s0 + $0xc] ss:$16 sps:$4 sm:$0xff]   ;;  %105 = vperm.xlu1 %742, %v87_v32   ;;  %v776_v38 = vld [vmem:[%s1034_s0 + $0x8] ss:$16 sps:$4 sm:$0xff]  }
   0xb   :  { %454 = vmatpush1.bf16.msra.mxu1 %v750_v8  ;;  %v772_v29 = vld [vmem:[%s1034_s0 + $0x24] ss:$16 sps:$4 sm:$0xff]   ;;  %649 = vmatprep.mubr.msk.bf16.mxu1 %vm371_vm0, %v778_v27  ;;  %v771_v30 = vld [vmem:[%s1033_s2 + $0xc8] sm:$0xff]   ;;  %v774_v33 = vld [vmem:[%s1034_s0 + $0x20] ss:$16 sps:$4 sm:$0xff]  }
   0xc   :  { %705 = vmatpush3.bf16.msra.mxu0 %v751_v9  ;;  %455 = vmatprep.subr.bf16.mxu1 %v810_v0  ;;  %v85_v31 = vld [vmem:[%s1035_s1] sm:$0xff]  ;;  %v86_v35 = vld [vmem:[%s1035_s1 + $0x8] sm:$0xff]  ;;  %v88_v37 = vld [vmem:[%s1035_s1 + $0x18] sm:$0xff] }
   0xd   :  { %706 = vmatprep.subr.bf16.mxu0 %v752_v10  ;;  %95 = vperm.xlu0 %741, %v85_v31   ;;  %v775_v34 = vld [vmem:[%s1033_s2 + $0xc0] sm:$0xff]   ;;  %v782_v39 = vld [vmem:[%s1034_s0 + $0x2c] ss:$16 sps:$4 sm:$0xff]   ;;  %v91_v43 = vld [vmem:[%s1035_s1 + $0x30] sm:$0xff] }
   0xe   :  { %v779_v36 = vld [vmem:[%s1034_s0 + $0x44] ss:$16 sps:$4 sm:$0xff]   ;;  %110 = vperm.xlu1 %742, %v88_v37   ;;  %v90_v41 = vld [vmem:[%s1035_s1 + $0x28] sm:$0xff]  ;;  %v781_v42 = vld [vmem:[%s1034_s0 + $0x40] ss:$16 sps:$4 sm:$0xff]  }
   0xf   :  { %456 = vmatpush1.bf16.msra.mxu1 %v753_v11  ;;  %v89_v40 = vld [vmem:[%s1035_s1 + $0x20] sm:$0xff]  ;;  %v92_v45 = vld [vmem:[%s1035_s1 + $0x38] sm:$0xff] }
  0x10   :  { %707 = vmatpush3.bf16.msra.mxu0 %v754_v12  ;;  %457 = vmatprep.subr.bf16.mxu1 %v810_v0  ;;  %v785_v44 = vld [vmem:[%s1034_s0 + $0x64] ss:$16 sps:$4 sm:$0xff]   ;;  %v784_v46 = vld [vmem:[%s1034_s0 + $0x28] ss:$16 sps:$4 sm:$0xff]   ;;  %v788_v47 = vld [vmem:[%s1034_s0 + $0x4c] ss:$16 sps:$4 sm:$0xff]  }
  0x11   :  { %708 = vmatprep.subr.bf16.mxu0 %v755_v13  ;;  %100 = vperm.xlu0 %741, %v86_v35   ;;  %v787_v48 = vld [vmem:[%s1034_s0 + $0x60] ss:$16 sps:$4 sm:$0xff]   ;;  %v790_v49 = vld [vmem:[%s1034_s0 + $0x48] ss:$16 sps:$4 sm:$0xff]   ;;  %v791_v50 = vld [vmem:[%s1034_s0 + $0x6c] ss:$16 sps:$4 sm:$0xff]  }
  0x12   :  { %120 = vperm.xlu1 %742, %v90_v41   ;;  %v793_v51 = vld [vmem:[%s1034_s0 + $0x68] ss:$16 sps:$4 sm:$0xff]  }
  0x13   :  { %458 = vmatpush1.bf16.msra.mxu1 %v756_v14 }
  0x14   :  { %709 = vmatpush3.bf16.msra.mxu0 %v757_v15  ;;  %459 = vmatprep.subr.bf16.mxu1 %v810_v0 }
  0x15   :  { %710 = vmatprep.subr.bf16.mxu0 %v758_v16  ;;  %115 = vperm.xlu0 %741, %v89_v40  }
  0x16   :  { %130 = vperm.xlu1 %742, %v92_v45  }
  0x17   :  { %460 = vmatpush1.bf16.msra.mxu1 %v759_v17 }
  0x18   :  { %711 = vmatpush3.bf16.msra.mxu0 %v760_v18  ;;  %461 = vmatprep.subr.bf16.mxu1 %v810_v0 }
  0x19   :  { %712 = vmatprep.subr.bf16.mxu0 %v761_v19  ;;  %125 = vperm.xlu0 %741, %v91_v43  }
  0x1b   :  { %462 = vmatpush1.bf16.msra.mxu1 %v762_v20 }
  0x1c   :  { %713 = vmatpush3.bf16.msra.mxu0 %v763_v21  ;;  %463 = vmatprep.subr.bf16.mxu1 %v810_v0 }
  0x1d   :  { %714 = vmatprep.subr.bf16.mxu0 %v764_v22 }
  0x1f   :  { %464 = vmatpush1.bf16.msra.mxu1 %v765_v24 }
  0x20   :  { %715 = vmatpush3.bf16.msra.mxu0 %v766_v25  ;;  %475 = vmatprep.subr.bf16.mxu1 %v810_v0 }
  0x23   :  { %417 = vmatmul.mubr.bf16.vlgmr.msra.gmra.mxu0 %v767_v26  ;;  %476 = vmatpush2.bf16.msra.mxu1 %v770_v28 }
  0x24   :  { %477 = vmatprep.subr.bf16.mxu1 %v810_v0  ;;  %424 = vmatprep.mubr.bf16.mxu0 %v772_v29 }
  0x27   :  { %478 = vmatpush2.bf16.msra.mxu1 %v771_v30 }
  0x28   :  { %479 = vmatprep.subr.bf16.mxu1 %v810_v0 }
  0x2b   :  { %425 = vmatmul.mubr.bf16.gmra.mxu0 %v774_v33  ;;  %480 = vmatpush2.bf16.msra.mxu1 %v775_v34 }
  0x2c   :  { %432 = vmatprep.mubr.bf16.mxu0 %v779_v36 }
  0x2e   :  { %482 = vmatmul.mubr.bf16.vlgmr.msra.gmra.mxu1 %v776_v38 }
  0x2f   :  { %650 = vmatprep.mubr.msk.bf16.mxu1 %vm371_vm0, %v782_v39 }
  0x33   :  { %433 = vmatmul.mubr.bf16.gmra.mxu0 %v781_v42 }
  0x34   :  { %440 = vmatprep.mubr.bf16.mxu0 %v785_v44 }
  0x36   :  { %490 = vmatmul.mubr.bf16.gmra.mxu1 %v784_v46 }
  0x37   :  { %651 = vmatprep.mubr.msk.bf16.mxu1 %vm371_vm0, %v788_v47 }
  0x3b   :  { %441 = vmatmul.mubr.bf16.gmra.mxu0 %v787_v48 }
  0x3e   :  { %498 = vmatmul.mubr.bf16.gmra.mxu1 %v790_v49 }
  0x3f   :  { %652 = vmatprep.mubr.msk.bf16.mxu1 %vm371_vm0, %v791_v50 }
  0x46   :  { %506 = vmatmul.mubr.bf16.gmra.mxu1 %v793_v51 }
  0x85   :  { %v106_v2 = vpop.permute.xlu1 %105 }
  0x88   :  { %v96_v55 = vpop.permute.xlu0 %95 }
  0x89   :  { %v111_v17 = vpop.permute.xlu1 %110 }
  0x8c   :  { %v101_v62 = vpop.permute.xlu0 %100 }
  0x8d   :  { %v121_v41 = vpop.permute.xlu1 %120 }
  0x90   :  { %v116_v31 = vpop.permute.xlu0 %115 }
  0x94   :  { %v126_v51 = vpop.permute.xlu0 %125 }
  0xe3   :  { %v716_v52 = vpop.f32.mrf.mxu0 }
  0xe5   :  { %v717_v53 = vpop.f32.mrf.mxu0 }
  0xe6   :  { %v718_v56 = vadd.f32 %v717_v53, %v716_v52 }
  0xe7   :  { %v719_v54 = vpop.f32.mrf.mxu0 }
  0xe8   :  { %v419_v59 = vadd.f32 %v718_v56, %v96_v55 }
  0xe9   :  { %v720_v57 = vpop.f32.mrf.mxu0 }
  0xea   :  { %v721_v60 = vadd.f32 %v720_v57, %v719_v54 }
  0xeb   :  { %v722_v58 = vpop.f32.mrf.mxu0 }
  0xec   :  { %v422_v4 = vadd.f32 %v721_v60, %v101_v62  ;;  %v131_v60 = vpop.permute.xlu1 %130 }
  0xed   :  { %v723_v61 = vpop.f32.mrf.mxu0 }
  0xee   :  { %v483_v63 = vpop.f32.mrf.mxu1  ;;  %v724_v5 = vadd.f32 %v723_v61, %v722_v58 }
  0xef   :  { %v1001_v0 = vadd.f32 %v483_v63, %v419_v59  ;;  %v725_v1 = vpop.f32.mrf.mxu0 }
  0xf0   :  { %v485_v3 = vpop.f32.mrf.mxu1  ;;  %v427_v13 = vadd.f32 %v724_v5, %v106_v2 }
  0xf1   :  { %v514_v6 = vmin.f32 %v1001_v0, 0.0  ;;  %v726_v7 = vpop.f32.mrf.mxu0  ;;  %vm546_vm1 = vcmp.gt.f32.partialorder %v1001_v0, 0.0 }
  0xf2   :  { %v486_v8 = vpop.f32.mrf.mxu1  ;;  %v727_v14 = vadd.f32 %v726_v7, %v725_v1 }
  0xf3   :  { %v522_v9 = vmul.f32 1.442695, %v514_v6  ;;  %v1004_v10 = vadd.f32 %v486_v8, %v422_v4  ;;  %v728_v11 = vpop.f32.mrf.mxu0 }
  0xf4   :  { %v488_v12 = vpop.f32.mrf.mxu1  ;;  %v430_v23 = vadd.f32 %v727_v14, %v111_v17 }
  0xf5   :  { %794 = vpow2.f32 %v522_v9  ;;  %v515_v15 = vmin.f32 %v1004_v10, 0.0  ;;  %v729_v16 = vpop.f32.mrf.mxu0  ;;  %vm547_vm2 = vcmp.gt.f32.partialorder %v1004_v10, 0.0 }
  0xf6   :  { %v491_v18 = vpop.f32.mrf.mxu1  ;;  %v730_v24 = vadd.f32 %v729_v16, %v728_v11 }
  0xf7   :  { %v524_v19 = vmul.f32 1.442695, %v515_v15  ;;  %v1007_v20 = vadd.f32 %v491_v18, %v427_v13  ;;  %v731_v21 = vpop.f32.mrf.mxu0 }
  0xf8   :  { %v493_v22 = vpop.f32.mrf.mxu1  ;;  %v435_v33 = vadd.f32 %v730_v24, %v116_v31 }
  0xf9   :  { %796 = vpow2.f32 %v524_v19  ;;  %v516_v25 = vmin.f32 %v1007_v20, 0.0  ;;  %v732_v26 = vpop.f32.mrf.mxu0  ;;  %vm548_vm3 = vcmp.gt.f32.partialorder %v1007_v20, 0.0 }
  0xfa   :  { %v494_v27 = vpop.f32.mrf.mxu1  ;;  %v733_v34 = vadd.f32 %v732_v26, %v731_v21 }
  0xfb   :  { %v526_v28 = vmul.f32 1.442695, %v516_v25  ;;  %v1010_v29 = vadd.f32 %v494_v27, %v430_v23  ;;  %v734_v30 = vpop.f32.mrf.mxu0 }
  0xfc   :  { %v496_v32 = vpop.f32.mrf.mxu1  ;;  %v438_v46 = vadd.f32 %v733_v34, %v121_v41 }
  0xfd   :  { %798 = vpow2.f32 %v526_v28  ;;  %v517_v35 = vmin.f32 %v1010_v29, 0.0  ;;  %v735_v36 = vpop.f32.mrf.mxu0  ;;  %vm549_vm4 = vcmp.gt.f32.partialorder %v1010_v29, 0.0 }
  0xfe   :  { %v499_v37 = vpop.f32.mrf.mxu1  ;;  %v736_v43 = vadd.f32 %v735_v36, %v734_v30 }
  0xff   :  { %v528_v38 = vmul.f32 1.442695, %v517_v35  ;;  %v500_v39 = vadd.f32 %v499_v37, %v435_v33  ;;  %v737_v40 = vpop.f32.mrf.mxu0 }
 0x100   :  { %v501_v42 = vpop.f32.mrf.mxu1  ;;  %v443_v56 = vadd.f32 %v736_v43, %v126_v51 }
 0x101   :  { %800 = vpow2.f32 %v528_v38  ;;  %v518_v44 = vmin.f32 %v500_v39, 0.0  ;;  %v738_v45 = vpop.f32.mrf.mxu0  ;;  %vm550_vm5 = vcmp.gt.f32.partialorder %v500_v39, 0.0 }
 0x102   :  { %v795_v47 = vpop.eup %794  ;;  %v502_v48 = vpop.f32.mrf.mxu1  ;;  %v739_v52 = vadd.f32 %v738_v45, %v737_v40 }
 0x103   :  { %v530_v49 = vmul.f32 1.442695, %v518_v44  ;;  %v503_v50 = vadd.f32 %v502_v48, %v438_v46  ;;  %v653_v54 = vadd.f32 -1.0, %v795_v47 }
 0x104   :  { %v504_v53 = vpop.f32.mrf.mxu1  ;;  %v446_v1 = vadd.f32 %v739_v52, %v131_v60 }
 0x105   :  { %802 = vpow2.f32 %v530_v49  ;;  %v519_v55 = vmin.f32 %v503_v50, 0.0  ;;  %v554_v2 = vsel %vm546_vm1, %v1001_v0, %v653_v54  ;;  %vm551_vm6 = vcmp.gt.f32.partialorder %v503_v50, 0.0 }
 0x106   :  { %v797_v57 = vpop.eup %796  ;;  %v507_v58 = vpop.f32.mrf.mxu1 }
 0x107   :  { %v654_v59 = vadd.f32 -1.0, %v797_v57  ;;  %v532_v61 = vmul.f32 1.442695, %v519_v55  ;;  %v508_v62 = vadd.f32 %v507_v58, %v443_v56 }
 0x108   :  { %v509_v63 = vpop.f32.mrf.mxu1 }
 0x109   :  { %v555_v3 = vsel %vm547_vm2, %v1004_v10, %v654_v59  ;;  %804 = vpow2.f32 %v532_v61  ;;  %v520_v4 = vmin.f32 %v508_v62, 0.0  ;;  %vm552_vm7 = vcmp.gt.f32.partialorder %v508_v62, 0.0 }
 0x10a   :  { %v799_v5 = vpop.eup %798  ;;  %v680_v6 = vpack.c.bf16 %v555_v3, %v554_v2  ;;  %v510_v7 = vpop.f32.mrf.mxu1 }
 0x10b   :  { %v534_v8 = vmul.f32 1.442695, %v520_v4  ;;  %v511_v9 = vadd.f32 %v510_v7, %v446_v1  ;;  %v655_v12 = vadd.f32 -1.0, %v799_v5 }
 0x10c   :  { %681 = vst [vmem:[%s1036_s3] sm:$0xff] %v680_v6   ;;  %v512_v11 = vpop.f32.mrf.mxu1 }
 0x10d   :  { %806 = vpow2.f32 %v534_v8  ;;  %v521_v13 = vmin.f32 %v511_v9, 0.0  ;;  %v556_v10 = vsel %vm548_vm3, %v1007_v20, %v655_v12  ;;  %vm553_vm8 = vcmp.gt.f32.partialorder %v511_v9, 0.0 }
 0x10e   :  { %v801_v14 = vpop.eup %800 }
 0x10f   :  { %v656_v15 = vadd.f32 -1.0, %v801_v14  ;;  %v536_v0 = vmul.f32 1.442695, %v521_v13 }
 0x111   :  { %v557_v16 = vsel %vm549_vm4, %v1010_v29, %v656_v15  ;;  %808 = vpow2.f32 %v536_v0 }
 0x112   :  { %v803_v17 = vpop.eup %802  ;;  %v685_v18 = vpack.c.bf16 %v557_v16, %v556_v10 }
 0x113   :  { %v657_v19 = vadd.f32 -1.0, %v803_v17 }
 0x114   :  { %697 = vst [vmem:[%s1036_s3 + $0x8] sm:$0xff] %v685_v18  }
 0x115   :  { %v558_v23 = vsel %vm550_vm5, %v500_v39, %v657_v19 }
 0x116   :  { %v805_v21 = vpop.eup %804 }
 0x117   :  { %v658_v22 = vadd.f32 -1.0, %v805_v21 }
 0x119   :  { %v559_v24 = vsel %vm551_vm6, %v503_v50, %v658_v22 }
 0x11a   :  { %v807_v25 = vpop.eup %806  ;;  %v690_v26 = vpack.c.bf16 %v559_v24, %v558_v23 }
 0x11b   :  { %v659_v20 = vadd.f32 -1.0, %v807_v25 }
 0x11c   :  { %698 = vst [vmem:[%s1036_s3 + $0x10] sm:$0xff] %v690_v26  }
 0x11d   :  { %v560_v29 = vsel %vm552_vm7, %v508_v62, %v659_v20 }
 0x11e   :  { %v809_v27 = vpop.eup %808 }
 0x11f   :  { %v660_v28 = vadd.f32 -1.0, %v809_v27 }
 0x121   :  { %v561_v30 = vsel %vm553_vm8, %v511_v9, %v660_v28 }
 0x122   :  { %v695_v31 = vpack.c.bf16 %v561_v30, %v560_v29 }
 0x124   :  { %699 = vst [vmem:[%s1036_s3 + $0x18] sm:$0xff] %v695_v31  }

// kernel: nvidia_net_forward.10
= control target key start
LH: loop header
LB: loop body
LE: loop exit
PB: predicated region body
PF: predicated region fallthrough
CT: control target
= control target key end

     0   :  { %v1077_v1 = vmov 0   ;;  %vm475_vm0 = vcmask 523264   ;;  %s1332_s2 = inlined_call_operand.vmem [shape: bf16[576,128], index: 2, kind: input, shape index: {}]   ;;  %s1333_s0 = inlined_call_operand.vmem [shape: bf16[64,576], index: 0, kind: input, shape index: {}]   ;;  %s1334_s1 = inlined_call_operand.vmem [shape: f32[64,1], index: 1, kind: input, shape index: {}]   ;;  %s1335_s3 = inlined_call_operand.vmem [shape: bf16[64,128], index: 3, kind: output, shape index: {}]  }
   0x1   :  { %v997_v0 = vld [vmem:[%s1332_s2 + $0x78] sm:$0xff]   ;;  %995 = vset.pattern.permute.xlu0 %v1077_v1  ;;  %996 = vset.pattern.permute.xlu1 %v1077_v1  ;;  %v1001_v5 = vld [vmem:[%s1332_s2 + $0x70] sm:$0xff]   ;;  %v1005_v9 = vld [vmem:[%s1332_s2 + $0x68] sm:$0xff]  }
   0x2   :  { %v998_v2 = vld [vmem:[%s1332_s2 + $0xf8] sm:$0xff]   ;;  %882 = vmatprep.subr.bf16.mxu0 %v997_v0  ;;  %v1002_v6 = vld [vmem:[%s1332_s2 + $0xf0] sm:$0xff]   ;;  %v1006_v10 = vld [vmem:[%s1332_s2 + $0xe8] sm:$0xff]  }
   0x3   :  { %v999_v3 = vld [vmem:[%s1332_s2 + $0x38] sm:$0xff]   ;;  %922 = vmatprep.subr.bf16.mxu1 %v998_v2  ;;  %v1003_v7 = vld [vmem:[%s1332_s2 + $0x30] sm:$0xff]   ;;  %v1007_v11 = vld [vmem:[%s1332_s2 + $0x28] sm:$0xff]  }
   0x4   :  { %v1000_v4 = vld [vmem:[%s1332_s2 + $0xb8] sm:$0xff]   ;;  %883 = vmatpush3.bf16.msra.mxu0 %v999_v3  ;;  %v1004_v8 = vld [vmem:[%s1332_s2 + $0xb0] sm:$0xff]   ;;  %v1008_v12 = vld [vmem:[%s1332_s2 + $0xa8] sm:$0xff]  }
   0x5   :  { %923 = vmatpush3.bf16.msra.mxu1 %v1000_v4  ;;  %884 = vmatprep.subr.bf16.mxu0 %v1001_v5  ;;  %v1009_v13 = vld [vmem:[%s1332_s2 + $0x60] sm:$0xff]   ;;  %v1013_v17 = vld [vmem:[%s1332_s2 + $0x58] sm:$0xff]   ;;  %v1017_v21 = vld [vmem:[%s1332_s2 + $0x50] sm:$0xff]  }
   0x6   :  { %924 = vmatprep.subr.bf16.mxu1 %v1002_v6  ;;  %v1010_v14 = vld [vmem:[%s1332_s2 + $0xe0] sm:$0xff]   ;;  %v1014_v18 = vld [vmem:[%s1332_s2 + $0xd8] sm:$0xff]   ;;  %v1018_v22 = vld [vmem:[%s1332_s2 + $0xd0] sm:$0xff]  }
   0x7   :  { %v1011_v15 = vld [vmem:[%s1332_s2 + $0x20] sm:$0xff]   ;;  %v1015_v19 = vld [vmem:[%s1332_s2 + $0x18] sm:$0xff]   ;;  %v1019_v23 = vld [vmem:[%s1332_s2 + $0x10] sm:$0xff]  }
   0x8   :  { %885 = vmatpush3.bf16.msra.mxu0 %v1003_v7  ;;  %v1012_v16 = vld [vmem:[%s1332_s2 + $0xa0] sm:$0xff]   ;;  %v1016_v20 = vld [vmem:[%s1332_s2 + $0x98] sm:$0xff]   ;;  %v1020_v24 = vld [vmem:[%s1332_s2 + $0x90] sm:$0xff]  }
   0x9   :  { %925 = vmatpush3.bf16.msra.mxu1 %v1004_v8  ;;  %886 = vmatprep.subr.bf16.mxu0 %v1005_v9  ;;  %v1021_v25 = vld [vmem:[%s1332_s2 + $0x48] sm:$0xff]   ;;  %v1025_v29 = vld [vmem:[%s1332_s2 + $0x40] sm:$0xff]   ;;  %v1035_v37 = vld [vmem:[%s1332_s2 + $0x118] sm:$0xff]  }
   0xa   :  { %926 = vmatprep.subr.bf16.mxu1 %v1006_v10  ;;  %v1022_v26 = vld [vmem:[%s1332_s2 + $0xc8] sm:$0xff]   ;;  %v1026_v30 = vld [vmem:[%s1332_s2 + $0xc0] sm:$0xff]   ;;  %v1042_v40 = vld [vmem:[%s1332_s2 + $0x110] sm:$0xff]  }
   0xb   :  { %v1023_v27 = vld [vmem:[%s1332_s2 + $0x8] sm:$0xff]   ;;  %v1027_v31 = vld [vmem:[%s1332_s2] sm:$0xff]   ;;  %v1045_v44 = vld [vmem:[%s1333_s0 + $0x5c] ss:$20 sps:$4 sm:$0xff]  }
   0xc   :  { %887 = vmatpush3.bf16.msra.mxu0 %v1007_v11  ;;  %v1024_v28 = vld [vmem:[%s1332_s2 + $0x88] sm:$0xff]   ;;  %v1028_v32 = vld [vmem:[%s1332_s2 + $0x80] sm:$0xff]   ;;  %v1050_v49 = vld [vmem:[%s1333_s0 + $0x7c] ss:$20 sps:$4 sm:$0xff]  }
   0xd   :  { %927 = vmatpush3.bf16.msra.mxu1 %v1008_v12  ;;  %888 = vmatprep.subr.bf16.mxu0 %v1009_v13  ;;  %v1029_v33 = vld [vmem:[%s1333_s0] ss:$20 sps:$4 sm:$0xff]   ;;  %v1031_v34 = vld [vmem:[%s1333_s0 + $0x4] ss:$20 sps:$4 sm:$0xff]   ;;  %v1032_v35 = vld [vmem:[%s1333_s0 + $0x8] ss:$20 sps:$4 sm:$0xff]  }
   0xe   :  { %928 = vmatprep.subr.bf16.mxu1 %v1010_v14  ;;  %v1034_v36 = vld [vmem:[%s1333_s0 + $0xc] ss:$20 sps:$4 sm:$0xff]   ;;  %520 = vmatprep.mubr.bf16.mxu0 %v1031_v34  ;;  %v1038_v39 = vld [vmem:[%s1333_s0 + $0x34] ss:$20 sps:$4 sm:$0xff]   ;;  %v1041_v42 = vld [vmem:[%s1333_s0 + $0x30] ss:$20 sps:$4 sm:$0xff]  }
   0xf   :  { %585 = vmatprep.mubr.bf16.mxu1 %v1034_v36  ;;  %v1036_v38 = vld [vmem:[%s1333_s0 + $0x2c] ss:$20 sps:$4 sm:$0xff]   ;;  %v1040_v41 = vld [vmem:[%s1333_s0 + $0x28] ss:$20 sps:$4 sm:$0xff]   ;;  %v1047_v47 = vld [vmem:[%s1333_s0 + $0x50] ss:$20 sps:$4 sm:$0xff]  }
  0x10   :  { %889 = vmatpush3.bf16.msra.mxu0 %v1011_v15  ;;  %v1043_v43 = vld [vmem:[%s1333_s0 + $0x54] ss:$20 sps:$4 sm:$0xff]   ;;  %v1056_v46 = vld [vmem:[%s1332_s2 + $0x100] sm:$0xff]   ;;  %v1048_v48 = vld [vmem:[%s1333_s0 + $0x58] ss:$20 sps:$4 sm:$0xff]  }
  0x11   :  { %929 = vmatpush3.bf16.msra.mxu1 %v1012_v16  ;;  %890 = vmatprep.subr.bf16.mxu0 %v1013_v17  ;;  %v1049_v45 = vld [vmem:[%s1332_s2 + $0x108] sm:$0xff]   ;;  %v1052_v50 = vld [vmem:[%s1333_s0 + $0x84] ss:$20 sps:$4 sm:$0xff]   ;;  %v113_v52 = vld [vmem:[%s1334_s1 + $0x10] sm:$0xff] }
  0x12   :  { %930 = vmatprep.subr.bf16.mxu1 %v1014_v18  ;;  %v111_v51 = vld [vmem:[%s1334_s1] sm:$0xff]  ;;  %v112_v53 = vld [vmem:[%s1334_s1 + $0x8] sm:$0xff]  ;;  %131 = vperm.xlu1 %996, %v113_v52   ;;  %v114_v54 = vld [vmem:[%s1334_s1 + $0x18] sm:$0xff] }
  0x13   :  { %121 = vperm.xlu0 %995, %v111_v51   ;;  %v1054_v55 = vld [vmem:[%s1333_s0 + $0x78] ss:$20 sps:$4 sm:$0xff]   ;;  %v1055_v56 = vld [vmem:[%s1333_s0 + $0x80] ss:$20 sps:$4 sm:$0xff]   ;;  %v1057_v57 = vld [vmem:[%s1333_s0 + $0x10] ss:$20 sps:$4 sm:$0xff]  }
  0x14   :  { %891 = vmatpush3.bf16.msra.mxu0 %v1015_v19  ;;  %v115_v58 = vld [vmem:[%s1334_s1 + $0x20] sm:$0xff]  ;;  %v116_v60 = vld [vmem:[%s1334_s1 + $0x28] sm:$0xff]  ;;  %v117_v61 = vld [vmem:[%s1334_s1 + $0x30] sm:$0xff] }
  0x15   :  { %931 = vmatpush3.bf16.msra.mxu1 %v1016_v20  ;;  %892 = vmatprep.subr.bf16.mxu0 %v1017_v21  ;;  %v1058_v59 = vld [vmem:[%s1333_s0 + $0x60] ss:$20 sps:$4 sm:$0xff]   ;;  %v118_v62 = vld [vmem:[%s1334_s1 + $0x38] sm:$0xff] }
  0x16   :  { %932 = vmatprep.subr.bf16.mxu1 %v1018_v22  ;;  %136 = vperm.xlu1 %996, %v114_v54   ;;  %v1059_v63 = vld [vmem:[%s1333_s0 + $0x38] ss:$20 sps:$4 sm:$0xff]   ;;  %v1060_v0 = vld [vmem:[%s1333_s0 + $0x88] ss:$20 sps:$4 sm:$0xff]  }
  0x17   :  { %126 = vperm.xlu0 %995, %v112_v53  }
  0x18   :  { %893 = vmatpush3.bf16.msra.mxu0 %v1019_v23 }
  0x19   :  { %933 = vmatpush3.bf16.msra.mxu1 %v1020_v24  ;;  %894 = vmatprep.subr.bf16.mxu0 %v1021_v25 }
  0x1a   :  { %934 = vmatprep.subr.bf16.mxu1 %v1022_v26  ;;  %146 = vperm.xlu1 %996, %v116_v60  }
  0x1b   :  { %141 = vperm.xlu0 %995, %v115_v58  }
  0x1c   :  { %895 = vmatpush3.bf16.msra.mxu0 %v1023_v27 }
  0x1d   :  { %935 = vmatpush3.bf16.msra.mxu1 %v1024_v28  ;;  %896 = vmatprep.subr.bf16.mxu0 %v1025_v29 }
  0x1e   :  { %936 = vmatprep.subr.bf16.mxu1 %v1026_v30  ;;  %156 = vperm.xlu1 %996, %v118_v62  }
  0x1f   :  { %151 = vperm.xlu0 %995, %v117_v61  }
  0x20   :  { %897 = vmatpush3.bf16.msra.mxu0 %v1027_v31 }
  0x21   :  { %937 = vmatpush3.bf16.msra.mxu1 %v1028_v32  ;;  %970 = vmatprep.subr.bf16.mxu0 %v1035_v37 }
  0x22   :  { %986 = vmatprep.subr.bf16.mxu1 %v1035_v37 }
  0x23   :  { %521 = vmatmul.mubr.bf16.vlgmr.msra.gmra.mxu0 %v1029_v33 }
  0x24   :  { %586 = vmatmul.mubr.bf16.vlgmr.msra.gmra.mxu1 %v1032_v35  ;;  %971 = vmatpush3.bf16.msra.mxu0 %v1035_v37 }
  0x25   :  { %990 = vmatpush3.bf16.msra.mxu1 %v1035_v37  ;;  %528 = vmatprep.mubr.bf16.mxu0 %v1036_v38 }
  0x26   :  { %593 = vmatprep.mubr.bf16.mxu1 %v1038_v39  ;;  %972 = vmatprep.subr.bf16.mxu0 %v1042_v40 }
  0x27   :  { %987 = vmatprep.subr.bf16.mxu1 %v1042_v40 }
  0x28   :  { %973 = vmatpush3.bf16.msra.mxu0 %v1042_v40 }
  0x29   :  { %991 = vmatpush3.bf16.msra.mxu1 %v1042_v40  ;;  %974 = vmatprep.subr.bf16.mxu0 %v1049_v45 }
  0x2a   :  { %988 = vmatprep.subr.bf16.mxu1 %v1049_v45 }
  0x2b   :  { %529 = vmatmul.mubr.bf16.gmra.mxu0 %v1040_v41 }
  0x2c   :  { %594 = vmatmul.mubr.bf16.gmra.mxu1 %v1041_v42  ;;  %536 = vmatprep.mubr.bf16.mxu0 %v1043_v43 }
  0x2d   :  { %601 = vmatprep.mubr.bf16.mxu1 %v1045_v44  ;;  %975 = vmatpush3.bf16.msra.mxu0 %v1049_v45 }
  0x2e   :  { %992 = vmatpush3.bf16.msra.mxu1 %v1049_v45  ;;  %976 = vmatprep.subr.bf16.mxu0 %v1056_v46 }
  0x2f   :  { %989 = vmatprep.subr.bf16.mxu1 %v1056_v46 }
  0x31   :  { %977 = vmatpush3.bf16.msra.mxu0 %v1056_v46 }
  0x32   :  { %993 = vmatpush3.bf16.msra.mxu1 %v1056_v46 }
  0x33   :  { %537 = vmatmul.mubr.bf16.gmra.mxu0 %v1047_v47 }
  0x34   :  { %602 = vmatmul.mubr.bf16.gmra.mxu1 %v1048_v48  ;;  %544 = vmatprep.mubr.bf16.mxu0 %v1050_v49 }
  0x35   :  { %609 = vmatprep.mubr.bf16.mxu1 %v1052_v50 }
  0x3b   :  { %545 = vmatmul.mubr.bf16.gmra.mxu0 %v1054_v55 }
  0x3c   :  { %610 = vmatmul.mubr.bf16.gmra.mxu1 %v1055_v56  ;;  %978 = vmatprep.mubr.msk.bf16.mxu0 %vm475_vm0, %v1057_v57 }
  0x3d   :  { %982 = vmatprep.mubr.msk.bf16.mxu1 %vm475_vm0, %v1058_v59 }
  0x43   :  { %979 = vmatmul.mubr.msk.bf16.vlgmr.msra.gmra.mxu0 %vm475_vm0, %v1059_v63 }
  0x44   :  { %983 = vmatmul.mubr.msk.bf16.vlgmr.msra.gmra.mxu1 %vm475_vm0, %v1060_v0 }
  0x8d   :  { %v132_v16 = vpop.permute.xlu1 %131 }
  0x8e   :  { %v122_v13 = vpop.permute.xlu0 %121 }
  0x91   :  { %v137_v24 = vpop.permute.xlu1 %136 }
  0x92   :  { %v127_v21 = vpop.permute.xlu0 %126 }
  0x95   :  { %v147_v36 = vpop.permute.xlu1 %146 }
  0x96   :  { %v142_v27 = vpop.permute.xlu0 %141 }
  0x99   :  { %v157_v60 = vpop.permute.xlu1 %156 }
  0x9a   :  { %v152_v41 = vpop.permute.xlu0 %151 }
  0xe3   :  { %v898_v1 = vpop.f32.mrf.mxu0 }
  0xe4   :  { %v938_v2 = vpop.f32.mrf.mxu1 }
  0xe5   :  { %v899_v3 = vpop.f32.mrf.mxu0 }
  0xe6   :  { %v939_v4 = vpop.f32.mrf.mxu1  ;;  %v900_v32 = vadd.f32 %v899_v3, %v898_v1 }
  0xe7   :  { %v901_v5 = vpop.f32.mrf.mxu0  ;;  %v940_v48 = vadd.f32 %v939_v4, %v938_v2 }
  0xe8   :  { %v1294_v6 = vpop.f32.mrf.mxu1  ;;  %v523_v43 = vadd.f32 %v900_v32, %v122_v13 }
  0xe9   :  { %v902_v7 = vpop.f32.mrf.mxu0 }
  0xea   :  { %v1296_v8 = vpop.f32.mrf.mxu1  ;;  %v903_v49 = vadd.f32 %v902_v7, %v901_v5  ;;  %v588_v3 = vadd.f32 %v940_v48, %v523_v43 }
  0xeb   :  { %v904_v9 = vpop.f32.mrf.mxu0 }
  0xec   :  { %v944_v10 = vpop.f32.mrf.mxu1  ;;  %v526_v2 = vadd.f32 %v903_v49, %v127_v21 }
  0xed   :  { %v905_v11 = vpop.f32.mrf.mxu0 }
  0xee   :  { %v945_v12 = vpop.f32.mrf.mxu1  ;;  %v906_v29 = vadd.f32 %v905_v11, %v904_v9 }
  0xef   :  { %v907_v14 = vpop.f32.mrf.mxu0  ;;  %v946_v44 = vadd.f32 %v945_v12, %v944_v10 }
  0xf0   :  { %v947_v15 = vpop.f32.mrf.mxu1  ;;  %v531_v38 = vadd.f32 %v906_v29, %v132_v16 }
  0xf1   :  { %v908_v17 = vpop.f32.mrf.mxu0 }
  0xf2   :  { %v948_v18 = vpop.f32.mrf.mxu1  ;;  %v909_v34 = vadd.f32 %v908_v17, %v907_v14  ;;  %v596_v56 = vadd.f32 %v946_v44, %v531_v38 }
  0xf3   :  { %v910_v19 = vpop.f32.mrf.mxu0  ;;  %v949_v58 = vadd.f32 %v948_v18, %v947_v15  ;;  %v943_v15 = vadd.f32 %v1296_v8, %v1294_v6 }
  0xf4   :  { %v950_v20 = vpop.f32.mrf.mxu1  ;;  %v534_v50 = vadd.f32 %v909_v34, %v137_v24 }
  0xf5   :  { %v911_v22 = vpop.f32.mrf.mxu0 }
  0xf6   :  { %v951_v23 = vpop.f32.mrf.mxu1  ;;  %v912_v35 = vadd.f32 %v911_v22, %v910_v19  ;;  %v599_v9 = vadd.f32 %v949_v58, %v534_v50 }
  0xf7   :  { %v913_v25 = vpop.f32.mrf.mxu0  ;;  %v952_v59 = vadd.f32 %v951_v23, %v950_v20 }
  0xf8   :  { %v953_v26 = vpop.f32.mrf.mxu1  ;;  %v539_v51 = vadd.f32 %v912_v35, %v142_v27 }
  0xf9   :  { %v914_v28 = vpop.f32.mrf.mxu0 }
  0xfa   :  { %v954_v30 = vpop.f32.mrf.mxu1  ;;  %v915_v53 = vadd.f32 %v914_v28, %v913_v25  ;;  %v604_v7 = vadd.f32 %v952_v59, %v539_v51  ;;  %v591_v28 = vadd.f32 %v943_v15, %v526_v2 }
  0xfb   :  { %v916_v31 = vpop.f32.mrf.mxu0  ;;  %v955_v19 = vadd.f32 %v954_v30, %v953_v26 }
  0xfc   :  { %v956_v33 = vpop.f32.mrf.mxu1  ;;  %v542_v10 = vadd.f32 %v915_v53, %v147_v36 }
  0xfd   :  { %v917_v37 = vpop.f32.mrf.mxu0 }
  0xfe   :  { %v918_v39 = vadd.f32 %v917_v37, %v916_v31  ;;  %v957_v40 = vpop.f32.mrf.mxu1  ;;  %v607_v8 = vadd.f32 %v955_v19, %v542_v10 }
  0xff   :  { %v919_v42 = vpop.f32.mrf.mxu0  ;;  %v958_v46 = vadd.f32 %v957_v40, %v956_v33 }
 0x100   :  { %v547_v45 = vadd.f32 %v918_v39, %v152_v41  ;;  %v959_v47 = vpop.f32.mrf.mxu1 }
 0x101   :  { %v920_v52 = vpop.f32.mrf.mxu0 }
 0x102   :  { %v921_v54 = vadd.f32 %v920_v52, %v919_v42  ;;  %v960_v55 = vpop.f32.mrf.mxu1  ;;  %v612_v57 = vadd.f32 %v958_v46, %v547_v45 }
 0x103   :  { %v980_v61 = vpop.f32.mrf.mxu0  ;;  %v961_v63 = vadd.f32 %v960_v55, %v959_v47 }
 0x104   :  { %v550_v62 = vadd.f32 %v921_v54, %v157_v60  ;;  %v1298_v0 = vadd.f32 %v980_v61, %v596_v56  ;;  %v984_v1 = vpop.f32.mrf.mxu1 }
 0x105   :  { %v1300_v4 = vadd.f32 %v984_v1, %v612_v57  ;;  %v652_v5 = vpop.f32.mrf.mxu0 }
 0x106   :  { %v685_v11 = vmin.f32 %v1298_v0, 0.0  ;;  %v1303_v12 = vadd.f32 %v652_v5, %v588_v3  ;;  %v668_v13 = vpop.f32.mrf.mxu1  ;;  %v615_v14 = vadd.f32 %v961_v63, %v550_v62  ;;  %vm717_vm1 = vcmp.gt.f32.partialorder %v1298_v0, 0.0 }
 0x107   :  { %v689_v16 = vmin.f32 %v1300_v4, 0.0  ;;  %v1308_v17 = vadd.f32 %v668_v13, %v604_v7  ;;  %v981_v18 = vpop.f32.mrf.mxu0  ;;  %vm721_vm2 = vcmp.gt.f32.partialorder %v1300_v4, 0.0 }
 0x108   :  { %v695_v20 = vmul.f32 1.442695, %v685_v11  ;;  %v683_v21 = vmin.f32 %v1303_v12, 0.0  ;;  %v664_v22 = vadd.f32 %v981_v18, %v599_v9  ;;  %v985_v23 = vpop.f32.mrf.mxu1  ;;  %vm715_vm5 = vcmp.gt.f32.partialorder %v1303_v12, 0.0 }
 0x109   :  { %v703_v24 = vmul.f32 1.442695, %v689_v16  ;;  %v687_v25 = vmin.f32 %v1308_v17, 0.0  ;;  %v680_v27 = vadd.f32 %v985_v23, %v615_v14  ;;  %v655_v29 = vpop.f32.mrf.mxu0  ;;  %vm719_vm7 = vcmp.gt.f32.partialorder %v1308_v17, 0.0 }
 0x10a   :  { %1061 = vpow2.f32 %v695_v20  ;;  %v691_v31 = vmul.f32 1.442695, %v683_v21  ;;  %v686_v6 = vmin.f32 %v664_v22, 0.0  ;;  %v671_v32 = vpop.f32.mrf.mxu1  ;;  %v656_v30 = vadd.f32 %v655_v29, %v591_v28 }
 0x10b   :  { %1063 = vpow2.f32 %v703_v24  ;;  %v699_v33 = vmul.f32 1.442695, %v687_v25  ;;  %v690_v34 = vmin.f32 %v680_v27, 0.0  ;;  %v672_v35 = vadd.f32 %v671_v32, %v607_v8 }
 0x10c   :  { %1065 = vpow2.f32 %v691_v31  ;;  %v697_v26 = vmul.f32 1.442695, %v686_v6  ;;  %v684_v37 = vmin.f32 %v656_v30, 0.0  ;;  %vm718_vm3 = vcmp.gt.f32.partialorder %v664_v22, 0.0 }
 0x10d   :  { %1067 = vpow2.f32 %v699_v33  ;;  %v705_v36 = vmul.f32 1.442695, %v690_v34  ;;  %v688_v38 = vmin.f32 %v672_v35, 0.0  ;;  %vm722_vm4 = vcmp.gt.f32.partialorder %v680_v27, 0.0 }
 0x10e   :  { %1069 = vpow2.f32 %v697_v26  ;;  %v693_v39 = vmul.f32 1.442695, %v684_v37  ;;  %vm716_vm6 = vcmp.gt.f32.partialorder %v656_v30, 0.0  ;;  %vm720_vm8 = vcmp.gt.f32.partialorder %v672_v35, 0.0 }
 0x10f   :  { %1071 = vpow2.f32 %v705_v36  ;;  %v701_v40 = vmul.f32 1.442695, %v688_v38 }
 0x110   :  { %1073 = vpow2.f32 %v693_v39 }
 0x111   :  { %1075 = vpow2.f32 %v701_v40 }
 0x117   :  { %v1062_v41 = vpop.eup %1061 }
 0x118   :  { %v1064_v42 = vpop.eup %1063  ;;  %v837_v45 = vadd.f32 -1.0, %v1062_v41 }
 0x119   :  { %v1066_v43 = vpop.eup %1065  ;;  %v841_v47 = vadd.f32 -1.0, %v1064_v42 }
 0x11a   :  { %v1068_v44 = vpop.eup %1067  ;;  %v725_v51 = vsel %vm717_vm1, %v1298_v0, %v837_v45  ;;  %v835_v52 = vadd.f32 -1.0, %v1066_v43 }
 0x11b   :  { %v1070_v46 = vpop.eup %1069  ;;  %v729_v55 = vsel %vm721_vm2, %v1300_v4, %v841_v47  ;;  %v839_v56 = vadd.f32 -1.0, %v1068_v44 }
 0x11c   :  { %v1072_v48 = vpop.eup %1071  ;;  %v838_v49 = vadd.f32 -1.0, %v1070_v46  ;;  %v723_v63 = vsel %vm715_vm5, %v1303_v12, %v835_v52 }
 0x11d   :  { %v842_v50 = vadd.f32 -1.0, %v1072_v48  ;;  %v1074_v54 = vpop.eup %1073  ;;  %v727_v1 = vsel %vm719_vm7, %v1308_v17, %v839_v56 }
 0x11e   :  { %v726_v53 = vsel %vm718_vm3, %v664_v22, %v838_v49  ;;  %v1076_v59 = vpop.eup %1075  ;;  %v836_v61 = vadd.f32 -1.0, %v1074_v54 }
 0x11f   :  { %v867_v57 = vpack.c.bf16 %v726_v53, %v725_v51  ;;  %v730_v58 = vsel %vm722_vm4, %v680_v27, %v842_v50  ;;  %v840_v62 = vadd.f32 -1.0, %v1076_v59 }
 0x120   :  { %v877_v60 = vpack.c.bf16 %v730_v58, %v729_v55  ;;  %v724_v0 = vsel %vm716_vm6, %v656_v30, %v836_v61 }
 0x121   :  { %879 = vst [vmem:[%s1335_s3 + $0x8] sm:$0xff] %v867_v57   ;;  %v862_v3 = vpack.c.bf16 %v724_v0, %v723_v63  ;;  %v728_v2 = vsel %vm720_vm8, %v672_v35, %v840_v62 }
 0x122   :  { %881 = vst [vmem:[%s1335_s3 + $0x18] sm:$0xff] %v877_v60   ;;  %v872_v4 = vpack.c.bf16 %v728_v2, %v727_v1 }
 0x123   :  { %863 = vst [vmem:[%s1335_s3] sm:$0xff] %v862_v3  }
 0x124   :  { %880 = vst [vmem:[%s1335_s3 + $0x10] sm:$0xff] %v872_v4  }

// kernel: nvidia_net_forward.11
= control target key start
LH: loop header
LB: loop body
LE: loop exit
PB: predicated region body
PF: predicated region fallthrough
CT: control target
= control target key end

     0   :  { %v193_v27 = vlaneseq  ;;  %v1577_v35 = vmov 1966171168   ;;  %vm1579_vm0 = vmmov 0   ;;  %s1949_s0 = inlined_call_operand.vmem [shape: bf16[2,1152], index: 0, kind: input, shape index: {}]   ;;  %s1950_s1 = inlined_call_operand.vmem [shape: bf16[1152,100], index: 1, kind: input, shape index: {}]   ;;  %s1951_s2 = inlined_call_operand.vmem [shape: f32[1,100], index: 2, kind: input, shape index: {}]   ;;  %s1952_s3 = inlined_call_operand.vmem [shape: bf16[100,50], index: 3, kind: input, shape index: {}]   ;;  %s1953_s4 = inlined_call_operand.vmem [shape: f32[1,50], index: 4, kind: input, shape index: {}]   ;;  %s1954_s5 = inlined_call_operand.vmem [shape: bf16[50,10], index: 5, kind: input, shape index: {}]   ;;  %s1955_s6 = inlined_call_operand.vmem [shape: f32[1,10], index: 6, kind: input, shape index: {}]   ;;  %s1956_s7 = inlined_call_operand.vmem [shape: bf16[10,3], index: 7, kind: input, shape index: {}]   ;;  %s1957_s8 = inlined_call_operand.vmem [shape: f32[1,3], index: 8, kind: input, shape index: {}]   ;;  %s1958_s9 = inlined_call_operand.hbm [shape: f32[2,3], index: 9, kind: output, shape index: {}]  }
   0x1   :  { %v1460_v0 = vld [vmem:[%s1950_s1 + $0x78] sm:$0xff]   ;;  %v1464_v4 = vld [vmem:[%s1950_s1 + $0x70] sm:$0xff]   ;;  %v1468_v8 = vld [vmem:[%s1950_s1 + $0x68] sm:$0xff]   ;;  %v191_v36 = vunpack.c.l.s4 %v1577_v35 }
   0x2   :  { %v1461_v1 = vld [vmem:[%s1950_s1 + $0x38] sm:$0xff]   ;;  %1288 = vmatprep.subr.bf16.mxu0 %v1460_v0  ;;  %v1465_v5 = vld [vmem:[%s1950_s1 + $0x30] sm:$0xff]   ;;  %v1469_v9 = vld [vmem:[%s1950_s1 + $0x28] sm:$0xff]   ;;  %v194_v32 = vshrl.u32 %v193_v27, 7 }
   0x3   :  { %v1462_v2 = vld [vmem:[%s1950_s1 + $0xf8] sm:$0xff]   ;;  %1289 = vmatpush3.bf16.msra.mxu0 %v1461_v1  ;;  %v1466_v6 = vld [vmem:[%s1950_s1 + $0xf0] sm:$0xff]   ;;  %v1470_v10 = vld [vmem:[%s1950_s1 + $0xe8] sm:$0xff]   ;;  %v192_v39 = vunpack.c.0.s8 %v191_v36 }
   0x4   :  { %v1463_v3 = vld [vmem:[%s1950_s1 + $0xb8] sm:$0xff]   ;;  %1310 = vmatprep.subr.bf16.mxu1 %v1462_v2  ;;  %1290 = vmatprep.subr.bf16.mxu0 %v1464_v4  ;;  %v1467_v7 = vld [vmem:[%s1950_s1 + $0xb0] sm:$0xff]   ;;  %v1471_v11 = vld [vmem:[%s1950_s1 + $0xa8] sm:$0xff]  }
   0x5   :  { %1311 = vmatpush3.bf16.msra.mxu1 %v1463_v3  ;;  %v1472_v12 = vld [vmem:[%s1950_s1 + $0x60] sm:$0xff]   ;;  %v1476_v16 = vld [vmem:[%s1950_s1 + $0x58] sm:$0xff]   ;;  %v1480_v20 = vld [vmem:[%s1950_s1 + $0x50] sm:$0xff]   ;;  %v1736_v41 = vsub.s32 %v192_v39, %v194_v32 }
   0x6   :  { %1312 = vmatprep.subr.bf16.mxu1 %v1466_v6  ;;  %v1473_v13 = vld [vmem:[%s1950_s1 + $0x20] sm:$0xff]   ;;  %v1477_v17 = vld [vmem:[%s1950_s1 + $0x18] sm:$0xff]   ;;  %v1481_v21 = vld [vmem:[%s1950_s1 + $0x10] sm:$0xff]  }
   0x7   :  { %1291 = vmatpush3.bf16.msra.mxu0 %v1465_v5  ;;  %v1474_v14 = vld [vmem:[%s1950_s1 + $0xe0] sm:$0xff]   ;;  %v1478_v18 = vld [vmem:[%s1950_s1 + $0xd8] sm:$0xff]   ;;  %v1482_v22 = vld [vmem:[%s1950_s1 + $0xd0] sm:$0xff]  }
   0x8   :  { %1292 = vmatprep.subr.bf16.mxu0 %v1468_v8  ;;  %v1475_v15 = vld [vmem:[%s1950_s1 + $0xa0] sm:$0xff]   ;;  %v1479_v19 = vld [vmem:[%s1950_s1 + $0x98] sm:$0xff]   ;;  %v1483_v23 = vld [vmem:[%s1950_s1 + $0x90] sm:$0xff]  }
   0x9   :  { %1313 = vmatpush3.bf16.msra.mxu1 %v1467_v7  ;;  %v1484_v24 = vld [vmem:[%s1950_s1 + $0x48] sm:$0xff]   ;;  %v1488_v29 = vld [vmem:[%s1950_s1 + $0x40] sm:$0xff]   ;;  %v1493_v37 = vld [vmem:[%s1950_s1 + $0x178] sm:$0xff]  }
   0xa   :  { %1314 = vmatprep.subr.bf16.mxu1 %v1470_v10  ;;  %v1485_v25 = vld [vmem:[%s1950_s1 + $0x8] sm:$0xff]   ;;  %v1489_v30 = vld [vmem:[%s1950_s1] sm:$0xff]   ;;  %v1495_v40 = vld [vmem:[%s1950_s1 + $0x1f8] sm:$0xff]  }
   0xb   :  { %1293 = vmatpush3.bf16.msra.mxu0 %v1469_v9  ;;  %v1486_v26 = vld [vmem:[%s1950_s1 + $0xc8] sm:$0xff]   ;;  %v1490_v31 = vld [vmem:[%s1950_s1 + $0xc0] sm:$0xff]   ;;  %v1494_v48 = vld [vmem:[%s1950_s1 + $0x138] sm:$0xff]  }
   0xc   :  { %1294 = vmatprep.subr.bf16.mxu0 %v1472_v12  ;;  %v1487_v28 = vld [vmem:[%s1950_s1 + $0x88] sm:$0xff]   ;;  %v34_v33 = vld [vmem:[%s1949_s0] sm:$0xff]  ;;  %v1497_v51 = vld [vmem:[%s1950_s1 + $0x170] sm:$0xff]  }
   0xd   :  { %1315 = vmatpush3.bf16.msra.mxu1 %v1471_v11  ;;  %v1492_v34 = vld [vmem:[%s1950_s1 + $0x80] sm:$0xff]   ;;  %v189_v38 = vcombine.high %v34_v33, %v34_v33  ;;  %v196_v42 = vrot.slane %v34_v33, %v1736_v41  ;;  %v1496_v53 = vld [vmem:[%s1950_s1 + $0x1b8] sm:$0xff]   ;;  %v1499_v54 = vld [vmem:[%s1950_s1 + $0x1f0] sm:$0xff]  }
   0xe   :  { %1316 = vmatprep.subr.bf16.mxu1 %v1474_v14  ;;  %v1498_v56 = vld [vmem:[%s1950_s1 + $0x130] sm:$0xff]   ;;  %v1501_v57 = vld [vmem:[%s1950_s1 + $0x168] sm:$0xff]   ;;  %v1505_v61 = vld [vmem:[%s1950_s1 + $0x160] sm:$0xff]  }
   0xf   :  { %1295 = vmatpush3.bf16.msra.mxu0 %v1473_v13  ;;  %v1740_v43 = vrot.slane %v189_v38, %v1736_v41  ;;  %v204_v44 = vcombine.high %v196_v42, %v196_v42  ;;  %v212_v45 = vrot.slane %v196_v42, %v1736_v41  ;;  %v1500_v58 = vld [vmem:[%s1950_s1 + $0x1b0] sm:$0xff]   ;;  %v1503_v59 = vld [vmem:[%s1950_s1 + $0x1e8] sm:$0xff]   ;;  %v1507_v63 = vld [vmem:[%s1950_s1 + $0x1e0] sm:$0xff]  }
  0x10   :  { %1296 = vmatprep.subr.bf16.mxu0 %v1476_v16  ;;  %v1502_v60 = vld [vmem:[%s1950_s1 + $0x128] sm:$0xff]   ;;  %v1506_v0 = vld [vmem:[%s1950_s1 + $0x120] sm:$0xff]   ;;  %v1509_v1 = vld [vmem:[%s1950_s1 + $0x158] sm:$0xff]  }
  0x11   :  { %1317 = vmatpush3.bf16.msra.mxu1 %v1475_v15  ;;  %v205_v46 = vcombine.high %v1740_v43, %v1740_v43  ;;  %v226_v47 = vrot.slane %v204_v44, %v1736_v41  ;;  %v234_v50 = vcombine.high %v212_v45, %v212_v45  ;;  %v1504_v62 = vld [vmem:[%s1950_s1 + $0x1a8] sm:$0xff]   ;;  %v1508_v2 = vld [vmem:[%s1950_s1 + $0x1a0] sm:$0xff]   ;;  %v1511_v3 = vld [vmem:[%s1950_s1 + $0x1d8] sm:$0xff]  }
  0x12   :  { %1318 = vmatprep.subr.bf16.mxu1 %v1478_v18  ;;  %v1510_v4 = vld [vmem:[%s1950_s1 + $0x118] sm:$0xff]   ;;  %v1513_v5 = vld [vmem:[%s1950_s1 + $0x150] sm:$0xff]   ;;  %v1517_v9 = vld [vmem:[%s1950_s1 + $0x148] sm:$0xff]  }
  0x13   :  { %1297 = vmatpush3.bf16.msra.mxu0 %v1477_v17  ;;  %v233_v49 = vrot.slane %v205_v46, %v1736_v41  ;;  %725 = vmatprep.mubr.bf16.mxu0 %v226_v47  ;;  %v236_v52 = vcombine.high %v226_v47, %v226_v47  ;;  %v1512_v6 = vld [vmem:[%s1950_s1 + $0x198] sm:$0xff]   ;;  %v1515_v7 = vld [vmem:[%s1950_s1 + $0x1d0] sm:$0xff]   ;;  %v1519_v11 = vld [vmem:[%s1950_s1 + $0x1c8] sm:$0xff]   ;;  %v219_v17 = vrot.slane %v1740_v43, %v1736_v41 }
  0x14   :  { %1298 = vmatprep.subr.bf16.mxu0 %v1480_v20  ;;  %v1514_v8 = vld [vmem:[%s1950_s1 + $0x110] sm:$0xff]   ;;  %v1518_v12 = vld [vmem:[%s1950_s1 + $0x108] sm:$0xff]   ;;  %v1521_v13 = vld [vmem:[%s1950_s1 + $0x140] sm:$0xff]   ;;  %v1578_v20 = vmov 0.0  }
  0x15   :  { %1319 = vmatpush3.bf16.msra.mxu1 %v1479_v19  ;;  %v237_v55 = vcombine.high %v233_v49, %v233_v49  ;;  %765 = vmatprep.mubr.bf16.mxu1 %v236_v52  ;;  %v1516_v10 = vld [vmem:[%s1950_s1 + $0x190] sm:$0xff]   ;;  %v1520_v14 = vld [vmem:[%s1950_s1 + $0x188] sm:$0xff]   ;;  %v1523_v15 = vld [vmem:[%s1950_s1 + $0x1c0] sm:$0xff]  }
  0x16   :  { %1320 = vmatprep.subr.bf16.mxu1 %v1482_v22  ;;  %v1522_v16 = vld [vmem:[%s1950_s1 + $0x100] sm:$0xff]   ;;  %v1525_v19 = vld [vmem:[%s1950_s1 + $0x238] sm:$0xff]   ;;  %v1526_v22 = vld [vmem:[%s1950_s1 + $0x230] sm:$0xff]  }
  0x17   :  { %1299 = vmatpush3.bf16.msra.mxu0 %v1481_v21  ;;  %v1524_v18 = vld [vmem:[%s1950_s1 + $0x180] sm:$0xff]   ;;  %v235_v21 = vcombine.high %v219_v17, %v219_v17 }
  0x18   :  { %1300 = vmatprep.subr.bf16.mxu0 %v1484_v24 }
  0x19   :  { %1321 = vmatpush3.bf16.msra.mxu1 %v1483_v23 }
  0x1a   :  { %1322 = vmatprep.subr.bf16.mxu1 %v1486_v26 }
  0x1b   :  { %1301 = vmatpush3.bf16.msra.mxu0 %v1485_v25 }
  0x1c   :  { %1302 = vmatprep.subr.bf16.mxu0 %v1488_v29 }
  0x1d   :  { %1323 = vmatpush3.bf16.msra.mxu1 %v1487_v28 }
  0x1e   :  { %1324 = vmatprep.subr.bf16.mxu1 %v1490_v31 }
  0x1f   :  { %1303 = vmatpush3.bf16.msra.mxu0 %v1489_v30 }
  0x20   :  { %1332 = vmatprep.subr.bf16.mxu0 %v1493_v37 }
  0x21   :  { %1325 = vmatpush3.bf16.msra.mxu1 %v1492_v34 }
  0x22   :  { %1354 = vmatprep.subr.bf16.mxu1 %v1495_v40  ;;  %726 = vmatmul.mubr.bf16.vlgmr.msra.gmra.mxu0 %v212_v45 }
  0x23   :  { %1333 = vmatpush3.bf16.msra.mxu0 %v1494_v48  ;;  %805 = vmatprep.mubr.bf16.mxu0 %v233_v49 }
  0x24   :  { %766 = vmatmul.mubr.bf16.vlgmr.msra.gmra.mxu1 %v234_v50  ;;  %1334 = vmatprep.subr.bf16.mxu0 %v1497_v51 }
  0x25   :  { %1355 = vmatpush3.bf16.msra.mxu1 %v1496_v53  ;;  %845 = vmatprep.mubr.bf16.mxu1 %v237_v55 }
  0x26   :  { %1356 = vmatprep.subr.bf16.mxu1 %v1499_v54 }
  0x27   :  { %1335 = vmatpush3.bf16.msra.mxu0 %v1498_v56 }
  0x28   :  { %1336 = vmatprep.subr.bf16.mxu0 %v1501_v57 }
  0x29   :  { %1357 = vmatpush3.bf16.msra.mxu1 %v1500_v58 }
  0x2a   :  { %1358 = vmatprep.subr.bf16.mxu1 %v1503_v59 }
  0x2b   :  { %1337 = vmatpush3.bf16.msra.mxu0 %v1502_v60 }
  0x2c   :  { %1338 = vmatprep.subr.bf16.mxu0 %v1505_v61 }
  0x2d   :  { %1359 = vmatpush3.bf16.msra.mxu1 %v1504_v62 }
  0x2e   :  { %1360 = vmatprep.subr.bf16.mxu1 %v1507_v63 }
  0x2f   :  { %1339 = vmatpush3.bf16.msra.mxu0 %v1506_v0 }
  0x30   :  { %1340 = vmatprep.subr.bf16.mxu0 %v1509_v1 }
  0x31   :  { %1361 = vmatpush3.bf16.msra.mxu1 %v1508_v2 }
  0x32   :  { %1362 = vmatprep.subr.bf16.mxu1 %v1511_v3 }
  0x33   :  { %1341 = vmatpush3.bf16.msra.mxu0 %v1510_v4 }
  0x34   :  { %1342 = vmatprep.subr.bf16.mxu0 %v1513_v5 }
  0x35   :  { %1363 = vmatpush3.bf16.msra.mxu1 %v1512_v6 }
  0x36   :  { %1364 = vmatprep.subr.bf16.mxu1 %v1515_v7 }
  0x37   :  { %1343 = vmatpush3.bf16.msra.mxu0 %v1514_v8 }
  0x38   :  { %1344 = vmatprep.subr.bf16.mxu0 %v1517_v9 }
  0x39   :  { %1365 = vmatpush3.bf16.msra.mxu1 %v1516_v10 }
  0x3a   :  { %1366 = vmatprep.subr.bf16.mxu1 %v1519_v11 }
  0x3b   :  { %1345 = vmatpush3.bf16.msra.mxu0 %v1518_v12 }
  0x3c   :  { %1346 = vmatprep.subr.bf16.mxu0 %v1521_v13 }
  0x3d   :  { %1367 = vmatpush3.bf16.msra.mxu1 %v1520_v14 }
  0x3e   :  { %1368 = vmatprep.subr.bf16.mxu1 %v1523_v15 }
  0x3f   :  { %1347 = vmatpush3.bf16.msra.mxu0 %v1522_v16 }
  0x40   :  { %1400 = vmatprep.subr.bf16.mxu0 %v1578_v20 }
  0x41   :  { %1369 = vmatpush3.bf16.msra.mxu1 %v1524_v18 }
  0x42   :  { %806 = vmatmul.mubr.bf16.vlgmr.msra.gmra.mxu0 %v219_v17  ;;  %1420 = vmatprep.subr.bf16.mxu1 %v1578_v20 }
  0x43   :  { %1401 = vmatpush3.bf16.msra.mxu0 %v1525_v19  ;;  %1416 = vmatprep.mubr.msk.bf16.mxu0 %vm1579_vm0, %v1578_v20 }
  0x44   :  { %846 = vmatmul.mubr.bf16.vlgmr.msra.gmra.mxu1 %v235_v21  ;;  %1402 = vmatprep.subr.bf16.mxu0 %v1578_v20 }
  0x45   :  { %1434 = vmatprep.mubr.msk.bf16.mxu1 %vm1579_vm0, %v1578_v20 }
  0x46   :  { %14 = vsyncpa [#allocation3], 0  ;;  %v1527_v23 = vld [vmem:[%s1950_s1 + $0x228] sm:$0xff]   ;;  %v1528_v24 = vld [vmem:[%s1950_s1 + $0x220] sm:$0xff]   ;;  %vm963_vm1 = vcmask 1041408   ;;  %vm959_vm3 = vcmask 818176  }
  0x47   :  { %1403 = vmatpush3.bf16.msra.mxu0 %v1526_v22  ;;  %v1529_v25 = vld [vmem:[%s1950_s1 + $0x218] sm:$0xff]   ;;  %v1530_v26 = vld [vmem:[%s1950_s1 + $0x210] sm:$0xff]   ;;  %v1531_v27 = vld [vmem:[%s1950_s1 + $0x208] sm:$0xff]   ;;  %vm1053_vm4 = vcmask 1040384   ;;  %vm1049_vm6 = vcmask 408576   ;;  %vm1122_vm7 = vcmask 1044480  }
  0x48   :  { %1404 = vmatprep.subr.bf16.mxu0 %v1578_v20  ;;  %v1532_v28 = vld [vmem:[%s1950_s1 + $0x200] sm:$0xff]   ;;  %v1194_v29 = vld.sshfl [vmem:[%s1949_s0 + $0x8] sm:$0x1 pattern:$0x75316420]  ;;  %v1536_v35 = vld [vmem:[%s1952_s3 + $0x18] sm:$0xff]  }
  0x49   :  { %v251_v30 = vrot.slane %v1194_v29, %v1736_v41  ;;  %v1533_v31 = vld [vmem:[%s1952_s3 + $0x30] ss:$0 sps:$4 sm:$0x33]   ;;  %v1534_v33 = vld [vmem:[%s1952_s3 + $0x28] sm:$0xff]   ;;  %v1535_v34 = vld [vmem:[%s1952_s3 + $0x20] sm:$0xff]   ;;  %vm1118_vm9 = vcmask 80896  }
  0x4a   :  { %v965_v32 = vsel %vm963_vm1, %v1533_v31, 0  ;;  %v1537_v36 = vld [vmem:[%s1952_s3 + $0x10] sm:$0xff]   ;;  %v1538_v37 = vld [vmem:[%s1952_s3 + $0x8] sm:$0xff]   ;;  %v1539_v38 = vld [vmem:[%s1952_s3] sm:$0xff]   ;;  %vm1166_vm10 = vcmask 17408  }
  0x4b   :  { %1405 = vmatpush3.bf16.msra.mxu0 %v1527_v23  ;;  %1421 = vmatpush3.bf16.msra.mxu1 %v965_v32  ;;  %v1193_v56 = vld [vmem:[%s1951_s2] ss:$0 sm:$0xff]  ;;  %v1540_v11 = vld [vmem:[%s1954_s5 + $0x18] ss:$0 sps:$4 sm:$0x11]   ;;  %v1541_v13 = vld [vmem:[%s1954_s5 + $0x10] sm:$0xff]  }
  0x4c   :  { %1406 = vmatprep.subr.bf16.mxu0 %v1578_v20  ;;  %1422 = vmatprep.subr.bf16.mxu1 %v1578_v20  ;;  %v1055_v12 = vsel %vm1053_vm4, %v1540_v11, 0  ;;  %v1542_v14 = vld [vmem:[%s1954_s5 + $0x8] sm:$0xff]   ;;  %v1543_v15 = vld [vmem:[%s1954_s5] sm:$0xff]  }
  0x4d   :  { %v1268_v16 = vld [vmem:[%s1953_s4] ss:$0 sm:$0xff] }
  0x4f   :  { %1407 = vmatpush3.bf16.msra.mxu0 %v1528_v24  ;;  %1423 = vmatpush3.bf16.msra.mxu1 %v1534_v33 }
  0x50   :  { %1408 = vmatprep.subr.bf16.mxu0 %v1578_v20  ;;  %1424 = vmatprep.subr.bf16.mxu1 %v1578_v20 }
  0x53   :  { %1409 = vmatpush3.bf16.msra.mxu0 %v1529_v25  ;;  %1425 = vmatpush3.bf16.msra.mxu1 %v1535_v34 }
  0x54   :  { %1410 = vmatprep.subr.bf16.mxu0 %v1578_v20  ;;  %1426 = vmatprep.subr.bf16.mxu1 %v1578_v20 }
  0x57   :  { %1411 = vmatpush3.bf16.msra.mxu0 %v1530_v26  ;;  %1427 = vmatpush3.bf16.msra.mxu1 %v1536_v35 }
  0x58   :  { %1412 = vmatprep.subr.bf16.mxu0 %v1578_v20  ;;  %1428 = vmatprep.subr.bf16.mxu1 %v1578_v20 }
  0x5b   :  { %1413 = vmatpush3.bf16.msra.mxu0 %v1531_v27  ;;  %1429 = vmatpush3.bf16.msra.mxu1 %v1537_v36 }
  0x5c   :  { %1414 = vmatprep.subr.bf16.mxu0 %v1578_v20  ;;  %1430 = vmatprep.subr.bf16.mxu1 %v1578_v20 }
  0x5f   :  { %1415 = vmatpush3.bf16.msra.mxu0 %v1532_v28  ;;  %1431 = vmatpush3.bf16.msra.mxu1 %v1538_v37  ;;  %v1544_v28 = vld [vmem:[%s1956_s7] sm:$0x1f]  }
  0x60   :  { %1450 = vmatprep.subr.bf16.mxu0 %v1578_v20  ;;  %1432 = vmatprep.subr.bf16.mxu1 %v1578_v20  ;;  %v1124_v29 = vsel %vm1122_vm7, %v1544_v28, 0 }
  0x62   :  { %1417 = vmatmul.mubr.bf16.vlgmr.msra.gmra.mxu0 %v251_v30  ;;  %v1278_v30 = vld [vmem:[%s1955_s6] ss:$0 sm:$0xff]  ;;  %s1580_s6 = smov [#allocation2]  }
  0x63   :  { %1452 = vmatprep.mubr.msk.bf16.mxu0 %vm1579_vm0, %v1578_v20  ;;  %1433 = vmatpush3.bf16.msra.mxu1 %v1539_v38 }
  0x64   :  { %1438 = vmatprep.subr.bf16.mxu1 %v1578_v20  ;;  %1451 = vmatpush3.bf16.msra.mxu0 %v1124_v29 }
  0xe2   :  { %v1304_v39 = vpop.f32.mrf.mxu0 }
  0xe4   :  { %v1305_v40 = vpop.f32.mrf.mxu0  ;;  %v1326_v41 = vpop.f32.mrf.mxu1 }
  0xe5   :  { %v1306_v55 = vadd.f32 %v1305_v40, %v1304_v39 }
  0xe6   :  { %v1307_v42 = vpop.f32.mrf.mxu0  ;;  %v1327_v43 = vpop.f32.mrf.mxu1 }
  0xe7   :  { %v728_v57 = vadd.f32 %v1306_v55, %v1193_v56  ;;  %v1328_v58 = vadd.f32 %v1327_v43, %v1326_v41  ;;  %v1285_v42 = vld [vmem:[%s1957_s8] ss:$0 sm:$0xff]  ;;  %s1185_s8 = sshll.u32 %s1580_s6, 4  ;;  %s1186_s8 = int_to_ptr.vmem [resolvable:$true] %s1185_s8 }
  0xe8   :  { %v1308_v44 = vpop.f32.mrf.mxu0  ;;  %v1329_v45 = vpop.f32.mrf.mxu1  ;;  %s1555_s12 = scalar_lea.vmem %s1186_s8, 32  ;;  %p1560_p1 = scmp.lt.s32.totalorder %s1186_s8, %s1186_s8 }
  0xe9   :  { %v768_v60 = vadd.f32 %v1328_v58, %v728_v57  ;;  %p1556_p0 = scmp.ne.s32.totalorder %s1186_s8, %s1555_s12  ;;  %p1561_p2 = scmp.lt.s32.totalorder %s1555_s12, %s1555_s12 }
  0xea   :  { %v1330_v46 = vpop.f32.mrf.mxu1 }
  0xeb   :  { %p1562_p3 = por %p1561_p2, %p1560_p1 }
  0xed   :  { %p1563_p4 = pnand %p1562_p3, %p1556_p0 }
 0x102   :  { %v1348_v47 = vpop.f32.mrf.mxu0 }
 0x104   :  { %v1349_v48 = vpop.f32.mrf.mxu0  ;;  %v1370_v49 = vpop.f32.mrf.mxu1 }
 0x105   :  { %v1350_v59 = vadd.f32 %v1349_v48, %v1348_v47 }
 0x106   :  { %v1351_v50 = vpop.f32.mrf.mxu0  ;;  %v1371_v51 = vpop.f32.mrf.mxu1 }
 0x107   :  { %v808_v61 = vadd.f32 %v1350_v59, %v768_v60  ;;  %v1372_v62 = vadd.f32 %v1371_v51, %v1370_v49 }
 0x108   :  { %v1352_v52 = vpop.f32.mrf.mxu0  ;;  %v1373_v53 = vpop.f32.mrf.mxu1 }
 0x109   :  { %v848_v63 = vadd.f32 %v1372_v62, %v808_v61 }
 0x10a   :  { %v1374_v54 = vpop.f32.mrf.mxu1 }
 0x122   :  { %v887_v0 = vpop.f32.mrf.mxu0 }
 0x123   :  { %v888_v1 = vadd.f32 %v887_v0, %v848_v63 }
 0x124   :  { %v1418_v2 = vpop.f32.mrf.mxu0 }
 0x125   :  { %v894_v3 = vmin.f32 %v888_v1, 0.0  ;;  %vm893_vm2 = vcmp.gt.f32.partialorder %v888_v1, 0.0 }
 0x126   :  { %v890_v4 = vpop.f32.mrf.mxu0 }
 0x127   :  { %v895_v5 = vmul.f32 1.442695, %v894_v3 }
 0x128   :  { %v1419_v6 = vpop.f32.mrf.mxu0 }
 0x129   :  { %1545 = vpow2.f32 %v895_v5 }
 0x136   :  { %v1546_v7 = vpop.eup %1545 }
 0x137   :  { %v1267_v8 = vadd.f32 -1.0, %v1546_v7 }
 0x139   :  { %v898_v9 = vsel %vm893_vm2, %v888_v1, %v1267_v8 }
 0x13a   :  { %v899_v10 = vpack.c.bf16 %v898_v9, %v898_v9 }
 0x13c   :  { %1435 = vmatmul.mubr.msk.bf16.vlgmr.msra.gmra.mxu1 %vm959_vm3, %v899_v10 }
 0x13d   :  { %1446 = vmatprep.mubr.msk.bf16.mxu1 %vm1579_vm0, %v1578_v20  ;;  %1439 = vmatpush3.bf16.msra.mxu1 %v1055_v12 }
 0x13e   :  { %1440 = vmatprep.subr.bf16.mxu1 %v1578_v20 }
 0x141   :  { %1441 = vmatpush3.bf16.msra.mxu1 %v1541_v13 }
 0x142   :  { %1442 = vmatprep.subr.bf16.mxu1 %v1578_v20 }
 0x145   :  { %1443 = vmatpush3.bf16.msra.mxu1 %v1542_v14 }
 0x146   :  { %1444 = vmatprep.subr.bf16.mxu1 %v1578_v20 }
 0x149   :  { %1445 = vmatpush3.bf16.msra.mxu1 %v1543_v15 }
 0x1fc   :  { %v1001_v17 = vpop.f32.mrf.mxu1 }
 0x1fd   :  { %v1002_v18 = vadd.f32 %v1268_v16, %v1001_v17 }
 0x1fe   :  { %v1436_v19 = vpop.f32.mrf.mxu1 }
 0x1ff   :  { %v1008_v21 = vmin.f32 %v1002_v18, 0.0  ;;  %vm1007_vm5 = vcmp.gt.f32.partialorder %v1002_v18, 0.0 }
 0x200   :  { %v1004_v22 = vpop.f32.mrf.mxu1 }
 0x201   :  { %v1009_v23 = vmul.f32 1.442695, %v1008_v21 }
 0x202   :  { %v1437_v24 = vpop.f32.mrf.mxu1 }
 0x203   :  { %1547 = vpow2.f32 %v1009_v23 }
 0x210   :  { %v1548_v25 = vpop.eup %1547 }
 0x211   :  { %v1277_v26 = vadd.f32 -1.0, %v1548_v25 }
 0x213   :  { %v1012_v20 = vsel %vm1007_vm5, %v1002_v18, %v1277_v26 }
 0x214   :  { %v1013_v27 = vpack.c.bf16 %v1012_v20, %v1012_v20 }
 0x216   :  { %1447 = vmatmul.mubr.msk.bf16.vlgmr.msra.gmra.mxu1 %vm1049_vm6, %v1013_v27 }
 0x2d6   :  { %v1091_v31 = vpop.f32.mrf.mxu1 }
 0x2d7   :  { %v1092_v32 = vadd.f32 %v1278_v30, %v1091_v31 }
 0x2d8   :  { %v1448_v33 = vpop.f32.mrf.mxu1 }
 0x2d9   :  { %v1098_v34 = vmin.f32 %v1092_v32, 0.0  ;;  %vm1097_vm8 = vcmp.gt.f32.partialorder %v1092_v32, 0.0 }
 0x2da   :  { %v1094_v35 = vpop.f32.mrf.mxu1 }
 0x2db   :  { %v1099_v36 = vmul.f32 1.442695, %v1098_v34 }
 0x2dc   :  { %v1449_v37 = vpop.f32.mrf.mxu1 }
 0x2dd   :  { %1549 = vpow2.f32 %v1099_v36 }
 0x2ea   :  { %v1550_v38 = vpop.eup %1549 }
 0x2eb   :  { %v1284_v39 = vadd.f32 -1.0, %v1550_v38 }
 0x2ed   :  { %v1102_v40 = vsel %vm1097_vm8, %v1092_v32, %v1284_v39 }
 0x2ee   :  { %v1103_v41 = vpack.c.bf16 %v1102_v40, %v1102_v40 }
 0x2f0   :  { %1453 = vmatmul.mubr.msk.bf16.vlgmr.msra.gmra.mxu0 %vm1118_vm9, %v1103_v41 }
 0x3b0   :  { %v1160_v43 = vpop.f32.mrf.mxu0 }
 0x3b1   :  { %v1161_v44 = vadd.f32 %v1285_v42, %v1160_v43 }
 0x3b2   :  { %v1454_v45 = vpop.f32.mrf.mxu0 }
 0x3b3   :  { %v1167_v46 = vsel %vm1166_vm10, %v1161_v44, -inf }
 0x3b4   :  { %1168 = vmax.xlane.f32.xlu0 %v1167_v46  ;;  %v1163_v47 = vpop.f32.mrf.mxu0 }
 0x3b6   :  { %v1455_v48 = vpop.f32.mrf.mxu0 }
 0x43d   :  { %v1169_v49 = vpop.xlane.xlu0 %1168 }
 0x43e   :  { %v1170_v50 = vsub.f32 %v1161_v44, %v1169_v49 }
 0x440   :  { %v1171_v51 = vmul.f32 1.442695, %v1170_v50 }
 0x442   :  { %1551 = vpow2.f32 %v1171_v51 }
 0x44f   :  { %v1552_v52 = vpop.eup %1551 }
 0x450   :  { %v1173_v53 = vsel %vm1166_vm10, %v1552_v52, 0.0 }
 0x451   :  { %1174 = vadd.xlane.f32.xlu0 %v1173_v53 }
 0x4da   :  { %v1175_v54 = vpop.xlane.xlu0 %1174 }
 0x4db   :  { %1553 = vrcp.f32 %v1175_v54 }
 0x4e8   :  { %v1554_v55 = vpop.eup %1553 }
 0x4e9   :  { %v1177_v56 = vmul.f32 %v1554_v55, %v1552_v52 }
 0x4eb   :  { %1178 = vst.msk [vmem:[#allocation2] sm:$0x3] %vm1166_vm10, %v1177_v56 }
 0x4ec   :  { %1566 = shalt.err (!%p1563_p4)
}
 0x4ed   :  { %1188 = dma.vmem_to_hbm [thread:$0]  %s1186_s8, 32, %s1958_s9, [#allocation3]  }
 0x4ee   :  { %1575 = dma.done.wait [#allocation3], 32  }
 0x4ef   :  { %1576 = vsyncadd [#allocation3], 4294967264 }
 0x4f0   :  { %1192 = vsyncpa [#allocation3], 1 }

</bundles_post_ra>
